<compile_context>
chip_gen: v5e
topology: v5e:2x2
jax: 0.10.0
libtpu: 0.0.40
codegen_flags: <defaults>
</compile_context>

<pallas_src>
import functools

import jax
import jax.numpy as jnp
from jax.experimental import pallas as pl
from jax.experimental.pallas import tpu as pltpu

BN_EPS = 1e-5


def _ceil_div(a, b):
    return -(-a // b)


def _conv_stats_kernel(x_ref, wdw_ref, wpw_ref, y_ref, stats_ref, acc_ref, *,
                       K, stride, dilation, padding,
                       C_in, C_out, H, W, H_out, W_out):
    """Pass 1: ReLU -> depthwise dilated conv -> pointwise 1x1 conv (+ stats).

    x_ref    : (C_in, H, W)          un-padded NCHW image (one batch element)
    wdw_ref  : (K*K*C_in,)   SMEM    depthwise weights, index (kh*K+kw)*C_in+ci
    wpw_ref  : (C_out*C_in,) SMEM    pointwise weights, index co*C_in+ci
    y_ref    : (C_out, H_out, W_out) un-normalized conv output
    stats_ref: (C_out, 2)            per-image (sum, sum_sq) per output channel
    acc_ref  : (C_in, H_out, W_out)  VMEM scratch for the depthwise result
    """
    # Zero padding is handled via static per-tap valid ranges, so different
    # taps cover different output sub-regions -> zero-init the accumulator.
    acc_ref[...] = jnp.zeros_like(acc_ref)

    for kh in range(K):
        a = padding - kh * dilation
        h_lo = max(0, _ceil_div(a, stride))
        h_hi = min(H_out - 1, (H - 1 + a) // stride)
        if h_hi < h_lo:
            continue
        nh = h_hi - h_lo + 1
        ih0 = h_lo * stride - a
        ih_ext = (nh - 1) * stride + 1
        for kw in range(K):
            b = padding - kw * dilation
            w_lo = max(0, _ceil_div(b, stride))
            w_hi = min(W_out - 1, (W - 1 + b) // stride)
            if w_hi < w_lo:
                continue
            nw = w_hi - w_lo + 1
            iw0 = w_lo * stride - b
            iw_ext = (nw - 1) * stride + 1

            # Static Ref view: no materialized full-input copy.
            patch = x_ref[:, pl.ds(ih0, ih_ext), pl.ds(iw0, iw_ext)]
            if stride > 1:
                patch = jax.lax.slice(patch, (0, 0, 0), patch.shape,
                                      (1, stride, stride))
            patch = jnp.maximum(patch.astype(jnp.float32), 0.0)  # ReLU per tap

            base = (kh * K + kw) * C_in
            for ci in range(C_in):
                acc_ref[ci, h_lo:h_lo + nh, w_lo:w_lo + nw] += (
                    patch[ci] * wdw_ref[base + ci])

    # Pointwise 1x1 conv as scalar-broadcast VPU FMAs (channel counts are far
    # too small for the MXU), fused with per-image BN partial statistics.
    acc = [acc_ref[ci] for ci in range(C_in)]
    for co in range(C_out):
        r = acc[0] * wpw_ref[co * C_in]
        for ci in range(1, C_in):
            r = r + acc[ci] * wpw_ref[co * C_in + ci]
        y_ref[co] = r
        stats_ref[co:co + 1, 0:1] = jnp.sum(r, axis=(0, 1), keepdims=True)
        stats_ref[co:co + 1, 1:2] = jnp.sum(r * r, axis=(0, 1), keepdims=True)


def _bn_apply_kernel(y_ref, scale_ref, shift_ref, out_ref):
    """Pass 2: fused BatchNorm affine  out = y * scale + shift  (per channel).

    Operates on a lane-dense (C_out, H_out*W_out) view so stores are unmasked.
    """
    out_ref[...] = y_ref[...] * scale_ref[...] + shift_ref[...]


def dilconv_forward(x_nchw, w_dw, w_pw, gamma, beta, *,
                    kernel_size, stride, padding, dilation):
    """DilConv forward. x_nchw: (N, C_in, H, W) float32, PyTorch layout."""
    N, C_in, H, W = x_nchw.shape
    C_out = w_pw.shape[0]
    K = kernel_size
    H_out = (H + 2 * padding - dilation * (K - 1) - 1) // stride + 1
    W_out = (W + 2 * padding - dilation * (K - 1) - 1) // stride + 1
    HW = H_out * W_out

    # Tiny weight tables as flat SMEM scalar arrays.
    wdw_flat = jnp.transpose(w_dw[:, 0, :, :], (1, 2, 0)).reshape(-1)  # (K*K*C_in,)
    wpw_flat = w_pw[:, :, 0, 0].reshape(-1)                            # (C_out*C_in,)

    conv_kernel = functools.partial(
        _conv_stats_kernel, K=K, stride=stride, dilation=dilation,
        padding=padding, C_in=C_in, C_out=C_out, H=H, W=W,
        H_out=H_out, W_out=W_out)

    y, stats = pl.pallas_call(
        conv_kernel,
        out_shape=(jax.ShapeDtypeStruct((N, C_out, H_out, W_out), jnp.float32),
                   jax.ShapeDtypeStruct((N, C_out, 2), jnp.float32)),
        grid=(N,),
        in_specs=[
            pl.BlockSpec((None, C_in, H, W), lambda i: (i, 0, 0, 0)),
            pl.BlockSpec(memory_space=pltpu.MemorySpace.SMEM),
            pl.BlockSpec(memory_space=pltpu.MemorySpace.SMEM),
        ],
        out_specs=(
            pl.BlockSpec((None, C_out, H_out, W_out), lambda i: (i, 0, 0, 0)),
            pl.BlockSpec((None, C_out, 2), lambda i: (i, 0, 0)),
        ),
        scratch_shapes=[pltpu.VMEM((C_in, H_out, W_out), jnp.float32)],
        compiler_params=pltpu.CompilerParams(
            dimension_semantics=("parallel",)),
    )(x_nchw, wdw_flat, wpw_flat)

    # BatchNorm2d training-mode batch statistics over (N, H, W), biased
    # variance (PyTorch's normalization path).  Tiny (C_out,)-sized math.
    count = N * HW
    ssum = jnp.sum(stats[:, :, 0], axis=0)
    ssq = jnp.sum(stats[:, :, 1], axis=0)
    mean = ssum / count
    var = ssq / count - mean * mean
    scale = gamma * jax.lax.rsqrt(var + BN_EPS)
    shift = beta - mean * scale

    # Lane-dense view: trailing-dim collapse of a contiguous array is free and
    # gives a 128-multiple lane extent (256 for the demo config).
    y_flat = y.reshape(N, C_out, HW)
    out_flat = pl.pallas_call(
        _bn_apply_kernel,
        out_shape=jax.ShapeDtypeStruct((N, C_out, HW), jnp.float32),
        grid=(N,),
        in_specs=[
            pl.BlockSpec((None, C_out, HW), lambda i: (i, 0, 0)),
            pl.BlockSpec((C_out, 1), lambda i: (0, 0)),
            pl.BlockSpec((C_out, 1), lambda i: (0, 0)),
        ],
        out_specs=pl.BlockSpec((None, C_out, HW), lambda i: (i, 0, 0)),
        compiler_params=pltpu.CompilerParams(
            dimension_semantics=("parallel",)),
    )(y_flat, scale.reshape(C_out, 1), shift.reshape(C_out, 1))

    return out_flat.reshape(N, C_out, H_out, W_out)   # already NCHW


def _reference_forward(x_nchw, w_dw, w_pw, gamma, beta,
                       *, kernel_size, stride, padding, dilation):
    """Plain-JAX reference (mirrors the PyTorch forward, fix ops = identity)."""
    del kernel_size
    x = jnp.maximum(x_nchw, 0.0)
    y = jax.lax.conv_general_dilated(
        x, w_dw, window_strides=(stride, stride),
        padding=[(padding, padding), (padding, padding)],
        rhs_dilation=(dilation, dilation),
        dimension_numbers=('NCHW', 'OIHW', 'NCHW'),
        feature_group_count=x.shape[1])
    y = jax.lax.conv_general_dilated(
        y, w_pw, window_strides=(1, 1), padding='VALID',
        dimension_numbers=('NCHW', 'OIHW', 'NCHW'))
    mean = jnp.mean(y, axis=(0, 2, 3), keepdims=True)
    var = jnp.mean((y - mean) ** 2, axis=(0, 2, 3), keepdims=True)
    y = (y - mean) * jax.lax.rsqrt(var + BN_EPS)
    return y * gamma.reshape(1, -1, 1, 1) + beta.reshape(1, -1, 1, 1)


if __name__ == "__main__":
    # DilConv(C_in=4, C_out=8, kernel_size=3, stride=1, padding=2, dilation=2)
    C_in, C_out = 4, 8
    kernel_size, stride, padding, dilation = 3, 1, 2, 2
    N, H, W = 2, 16, 16

    key = jax.random.PRNGKey(0)
    kx, kdw, kpw = jax.random.split(key, 3)

    x = jax.random.normal(kx, (N, C_in, H, W), dtype=jnp.float32)
    # conv1 (depthwise): (C_in, 1, K, K); conv2 (1x1): (C_out, C_in, 1, 1)
    w_dw = jax.random.normal(kdw, (C_in, 1, kernel_size, kernel_size),
                             dtype=jnp.float32) * 0.2
    w_pw = jax.random.normal(kpw, (C_out, C_in, 1, 1), dtype=jnp.float32) * 0.2
    # BatchNorm2d(affine=True) default init: weight=1, bias=0
    gamma = jnp.ones((C_out,), dtype=jnp.float32)
    beta = jnp.zeros((C_out,), dtype=jnp.float32)

    out = dilconv_forward(x, w_dw, w_pw, gamma, beta,
                          kernel_size=kernel_size, stride=stride,
                          padding=padding, dilation=dilation)
    out = jax.block_until_ready(out)

    ref = _reference_forward(x, w_dw, w_pw, gamma, beta,
                             kernel_size=kernel_size, stride=stride,
                             padding=padding, dilation=dilation)
    ref = jax.block_until_ready(ref)

    assert out.shape == ref.shape == (N, C_out, H, W)
    assert jnp.allclose(out, ref, rtol=1e-4, atol=1e-4), (
        float(jnp.max(jnp.abs(out - ref))))
    print("KERNEL_OK")
</pallas_src>

<mosaic_0001>
module attributes {stable_mosaic.version = 11 : i64} {
  func.func @_conv_stats_kernel(%arg0: i32, %arg1: memref<1x4x16x16xf32, #tpu.memory_space<vmem>>, %arg2: memref<36xf32, #tpu.memory_space<smem>>, %arg3: memref<32xf32, #tpu.memory_space<smem>>, %arg4: memref<1x8x16x16xf32, #tpu.memory_space<vmem>>, %arg5: memref<1x8x2xf32, #tpu.memory_space<vmem>>, %arg6: memref<4x16x16xf32, #tpu.memory_space<vmem>>) attributes {dimension_semantics = [#tpu.dimension_semantics<parallel>], iteration_bounds = array<i64: 2>, scalar_prefetch = 0 : i64, scratch_operands = 1 : i64, tpu.core_type = #tpu.core_type<tc>, window_params = [{transform_indices = @transform_0, window_bounds = array<i64: 1, 4, 16, 16>}, {transform_indices = @transform_1, window_bounds = array<i64: 36>}, {transform_indices = @transform_2, window_bounds = array<i64: 32>}, {transform_indices = @transform_3, window_bounds = array<i64: 1, 8, 16, 16>}, {transform_indices = @transform_4, window_bounds = array<i64: 1, 8, 2>}]} {
    %cst = arith.constant 0.000000e+00 : f32
    %0 = vector.broadcast %cst : f32 to vector<4x16x16xf32>
    %c0 = arith.constant 0 : index
    %c0_0 = arith.constant 0 : index
    %c0_1 = arith.constant 0 : index
    %1 = vector.load %arg6[%c0, %c0_0, %c0_1] : memref<4x16x16xf32, #tpu.memory_space<vmem>>, vector<4x16x16xf32>
    tpu.vector_store %arg6[%c0, %c0_0, %c0_1], %0 {strides = array<i32>} : memref<4x16x16xf32, #tpu.memory_space<vmem>>, vector<4x16x16xf32>,
    %c0_2 = arith.constant 0 : index
    %c0_3 = arith.constant 0 : index
    %c0_4 = arith.constant 0 : index
    %c0_5 = arith.constant 0 : index
    %2 = vector.load %arg1[%c0_2, %c0_3, %c0_4, %c0_5] : memref<1x4x16x16xf32, #tpu.memory_space<vmem>>, vector<1x4x14x14xf32>
    %3 = vector.shape_cast %2 : vector<1x4x14x14xf32> to vector<4x14x14xf32>
    %cst_6 = arith.constant 0.000000e+00 : f32
    %4 = vector.broadcast %cst_6 : f32 to vector<4x14x14xf32>
    %5 = arith.maximumf %3, %4 : vector<4x14x14xf32>
    %c0_7 = arith.constant 0 : index
    %c2 = arith.constant 2 : index
    %c2_8 = arith.constant 2 : index
    %6 = vector.load %arg6[%c0_7, %c2, %c2_8] : memref<4x16x16xf32, #tpu.memory_space<vmem>>, vector<1x14x14xf32>
    %7 = vector.shape_cast %6 : vector<1x14x14xf32> to vector<14x14xf32>
    %8 = vector.extract_strided_slice %5 {offsets = [0, 0, 0], sizes = [1, 14, 14], strides = [1, 1, 1]} : vector<4x14x14xf32> to vector<1x14x14xf32>
    %9 = vector.shape_cast %8 : vector<1x14x14xf32> to vector<14x14xf32>
    %c0_9 = arith.constant 0 : index
    %10 = memref.load %arg2[%c0_9] : memref<36xf32, #tpu.memory_space<smem>>
    %11 = vector.broadcast %10 : f32 to vector<14x14xf32>
    %12 = arith.mulf %9, %11 : vector<14x14xf32>
    %13 = arith.addf %7, %12 : vector<14x14xf32>
    %c0_10 = arith.constant 0 : index
    %c2_11 = arith.constant 2 : index
    %c2_12 = arith.constant 2 : index
    %14 = vector.load %arg6[%c0_10, %c2_11, %c2_12] : memref<4x16x16xf32, #tpu.memory_space<vmem>>, vector<1x14x14xf32>
    %15 = vector.shape_cast %14 : vector<1x14x14xf32> to vector<14x14xf32>
    %16 = vector.shape_cast %13 : vector<14x14xf32> to vector<1x14x14xf32>
    tpu.vector_store %arg6[%c0_10, %c2_11, %c2_12], %16 {strides = array<i32>} : memref<4x16x16xf32, #tpu.memory_space<vmem>>, vector<1x14x14xf32>,
    %c1 = arith.constant 1 : index
    %c2_13 = arith.constant 2 : index
    %c2_14 = arith.constant 2 : index
    %17 = vector.load %arg6[%c1, %c2_13, %c2_14] : memref<4x16x16xf32, #tpu.memory_space<vmem>>, vector<1x14x14xf32>
    %18 = vector.shape_cast %17 : vector<1x14x14xf32> to vector<14x14xf32>
    %19 = vector.extract_strided_slice %5 {offsets = [1, 0, 0], sizes = [1, 14, 14], strides = [1, 1, 1]} : vector<4x14x14xf32> to vector<1x14x14xf32>
    %20 = vector.shape_cast %19 : vector<1x14x14xf32> to vector<14x14xf32>
    %c1_15 = arith.constant 1 : index
    %21 = memref.load %arg2[%c1_15] : memref<36xf32, #tpu.memory_space<smem>>
    %22 = vector.broadcast %21 : f32 to vector<14x14xf32>
    %23 = arith.mulf %20, %22 : vector<14x14xf32>
    %24 = arith.addf %18, %23 : vector<14x14xf32>
    %c1_16 = arith.constant 1 : index
    %c2_17 = arith.constant 2 : index
    %c2_18 = arith.constant 2 : index
    %25 = vector.load %arg6[%c1_16, %c2_17, %c2_18] : memref<4x16x16xf32, #tpu.memory_space<vmem>>, vector<1x14x14xf32>
    %26 = vector.shape_cast %25 : vector<1x14x14xf32> to vector<14x14xf32>
    %27 = vector.shape_cast %24 : vector<14x14xf32> to vector<1x14x14xf32>
    tpu.vector_store %arg6[%c1_16, %c2_17, %c2_18], %27 {strides = array<i32>} : memref<4x16x16xf32, #tpu.memory_space<vmem>>, vector<1x14x14xf32>,
    %c2_19 = arith.constant 2 : index
    %c2_20 = arith.constant 2 : index
    %c2_21 = arith.constant 2 : index
    %28 = vector.load %arg6[%c2_19, %c2_20, %c2_21] : memref<4x16x16xf32, #tpu.memory_space<vmem>>, vector<1x14x14xf32>
    %29 = vector.shape_cast %28 : vector<1x14x14xf32> to vector<14x14xf32>
    %30 = vector.extract_strided_slice %5 {offsets = [2, 0, 0], sizes = [1, 14, 14], strides = [1, 1, 1]} : vector<4x14x14xf32> to vector<1x14x14xf32>
    %31 = vector.shape_cast %30 : vector<1x14x14xf32> to vector<14x14xf32>
    %c2_22 = arith.constant 2 : index
    %32 = memref.load %arg2[%c2_22] : memref<36xf32, #tpu.memory_space<smem>>
    %33 = vector.broadcast %32 : f32 to vector<14x14xf32>
    %34 = arith.mulf %31, %33 : vector<14x14xf32>
    %35 = arith.addf %29, %34 : vector<14x14xf32>
    %c2_23 = arith.constant 2 : index
    %c2_24 = arith.constant 2 : index
    %c2_25 = arith.constant 2 : index
    %36 = vector.load %arg6[%c2_23, %c2_24, %c2_25] : memref<4x16x16xf32, #tpu.memory_space<vmem>>, vector<1x14x14xf32>
    %37 = vector.shape_cast %36 : vector<1x14x14xf32> to vector<14x14xf32>
    %38 = vector.shape_cast %35 : vector<14x14xf32> to vector<1x14x14xf32>
    tpu.vector_store %arg6[%c2_23, %c2_24, %c2_25], %38 {strides = array<i32>} : memref<4x16x16xf32, #tpu.memory_space<vmem>>, vector<1x14x14xf32>,
    %c3 = arith.constant 3 : index
    %c2_26 = arith.constant 2 : index
    %c2_27 = arith.constant 2 : index
    %39 = vector.load %arg6[%c3, %c2_26, %c2_27] : memref<4x16x16xf32, #tpu.memory_space<vmem>>, vector<1x14x14xf32>
    %40 = vector.shape_cast %39 : vector<1x14x14xf32> to vector<14x14xf32>
    %41 = vector.extract_strided_slice %5 {offsets = [3, 0, 0], sizes = [1, 14, 14], strides = [1, 1, 1]} : vector<4x14x14xf32> to vector<1x14x14xf32>
    %42 = vector.shape_cast %41 : vector<1x14x14xf32> to vector<14x14xf32>
    %c3_28 = arith.constant 3 : index
    %43 = memref.load %arg2[%c3_28] : memref<36xf32, #tpu.memory_space<smem>>
    %44 = vector.broadcast %43 : f32 to vector<14x14xf32>
    %45 = arith.mulf %42, %44 : vector<14x14xf32>
    %46 = arith.addf %40, %45 : vector<14x14xf32>
    %c3_29 = arith.constant 3 : index
    %c2_30 = arith.constant 2 : index
    %c2_31 = arith.constant 2 : index
    %47 = vector.load %arg6[%c3_29, %c2_30, %c2_31] : memref<4x16x16xf32, #tpu.memory_space<vmem>>, vector<1x14x14xf32>
    %48 = vector.shape_cast %47 : vector<1x14x14xf32> to vector<14x14xf32>
    %49 = vector.shape_cast %46 : vector<14x14xf32> to vector<1x14x14xf32>
    tpu.vector_store %arg6[%c3_29, %c2_30, %c2_31], %49 {strides = array<i32>} : memref<4x16x16xf32, #tpu.memory_space<vmem>>, vector<1x14x14xf32>,
    %c0_32 = arith.constant 0 : index
    %c0_33 = arith.constant 0 : index
    %c0_34 = arith.constant 0 : index
    %c0_35 = arith.constant 0 : index
    %50 = vector.load %arg1[%c0_32, %c0_33, %c0_34, %c0_35] : memref<1x4x16x16xf32, #tpu.memory_space<vmem>>, vector<1x4x14x16xf32>
    %51 = vector.shape_cast %50 : vector<1x4x14x16xf32> to vector<4x14x16xf32>
    %cst_36 = arith.constant 0.000000e+00 : f32
    %52 = vector.broadcast %cst_36 : f32 to vector<4x14x16xf32>
    %53 = arith.maximumf %51, %52 : vector<4x14x16xf32>
    %c0_37 = arith.constant 0 : index
    %c2_38 = arith.constant 2 : index
    %c0_39 = arith.constant 0 : index
    %54 = vector.load %arg6[%c0_37, %c2_38, %c0_39] : memref<4x16x16xf32, #tpu.memory_space<vmem>>, vector<1x14x16xf32>
    %55 = vector.shape_cast %54 : vector<1x14x16xf32> to vector<14x16xf32>
    %56 = vector.extract_strided_slice %53 {offsets = [0, 0, 0], sizes = [1, 14, 16], strides = [1, 1, 1]} : vector<4x14x16xf32> to vector<1x14x16xf32>
    %57 = vector.shape_cast %56 : vector<1x14x16xf32> to vector<14x16xf32>
    %c4 = arith.constant 4 : index
    %58 = memref.load %arg2[%c4] : memref<36xf32, #tpu.memory_space<smem>>
    %59 = vector.broadcast %58 : f32 to vector<14x16xf32>
    %60 = arith.mulf %57, %59 : vector<14x16xf32>
    %61 = arith.addf %55, %60 : vector<14x16xf32>
    %c0_40 = arith.constant 0 : index
    %c2_41 = arith.constant 2 : index
    %c0_42 = arith.constant 0 : index
    %62 = vector.load %arg6[%c0_40, %c2_41, %c0_42] : memref<4x16x16xf32, #tpu.memory_space<vmem>>, vector<1x14x16xf32>
    %63 = vector.shape_cast %62 : vector<1x14x16xf32> to vector<14x16xf32>
    %64 = vector.shape_cast %61 : vector<14x16xf32> to vector<1x14x16xf32>
    tpu.vector_store %arg6[%c0_40, %c2_41, %c0_42], %64 {strides = array<i32>} : memref<4x16x16xf32, #tpu.memory_space<vmem>>, vector<1x14x16xf32>,
    %c1_43 = arith.constant 1 : index
    %c2_44 = arith.constant 2 : index
    %c0_45 = arith.constant 0 : index
    %65 = vector.load %arg6[%c1_43, %c2_44, %c0_45] : memref<4x16x16xf32, #tpu.memory_space<vmem>>, vector<1x14x16xf32>
    %66 = vector.shape_cast %65 : vector<1x14x16xf32> to vector<14x16xf32>
    %67 = vector.extract_strided_slice %53 {offsets = [1, 0, 0], sizes = [1, 14, 16], strides = [1, 1, 1]} : vector<4x14x16xf32> to vector<1x14x16xf32>
    %68 = vector.shape_cast %67 : vector<1x14x16xf32> to vector<14x16xf32>
    %c5 = arith.constant 5 : index
    %69 = memref.load %arg2[%c5] : memref<36xf32, #tpu.memory_space<smem>>
    %70 = vector.broadcast %69 : f32 to vector<14x16xf32>
    %71 = arith.mulf %68, %70 : vector<14x16xf32>
    %72 = arith.addf %66, %71 : vector<14x16xf32>
    %c1_46 = arith.constant 1 : index
    %c2_47 = arith.constant 2 : index
    %c0_48 = arith.constant 0 : index
    %73 = vector.load %arg6[%c1_46, %c2_47, %c0_48] : memref<4x16x16xf32, #tpu.memory_space<vmem>>, vector<1x14x16xf32>
    %74 = vector.shape_cast %73 : vector<1x14x16xf32> to vector<14x16xf32>
    %75 = vector.shape_cast %72 : vector<14x16xf32> to vector<1x14x16xf32>
    tpu.vector_store %arg6[%c1_46, %c2_47, %c0_48], %75 {strides = array<i32>} : memref<4x16x16xf32, #tpu.memory_space<vmem>>, vector<1x14x16xf32>,
    %c2_49 = arith.constant 2 : index
    %c2_50 = arith.constant 2 : index
    %c0_51 = arith.constant 0 : index
    %76 = vector.load %arg6[%c2_49, %c2_50, %c0_51] : memref<4x16x16xf32, #tpu.memory_space<vmem>>, vector<1x14x16xf32>
    %77 = vector.shape_cast %76 : vector<1x14x16xf32> to vector<14x16xf32>
    %78 = vector.extract_strided_slice %53 {offsets = [2, 0, 0], sizes = [1, 14, 16], strides = [1, 1, 1]} : vector<4x14x16xf32> to vector<1x14x16xf32>
    %79 = vector.shape_cast %78 : vector<1x14x16xf32> to vector<14x16xf32>
    %c6 = arith.constant 6 : index
    %80 = memref.load %arg2[%c6] : memref<36xf32, #tpu.memory_space<smem>>
    %81 = vector.broadcast %80 : f32 to vector<14x16xf32>
    %82 = arith.mulf %79, %81 : vector<14x16xf32>
    %83 = arith.addf %77, %82 : vector<14x16xf32>
    %c2_52 = arith.constant 2 : index
    %c2_53 = arith.constant 2 : index
    %c0_54 = arith.constant 0 : index
    %84 = vector.load %arg6[%c2_52, %c2_53, %c0_54] : memref<4x16x16xf32, #tpu.memory_space<vmem>>, vector<1x14x16xf32>
    %85 = vector.shape_cast %84 : vector<1x14x16xf32> to vector<14x16xf32>
    %86 = vector.shape_cast %83 : vector<14x16xf32> to vector<1x14x16xf32>
    tpu.vector_store %arg6[%c2_52, %c2_53, %c0_54], %86 {strides = array<i32>} : memref<4x16x16xf32, #tpu.memory_space<vmem>>, vector<1x14x16xf32>,
    %c3_55 = arith.constant 3 : index
    %c2_56 = arith.constant 2 : index
    %c0_57 = arith.constant 0 : index
    %87 = vector.load %arg6[%c3_55, %c2_56, %c0_57] : memref<4x16x16xf32, #tpu.memory_space<vmem>>, vector<1x14x16xf32>
    %88 = vector.shape_cast %87 : vector<1x14x16xf32> to vector<14x16xf32>
    %89 = vector.extract_strided_slice %53 {offsets = [3, 0, 0], sizes = [1, 14, 16], strides = [1, 1, 1]} : vector<4x14x16xf32> to vector<1x14x16xf32>
    %90 = vector.shape_cast %89 : vector<1x14x16xf32> to vector<14x16xf32>
    %c7 = arith.constant 7 : index
    %91 = memref.load %arg2[%c7] : memref<36xf32, #tpu.memory_space<smem>>
    %92 = vector.broadcast %91 : f32 to vector<14x16xf32>
    %93 = arith.mulf %90, %92 : vector<14x16xf32>
    %94 = arith.addf %88, %93 : vector<14x16xf32>
    %c3_58 = arith.constant 3 : index
    %c2_59 = arith.constant 2 : index
    %c0_60 = arith.constant 0 : index
    %95 = vector.load %arg6[%c3_58, %c2_59, %c0_60] : memref<4x16x16xf32, #tpu.memory_space<vmem>>, vector<1x14x16xf32>
    %96 = vector.shape_cast %95 : vector<1x14x16xf32> to vector<14x16xf32>
    %97 = vector.shape_cast %94 : vector<14x16xf32> to vector<1x14x16xf32>
    tpu.vector_store %arg6[%c3_58, %c2_59, %c0_60], %97 {strides = array<i32>} : memref<4x16x16xf32, #tpu.memory_space<vmem>>, vector<1x14x16xf32>,
    %c0_61 = arith.constant 0 : index
    %c0_62 = arith.constant 0 : index
    %c0_63 = arith.constant 0 : index
    %c2_64 = arith.constant 2 : index
    %98 = vector.load %arg1[%c0_61, %c0_62, %c0_63, %c2_64] : memref<1x4x16x16xf32, #tpu.memory_space<vmem>>, vector<1x4x14x14xf32>
    %99 = vector.shape_cast %98 : vector<1x4x14x14xf32> to vector<4x14x14xf32>
    %cst_65 = arith.constant 0.000000e+00 : f32
    %100 = vector.broadcast %cst_65 : f32 to vector<4x14x14xf32>
    %101 = arith.maximumf %99, %100 : vector<4x14x14xf32>
    %c0_66 = arith.constant 0 : index
    %c2_67 = arith.constant 2 : index
    %c0_68 = arith.constant 0 : index
    %102 = vector.load %arg6[%c0_66, %c2_67, %c0_68] : memref<4x16x16xf32, #tpu.memory_space<vmem>>, vector<1x14x14xf32>
    %103 = vector.shape_cast %102 : vector<1x14x14xf32> to vector<14x14xf32>
    %104 = vector.extract_strided_slice %101 {offsets = [0, 0, 0], sizes = [1, 14, 14], strides = [1, 1, 1]} : vector<4x14x14xf32> to vector<1x14x14xf32>
    %105 = vector.shape_cast %104 : vector<1x14x14xf32> to vector<14x14xf32>
    %c8 = arith.constant 8 : index
    %106 = memref.load %arg2[%c8] : memref<36xf32, #tpu.memory_space<smem>>
    %107 = vector.broadcast %106 : f32 to vector<14x14xf32>
    %108 = arith.mulf %105, %107 : vector<14x14xf32>
    %109 = arith.addf %103, %108 : vector<14x14xf32>
    %c0_69 = arith.constant 0 : index
    %c2_70 = arith.constant 2 : index
    %c0_71 = arith.constant 0 : index
    %110 = vector.load %arg6[%c0_69, %c2_70, %c0_71] : memref<4x16x16xf32, #tpu.memory_space<vmem>>, vector<1x14x14xf32>
    %111 = vector.shape_cast %110 : vector<1x14x14xf32> to vector<14x14xf32>
    %112 = vector.shape_cast %109 : vector<14x14xf32> to vector<1x14x14xf32>
    tpu.vector_store %arg6[%c0_69, %c2_70, %c0_71], %112 {strides = array<i32>} : memref<4x16x16xf32, #tpu.memory_space<vmem>>, vector<1x14x14xf32>,
    %c1_72 = arith.constant 1 : index
    %c2_73 = arith.constant 2 : index
    %c0_74 = arith.constant 0 : index
    %113 = vector.load %arg6[%c1_72, %c2_73, %c0_74] : memref<4x16x16xf32, #tpu.memory_space<vmem>>, vector<1x14x14xf32>
    %114 = vector.shape_cast %113 : vector<1x14x14xf32> to vector<14x14xf32>
    %115 = vector.extract_strided_slice %101 {offsets = [1, 0, 0], sizes = [1, 14, 14], strides = [1, 1, 1]} : vector<4x14x14xf32> to vector<1x14x14xf32>
    %116 = vector.shape_cast %115 : vector<1x14x14xf32> to vector<14x14xf32>
    %c9 = arith.constant 9 : index
    %117 = memref.load %arg2[%c9] : memref<36xf32, #tpu.memory_space<smem>>
    %118 = vector.broadcast %117 : f32 to vector<14x14xf32>
    %119 = arith.mulf %116, %118 : vector<14x14xf32>
    %120 = arith.addf %114, %119 : vector<14x14xf32>
    %c1_75 = arith.constant 1 : index
    %c2_76 = arith.constant 2 : index
    %c0_77 = arith.constant 0 : index
    %121 = vector.load %arg6[%c1_75, %c2_76, %c0_77] : memref<4x16x16xf32, #tpu.memory_space<vmem>>, vector<1x14x14xf32>
    %122 = vector.shape_cast %121 : vector<1x14x14xf32> to vector<14x14xf32>
    %123 = vector.shape_cast %120 : vector<14x14xf32> to vector<1x14x14xf32>
    tpu.vector_store %arg6[%c1_75, %c2_76, %c0_77], %123 {strides = array<i32>} : memref<4x16x16xf32, #tpu.memory_space<vmem>>, vector<1x14x14xf32>,
    %c2_78 = arith.constant 2 : index
    %c2_79 = arith.constant 2 : index
    %c0_80 = arith.constant 0 : index
    %124 = vector.load %arg6[%c2_78, %c2_79, %c0_80] : memref<4x16x16xf32, #tpu.memory_space<vmem>>, vector<1x14x14xf32>
    %125 = vector.shape_cast %124 : vector<1x14x14xf32> to vector<14x14xf32>
    %126 = vector.extract_strided_slice %101 {offsets = [2, 0, 0], sizes = [1, 14, 14], strides = [1, 1, 1]} : vector<4x14x14xf32> to vector<1x14x14xf32>
    %127 = vector.shape_cast %126 : vector<1x14x14xf32> to vector<14x14xf32>
    %c10 = arith.constant 10 : index
    %128 = memref.load %arg2[%c10] : memref<36xf32, #tpu.memory_space<smem>>
    %129 = vector.broadcast %128 : f32 to vector<14x14xf32>
    %130 = arith.mulf %127, %129 : vector<14x14xf32>
    %131 = arith.addf %125, %130 : vector<14x14xf32>
    %c2_81 = arith.constant 2 : index
    %c2_82 = arith.constant 2 : index
    %c0_83 = arith.constant 0 : index
    %132 = vector.load %arg6[%c2_81, %c2_82, %c0_83] : memref<4x16x16xf32, #tpu.memory_space<vmem>>, vector<1x14x14xf32>
    %133 = vector.shape_cast %132 : vector<1x14x14xf32> to vector<14x14xf32>
    %134 = vector.shape_cast %131 : vector<14x14xf32> to vector<1x14x14xf32>
    tpu.vector_store %arg6[%c2_81, %c2_82, %c0_83], %134 {strides = array<i32>} : memref<4x16x16xf32, #tpu.memory_space<vmem>>, vector<1x14x14xf32>,
    %c3_84 = arith.constant 3 : index
    %c2_85 = arith.constant 2 : index
    %c0_86 = arith.constant 0 : index
    %135 = vector.load %arg6[%c3_84, %c2_85, %c0_86] : memref<4x16x16xf32, #tpu.memory_space<vmem>>, vector<1x14x14xf32>
    %136 = vector.shape_cast %135 : vector<1x14x14xf32> to vector<14x14xf32>
    %137 = vector.extract_strided_slice %101 {offsets = [3, 0, 0], sizes = [1, 14, 14], strides = [1, 1, 1]} : vector<4x14x14xf32> to vector<1x14x14xf32>
    %138 = vector.shape_cast %137 : vector<1x14x14xf32> to vector<14x14xf32>
    %c11 = arith.constant 11 : index
    %139 = memref.load %arg2[%c11] : memref<36xf32, #tpu.memory_space<smem>>
    %140 = vector.broadcast %139 : f32 to vector<14x14xf32>
    %141 = arith.mulf %138, %140 : vector<14x14xf32>
    %142 = arith.addf %136, %141 : vector<14x14xf32>
    %c3_87 = arith.constant 3 : index
    %c2_88 = arith.constant 2 : index
    %c0_89 = arith.constant 0 : index
    %143 = vector.load %arg6[%c3_87, %c2_88, %c0_89] : memref<4x16x16xf32, #tpu.memory_space<vmem>>, vector<1x14x14xf32>
    %144 = vector.shape_cast %143 : vector<1x14x14xf32> to vector<14x14xf32>
    %145 = vector.shape_cast %142 : vector<14x14xf32> to vector<1x14x14xf32>
    tpu.vector_store %arg6[%c3_87, %c2_88, %c0_89], %145 {strides = array<i32>} : memref<4x16x16xf32, #tpu.memory_space<vmem>>, vector<1x14x14xf32>,
    %c0_90 = arith.constant 0 : index
    %c0_91 = arith.constant 0 : index
    %c0_92 = arith.constant 0 : index
    %c0_93 = arith.constant 0 : index
    %146 = vector.load %arg1[%c0_90, %c0_91, %c0_92, %c0_93] : memref<1x4x16x16xf32, #tpu.memory_space<vmem>>, vector<1x4x16x14xf32>
    %147 = vector.shape_cast %146 : vector<1x4x16x14xf32> to vector<4x16x14xf32>
    %cst_94 = arith.constant 0.000000e+00 : f32
    %148 = vector.broadcast %cst_94 : f32 to vector<4x16x14xf32>
    %149 = arith.maximumf %147, %148 : vector<4x16x14xf32>
    %c0_95 = arith.constant 0 : index
    %c0_96 = arith.constant 0 : index
    %c2_97 = arith.constant 2 : index
    %150 = vector.load %arg6[%c0_95, %c0_96, %c2_97] : memref<4x16x16xf32, #tpu.memory_space<vmem>>, vector<1x16x14xf32>
    %151 = vector.shape_cast %150 : vector<1x16x14xf32> to vector<16x14xf32>
    %152 = vector.extract_strided_slice %149 {offsets = [0, 0, 0], sizes = [1, 16, 14], strides = [1, 1, 1]} : vector<4x16x14xf32> to vector<1x16x14xf32>
    %153 = vector.shape_cast %152 : vector<1x16x14xf32> to vector<16x14xf32>
    %c12 = arith.constant 12 : index
    %154 = memref.load %arg2[%c12] : memref<36xf32, #tpu.memory_space<smem>>
    %155 = vector.broadcast %154 : f32 to vector<16x14xf32>
    %156 = arith.mulf %153, %155 : vector<16x14xf32>
    %157 = arith.addf %151, %156 : vector<16x14xf32>
    %c0_98 = arith.constant 0 : index
    %c0_99 = arith.constant 0 : index
    %c2_100 = arith.constant 2 : index
    %158 = vector.load %arg6[%c0_98, %c0_99, %c2_100] : memref<4x16x16xf32, #tpu.memory_space<vmem>>, vector<1x16x14xf32>
    %159 = vector.shape_cast %158 : vector<1x16x14xf32> to vector<16x14xf32>
    %160 = vector.shape_cast %157 : vector<16x14xf32> to vector<1x16x14xf32>
    tpu.vector_store %arg6[%c0_98, %c0_99, %c2_100], %160 {strides = array<i32>} : memref<4x16x16xf32, #tpu.memory_space<vmem>>, vector<1x16x14xf32>,
    %c1_101 = arith.constant 1 : index
    %c0_102 = arith.constant 0 : index
    %c2_103 = arith.constant 2 : index
    %161 = vector.load %arg6[%c1_101, %c0_102, %c2_103] : memref<4x16x16xf32, #tpu.memory_space<vmem>>, vector<1x16x14xf32>
    %162 = vector.shape_cast %161 : vector<1x16x14xf32> to vector<16x14xf32>
    %163 = vector.extract_strided_slice %149 {offsets = [1, 0, 0], sizes = [1, 16, 14], strides = [1, 1, 1]} : vector<4x16x14xf32> to vector<1x16x14xf32>
    %164 = vector.shape_cast %163 : vector<1x16x14xf32> to vector<16x14xf32>
    %c13 = arith.constant 13 : index
    %165 = memref.load %arg2[%c13] : memref<36xf32, #tpu.memory_space<smem>>
    %166 = vector.broadcast %165 : f32 to vector<16x14xf32>
    %167 = arith.mulf %164, %166 : vector<16x14xf32>
    %168 = arith.addf %162, %167 : vector<16x14xf32>
    %c1_104 = arith.constant 1 : index
    %c0_105 = arith.constant 0 : index
    %c2_106 = arith.constant 2 : index
    %169 = vector.load %arg6[%c1_104, %c0_105, %c2_106] : memref<4x16x16xf32, #tpu.memory_space<vmem>>, vector<1x16x14xf32>
    %170 = vector.shape_cast %169 : vector<1x16x14xf32> to vector<16x14xf32>
    %171 = vector.shape_cast %168 : vector<16x14xf32> to vector<1x16x14xf32>
    tpu.vector_store %arg6[%c1_104, %c0_105, %c2_106], %171 {strides = array<i32>} : memref<4x16x16xf32, #tpu.memory_space<vmem>>, vector<1x16x14xf32>,
    %c2_107 = arith.constant 2 : index
    %c0_108 = arith.constant 0 : index
    %c2_109 = arith.constant 2 : index
    %172 = vector.load %arg6[%c2_107, %c0_108, %c2_109] : memref<4x16x16xf32, #tpu.memory_space<vmem>>, vector<1x16x14xf32>
    %173 = vector.shape_cast %172 : vector<1x16x14xf32> to vector<16x14xf32>
    %174 = vector.extract_strided_slice %149 {offsets = [2, 0, 0], sizes = [1, 16, 14], strides = [1, 1, 1]} : vector<4x16x14xf32> to vector<1x16x14xf32>
    %175 = vector.shape_cast %174 : vector<1x16x14xf32> to vector<16x14xf32>
    %c14 = arith.constant 14 : index
    %176 = memref.load %arg2[%c14] : memref<36xf32, #tpu.memory_space<smem>>
    %177 = vector.broadcast %176 : f32 to vector<16x14xf32>
    %178 = arith.mulf %175, %177 : vector<16x14xf32>
    %179 = arith.addf %173, %178 : vector<16x14xf32>
    %c2_110 = arith.constant 2 : index
    %c0_111 = arith.constant 0 : index
    %c2_112 = arith.constant 2 : index
    %180 = vector.load %arg6[%c2_110, %c0_111, %c2_112] : memref<4x16x16xf32, #tpu.memory_space<vmem>>, vector<1x16x14xf32>
    %181 = vector.shape_cast %180 : vector<1x16x14xf32> to vector<16x14xf32>
    %182 = vector.shape_cast %179 : vector<16x14xf32> to vector<1x16x14xf32>
    tpu.vector_store %arg6[%c2_110, %c0_111, %c2_112], %182 {strides = array<i32>} : memref<4x16x16xf32, #tpu.memory_space<vmem>>, vector<1x16x14xf32>,
    %c3_113 = arith.constant 3 : index
    %c0_114 = arith.constant 0 : index
    %c2_115 = arith.constant 2 : index
    %183 = vector.load %arg6[%c3_113, %c0_114, %c2_115] : memref<4x16x16xf32, #tpu.memory_space<vmem>>, vector<1x16x14xf32>
    %184 = vector.shape_cast %183 : vector<1x16x14xf32> to vector<16x14xf32>
    %185 = vector.extract_strided_slice %149 {offsets = [3, 0, 0], sizes = [1, 16, 14], strides = [1, 1, 1]} : vector<4x16x14xf32> to vector<1x16x14xf32>
    %186 = vector.shape_cast %185 : vector<1x16x14xf32> to vector<16x14xf32>
    %c15 = arith.constant 15 : index
    %187 = memref.load %arg2[%c15] : memref<36xf32, #tpu.memory_space<smem>>
    %188 = vector.broadcast %187 : f32 to vector<16x14xf32>
    %189 = arith.mulf %186, %188 : vector<16x14xf32>
    %190 = arith.addf %184, %189 : vector<16x14xf32>
    %c3_116 = arith.constant 3 : index
    %c0_117 = arith.constant 0 : index
    %c2_118 = arith.constant 2 : index
    %191 = vector.load %arg6[%c3_116, %c0_117, %c2_118] : memref<4x16x16xf32, #tpu.memory_space<vmem>>, vector<1x16x14xf32>
    %192 = vector.shape_cast %191 : vector<1x16x14xf32> to vector<16x14xf32>
    %193 = vector.shape_cast %190 : vector<16x14xf32> to vector<1x16x14xf32>
    tpu.vector_store %arg6[%c3_116, %c0_117, %c2_118], %193 {strides = array<i32>} : memref<4x16x16xf32, #tpu.memory_space<vmem>>, vector<1x16x14xf32>,
    %c0_119 = arith.constant 0 : index
    %c0_120 = arith.constant 0 : index
    %c0_121 = arith.constant 0 : index
    %c0_122 = arith.constant 0 : index
    %194 = vector.load %arg1[%c0_119, %c0_120, %c0_121, %c0_122] : memref<1x4x16x16xf32, #tpu.memory_space<vmem>>, vector<1x4x16x16xf32>
    %195 = vector.shape_cast %194 : vector<1x4x16x16xf32> to vector<4x16x16xf32>
    %cst_123 = arith.constant 0.000000e+00 : f32
    %196 = vector.broadcast %cst_123 : f32 to vector<4x16x16xf32>
    %197 = arith.maximumf %195, %196 : vector<4x16x16xf32>
    %c0_124 = arith.constant 0 : index
    %c0_125 = arith.constant 0 : index
    %c0_126 = arith.constant 0 : index
    %198 = vector.load %arg6[%c0_124, %c0_125, %c0_126] : memref<4x16x16xf32, #tpu.memory_space<vmem>>, vector<1x16x16xf32>
    %199 = vector.shape_cast %198 : vector<1x16x16xf32> to vector<16x16xf32>
    %200 = vector.extract_strided_slice %197 {offsets = [0, 0, 0], sizes = [1, 16, 16], strides = [1, 1, 1]} : vector<4x16x16xf32> to vector<1x16x16xf32>
    %201 = vector.shape_cast %200 : vector<1x16x16xf32> to vector<16x16xf32>
    %c16 = arith.constant 16 : index
    %202 = memref.load %arg2[%c16] : memref<36xf32, #tpu.memory_space<smem>>
    %203 = vector.broadcast %202 : f32 to vector<16x16xf32>
    %204 = arith.mulf %201, %203 : vector<16x16xf32>
    %205 = arith.addf %199, %204 : vector<16x16xf32>
    %c0_127 = arith.constant 0 : index
    %c0_128 = arith.constant 0 : index
    %c0_129 = arith.constant 0 : index
    %206 = vector.load %arg6[%c0_127, %c0_128, %c0_129] : memref<4x16x16xf32, #tpu.memory_space<vmem>>, vector<1x16x16xf32>
    %207 = vector.shape_cast %206 : vector<1x16x16xf32> to vector<16x16xf32>
    %208 = vector.shape_cast %205 : vector<16x16xf32> to vector<1x16x16xf32>
    tpu.vector_store %arg6[%c0_127, %c0_128, %c0_129], %208 {strides = array<i32>} : memref<4x16x16xf32, #tpu.memory_space<vmem>>, vector<1x16x16xf32>,
    %c1_130 = arith.constant 1 : index
    %c0_131 = arith.constant 0 : index
    %c0_132 = arith.constant 0 : index
    %209 = vector.load %arg6[%c1_130, %c0_131, %c0_132] : memref<4x16x16xf32, #tpu.memory_space<vmem>>, vector<1x16x16xf32>
    %210 = vector.shape_cast %209 : vector<1x16x16xf32> to vector<16x16xf32>
    %211 = vector.extract_strided_slice %197 {offsets = [1, 0, 0], sizes = [1, 16, 16], strides = [1, 1, 1]} : vector<4x16x16xf32> to vector<1x16x16xf32>
    %212 = vector.shape_cast %211 : vector<1x16x16xf32> to vector<16x16xf32>
    %c17 = arith.constant 17 : index
    %213 = memref.load %arg2[%c17] : memref<36xf32, #tpu.memory_space<smem>>
    %214 = vector.broadcast %213 : f32 to vector<16x16xf32>
    %215 = arith.mulf %212, %214 : vector<16x16xf32>
    %216 = arith.addf %210, %215 : vector<16x16xf32>
    %c1_133 = arith.constant 1 : index
    %c0_134 = arith.constant 0 : index
    %c0_135 = arith.constant 0 : index
    %217 = vector.load %arg6[%c1_133, %c0_134, %c0_135] : memref<4x16x16xf32, #tpu.memory_space<vmem>>, vector<1x16x16xf32>
    %218 = vector.shape_cast %217 : vector<1x16x16xf32> to vector<16x16xf32>
    %219 = vector.shape_cast %216 : vector<16x16xf32> to vector<1x16x16xf32>
    tpu.vector_store %arg6[%c1_133, %c0_134, %c0_135], %219 {strides = array<i32>} : memref<4x16x16xf32, #tpu.memory_space<vmem>>, vector<1x16x16xf32>,
    %c2_136 = arith.constant 2 : index
    %c0_137 = arith.constant 0 : index
    %c0_138 = arith.constant 0 : index
    %220 = vector.load %arg6[%c2_136, %c0_137, %c0_138] : memref<4x16x16xf32, #tpu.memory_space<vmem>>, vector<1x16x16xf32>
    %221 = vector.shape_cast %220 : vector<1x16x16xf32> to vector<16x16xf32>
    %222 = vector.extract_strided_slice %197 {offsets = [2, 0, 0], sizes = [1, 16, 16], strides = [1, 1, 1]} : vector<4x16x16xf32> to vector<1x16x16xf32>
    %223 = vector.shape_cast %222 : vector<1x16x16xf32> to vector<16x16xf32>
    %c18 = arith.constant 18 : index
    %224 = memref.load %arg2[%c18] : memref<36xf32, #tpu.memory_space<smem>>
    %225 = vector.broadcast %224 : f32 to vector<16x16xf32>
    %226 = arith.mulf %223, %225 : vector<16x16xf32>
    %227 = arith.addf %221, %226 : vector<16x16xf32>
    %c2_139 = arith.constant 2 : index
    %c0_140 = arith.constant 0 : index
    %c0_141 = arith.constant 0 : index
    %228 = vector.load %arg6[%c2_139, %c0_140, %c0_141] : memref<4x16x16xf32, #tpu.memory_space<vmem>>, vector<1x16x16xf32>
    %229 = vector.shape_cast %228 : vector<1x16x16xf32> to vector<16x16xf32>
    %230 = vector.shape_cast %227 : vector<16x16xf32> to vector<1x16x16xf32>
    tpu.vector_store %arg6[%c2_139, %c0_140, %c0_141], %230 {strides = array<i32>} : memref<4x16x16xf32, #tpu.memory_space<vmem>>, vector<1x16x16xf32>,
    %c3_142 = arith.constant 3 : index
    %c0_143 = arith.constant 0 : index
    %c0_144 = arith.constant 0 : index
    %231 = vector.load %arg6[%c3_142, %c0_143, %c0_144] : memref<4x16x16xf32, #tpu.memory_space<vmem>>, vector<1x16x16xf32>
    %232 = vector.shape_cast %231 : vector<1x16x16xf32> to vector<16x16xf32>
    %233 = vector.extract_strided_slice %197 {offsets = [3, 0, 0], sizes = [1, 16, 16], strides = [1, 1, 1]} : vector<4x16x16xf32> to vector<1x16x16xf32>
    %234 = vector.shape_cast %233 : vector<1x16x16xf32> to vector<16x16xf32>
    %c19 = arith.constant 19 : index
    %235 = memref.load %arg2[%c19] : memref<36xf32, #tpu.memory_space<smem>>
    %236 = vector.broadcast %235 : f32 to vector<16x16xf32>
    %237 = arith.mulf %234, %236 : vector<16x16xf32>
    %238 = arith.addf %232, %237 : vector<16x16xf32>
    %c3_145 = arith.constant 3 : index
    %c0_146 = arith.constant 0 : index
    %c0_147 = arith.constant 0 : index
    %239 = vector.load %arg6[%c3_145, %c0_146, %c0_147] : memref<4x16x16xf32, #tpu.memory_space<vmem>>, vector<1x16x16xf32>
    %240 = vector.shape_cast %239 : vector<1x16x16xf32> to vector<16x16xf32>
    %241 = vector.shape_cast %238 : vector<16x16xf32> to vector<1x16x16xf32>
    tpu.vector_store %arg6[%c3_145, %c0_146, %c0_147], %241 {strides = array<i32>} : memref<4x16x16xf32, #tpu.memory_space<vmem>>, vector<1x16x16xf32>,
    %c0_148 = arith.constant 0 : index
    %c0_149 = arith.constant 0 : index
    %c0_150 = arith.constant 0 : index
    %c2_151 = arith.constant 2 : index
    %242 = vector.load %arg1[%c0_148, %c0_149, %c0_150, %c2_151] : memref<1x4x16x16xf32, #tpu.memory_space<vmem>>, vector<1x4x16x14xf32>
    %243 = vector.shape_cast %242 : vector<1x4x16x14xf32> to vector<4x16x14xf32>
    %cst_152 = arith.constant 0.000000e+00 : f32
    %244 = vector.broadcast %cst_152 : f32 to vector<4x16x14xf32>
    %245 = arith.maximumf %243, %244 : vector<4x16x14xf32>
    %c0_153 = arith.constant 0 : index
    %c0_154 = arith.constant 0 : index
    %c0_155 = arith.constant 0 : index
    %246 = vector.load %arg6[%c0_153, %c0_154, %c0_155] : memref<4x16x16xf32, #tpu.memory_space<vmem>>, vector<1x16x14xf32>
    %247 = vector.shape_cast %246 : vector<1x16x14xf32> to vector<16x14xf32>
    %248 = vector.extract_strided_slice %245 {offsets = [0, 0, 0], sizes = [1, 16, 14], strides = [1, 1, 1]} : vector<4x16x14xf32> to vector<1x16x14xf32>
    %249 = vector.shape_cast %248 : vector<1x16x14xf32> to vector<16x14xf32>
    %c20 = arith.constant 20 : index
    %250 = memref.load %arg2[%c20] : memref<36xf32, #tpu.memory_space<smem>>
    %251 = vector.broadcast %250 : f32 to vector<16x14xf32>
    %252 = arith.mulf %249, %251 : vector<16x14xf32>
    %253 = arith.addf %247, %252 : vector<16x14xf32>
    %c0_156 = arith.constant 0 : index
    %c0_157 = arith.constant 0 : index
    %c0_158 = arith.constant 0 : index
    %254 = vector.load %arg6[%c0_156, %c0_157, %c0_158] : memref<4x16x16xf32, #tpu.memory_space<vmem>>, vector<1x16x14xf32>
    %255 = vector.shape_cast %254 : vector<1x16x14xf32> to vector<16x14xf32>
    %256 = vector.shape_cast %253 : vector<16x14xf32> to vector<1x16x14xf32>
    tpu.vector_store %arg6[%c0_156, %c0_157, %c0_158], %256 {strides = array<i32>} : memref<4x16x16xf32, #tpu.memory_space<vmem>>, vector<1x16x14xf32>,
    %c1_159 = arith.constant 1 : index
    %c0_160 = arith.constant 0 : index
    %c0_161 = arith.constant 0 : index
    %257 = vector.load %arg6[%c1_159, %c0_160, %c0_161] : memref<4x16x16xf32, #tpu.memory_space<vmem>>, vector<1x16x14xf32>
    %258 = vector.shape_cast %257 : vector<1x16x14xf32> to vector<16x14xf32>
    %259 = vector.extract_strided_slice %245 {offsets = [1, 0, 0], sizes = [1, 16, 14], strides = [1, 1, 1]} : vector<4x16x14xf32> to vector<1x16x14xf32>
    %260 = vector.shape_cast %259 : vector<1x16x14xf32> to vector<16x14xf32>
    %c21 = arith.constant 21 : index
    %261 = memref.load %arg2[%c21] : memref<36xf32, #tpu.memory_space<smem>>
    %262 = vector.broadcast %261 : f32 to vector<16x14xf32>
    %263 = arith.mulf %260, %262 : vector<16x14xf32>
    %264 = arith.addf %258, %263 : vector<16x14xf32>
    %c1_162 = arith.constant 1 : index
    %c0_163 = arith.constant 0 : index
    %c0_164 = arith.constant 0 : index
    %265 = vector.load %arg6[%c1_162, %c0_163, %c0_164] : memref<4x16x16xf32, #tpu.memory_space<vmem>>, vector<1x16x14xf32>
    %266 = vector.shape_cast %265 : vector<1x16x14xf32> to vector<16x14xf32>
    %267 = vector.shape_cast %264 : vector<16x14xf32> to vector<1x16x14xf32>
    tpu.vector_store %arg6[%c1_162, %c0_163, %c0_164], %267 {strides = array<i32>} : memref<4x16x16xf32, #tpu.memory_space<vmem>>, vector<1x16x14xf32>,
    %c2_165 = arith.constant 2 : index
    %c0_166 = arith.constant 0 : index
    %c0_167 = arith.constant 0 : index
    %268 = vector.load %arg6[%c2_165, %c0_166, %c0_167] : memref<4x16x16xf32, #tpu.memory_space<vmem>>, vector<1x16x14xf32>
    %269 = vector.shape_cast %268 : vector<1x16x14xf32> to vector<16x14xf32>
    %270 = vector.extract_strided_slice %245 {offsets = [2, 0, 0], sizes = [1, 16, 14], strides = [1, 1, 1]} : vector<4x16x14xf32> to vector<1x16x14xf32>
    %271 = vector.shape_cast %270 : vector<1x16x14xf32> to vector<16x14xf32>
    %c22 = arith.constant 22 : index
    %272 = memref.load %arg2[%c22] : memref<36xf32, #tpu.memory_space<smem>>
    %273 = vector.broadcast %272 : f32 to vector<16x14xf32>
    %274 = arith.mulf %271, %273 : vector<16x14xf32>
    %275 = arith.addf %269, %274 : vector<16x14xf32>
    %c2_168 = arith.constant 2 : index
    %c0_169 = arith.constant 0 : index
    %c0_170 = arith.constant 0 : index
    %276 = vector.load %arg6[%c2_168, %c0_169, %c0_170] : memref<4x16x16xf32, #tpu.memory_space<vmem>>, vector<1x16x14xf32>
    %277 = vector.shape_cast %276 : vector<1x16x14xf32> to vector<16x14xf32>
    %278 = vector.shape_cast %275 : vector<16x14xf32> to vector<1x16x14xf32>
    tpu.vector_store %arg6[%c2_168, %c0_169, %c0_170], %278 {strides = array<i32>} : memref<4x16x16xf32, #tpu.memory_space<vmem>>, vector<1x16x14xf32>,
    %c3_171 = arith.constant 3 : index
    %c0_172 = arith.constant 0 : index
    %c0_173 = arith.constant 0 : index
    %279 = vector.load %arg6[%c3_171, %c0_172, %c0_173] : memref<4x16x16xf32, #tpu.memory_space<vmem>>, vector<1x16x14xf32>
    %280 = vector.shape_cast %279 : vector<1x16x14xf32> to vector<16x14xf32>
    %281 = vector.extract_strided_slice %245 {offsets = [3, 0, 0], sizes = [1, 16, 14], strides = [1, 1, 1]} : vector<4x16x14xf32> to vector<1x16x14xf32>
    %282 = vector.shape_cast %281 : vector<1x16x14xf32> to vector<16x14xf32>
    %c23 = arith.constant 23 : index
    %283 = memref.load %arg2[%c23] : memref<36xf32, #tpu.memory_space<smem>>
    %284 = vector.broadcast %283 : f32 to vector<16x14xf32>
    %285 = arith.mulf %282, %284 : vector<16x14xf32>
    %286 = arith.addf %280, %285 : vector<16x14xf32>
    %c3_174 = arith.constant 3 : index
    %c0_175 = arith.constant 0 : index
    %c0_176 = arith.constant 0 : index
    %287 = vector.load %arg6[%c3_174, %c0_175, %c0_176] : memref<4x16x16xf32, #tpu.memory_space<vmem>>, vector<1x16x14xf32>
    %288 = vector.shape_cast %287 : vector<1x16x14xf32> to vector<16x14xf32>
    %289 = vector.shape_cast %286 : vector<16x14xf32> to vector<1x16x14xf32>
    tpu.vector_store %arg6[%c3_174, %c0_175, %c0_176], %289 {strides = array<i32>} : memref<4x16x16xf32, #tpu.memory_space<vmem>>, vector<1x16x14xf32>,
    %c0_177 = arith.constant 0 : index
    %c0_178 = arith.constant 0 : index
    %c2_179 = arith.constant 2 : index
    %c0_180 = arith.constant 0 : index
    %290 = vector.load %arg1[%c0_177, %c0_178, %c2_179, %c0_180] : memref<1x4x16x16xf32, #tpu.memory_space<vmem>>, vector<1x4x14x14xf32>
    %291 = vector.shape_cast %290 : vector<1x4x14x14xf32> to vector<4x14x14xf32>
    %cst_181 = arith.constant 0.000000e+00 : f32
    %292 = vector.broadcast %cst_181 : f32 to vector<4x14x14xf32>
    %293 = arith.maximumf %291, %292 : vector<4x14x14xf32>
    %c0_182 = arith.constant 0 : index
    %c0_183 = arith.constant 0 : index
    %c2_184 = arith.constant 2 : index
    %294 = vector.load %arg6[%c0_182, %c0_183, %c2_184] : memref<4x16x16xf32, #tpu.memory_space<vmem>>, vector<1x14x14xf32>
    %295 = vector.shape_cast %294 : vector<1x14x14xf32> to vector<14x14xf32>
    %296 = vector.extract_strided_slice %293 {offsets = [0, 0, 0], sizes = [1, 14, 14], strides = [1, 1, 1]} : vector<4x14x14xf32> to vector<1x14x14xf32>
    %297 = vector.shape_cast %296 : vector<1x14x14xf32> to vector<14x14xf32>
    %c24 = arith.constant 24 : index
    %298 = memref.load %arg2[%c24] : memref<36xf32, #tpu.memory_space<smem>>
    %299 = vector.broadcast %298 : f32 to vector<14x14xf32>
    %300 = arith.mulf %297, %299 : vector<14x14xf32>
    %301 = arith.addf %295, %300 : vector<14x14xf32>
    %c0_185 = arith.constant 0 : index
    %c0_186 = arith.constant 0 : index
    %c2_187 = arith.constant 2 : index
    %302 = vector.load %arg6[%c0_185, %c0_186, %c2_187] : memref<4x16x16xf32, #tpu.memory_space<vmem>>, vector<1x14x14xf32>
    %303 = vector.shape_cast %302 : vector<1x14x14xf32> to vector<14x14xf32>
    %304 = vector.shape_cast %301 : vector<14x14xf32> to vector<1x14x14xf32>
    tpu.vector_store %arg6[%c0_185, %c0_186, %c2_187], %304 {strides = array<i32>} : memref<4x16x16xf32, #tpu.memory_space<vmem>>, vector<1x14x14xf32>,
    %c1_188 = arith.constant 1 : index
    %c0_189 = arith.constant 0 : index
    %c2_190 = arith.constant 2 : index
    %305 = vector.load %arg6[%c1_188, %c0_189, %c2_190] : memref<4x16x16xf32, #tpu.memory_space<vmem>>, vector<1x14x14xf32>
    %306 = vector.shape_cast %305 : vector<1x14x14xf32> to vector<14x14xf32>
    %307 = vector.extract_strided_slice %293 {offsets = [1, 0, 0], sizes = [1, 14, 14], strides = [1, 1, 1]} : vector<4x14x14xf32> to vector<1x14x14xf32>
    %308 = vector.shape_cast %307 : vector<1x14x14xf32> to vector<14x14xf32>
    %c25 = arith.constant 25 : index
    %309 = memref.load %arg2[%c25] : memref<36xf32, #tpu.memory_space<smem>>
    %310 = vector.broadcast %309 : f32 to vector<14x14xf32>
    %311 = arith.mulf %308, %310 : vector<14x14xf32>
    %312 = arith.addf %306, %311 : vector<14x14xf32>
    %c1_191 = arith.constant 1 : index
    %c0_192 = arith.constant 0 : index
    %c2_193 = arith.constant 2 : index
    %313 = vector.load %arg6[%c1_191, %c0_192, %c2_193] : memref<4x16x16xf32, #tpu.memory_space<vmem>>, vector<1x14x14xf32>
    %314 = vector.shape_cast %313 : vector<1x14x14xf32> to vector<14x14xf32>
    %315 = vector.shape_cast %312 : vector<14x14xf32> to vector<1x14x14xf32>
    tpu.vector_store %arg6[%c1_191, %c0_192, %c2_193], %315 {strides = array<i32>} : memref<4x16x16xf32, #tpu.memory_space<vmem>>, vector<1x14x14xf32>,
    %c2_194 = arith.constant 2 : index
    %c0_195 = arith.constant 0 : index
    %c2_196 = arith.constant 2 : index
    %316 = vector.load %arg6[%c2_194, %c0_195, %c2_196] : memref<4x16x16xf32, #tpu.memory_space<vmem>>, vector<1x14x14xf32>
    %317 = vector.shape_cast %316 : vector<1x14x14xf32> to vector<14x14xf32>
    %318 = vector.extract_strided_slice %293 {offsets = [2, 0, 0], sizes = [1, 14, 14], strides = [1, 1, 1]} : vector<4x14x14xf32> to vector<1x14x14xf32>
    %319 = vector.shape_cast %318 : vector<1x14x14xf32> to vector<14x14xf32>
    %c26 = arith.constant 26 : index
    %320 = memref.load %arg2[%c26] : memref<36xf32, #tpu.memory_space<smem>>
    %321 = vector.broadcast %320 : f32 to vector<14x14xf32>
    %322 = arith.mulf %319, %321 : vector<14x14xf32>
    %323 = arith.addf %317, %322 : vector<14x14xf32>
    %c2_197 = arith.constant 2 : index
    %c0_198 = arith.constant 0 : index
    %c2_199 = arith.constant 2 : index
    %324 = vector.load %arg6[%c2_197, %c0_198, %c2_199] : memref<4x16x16xf32, #tpu.memory_space<vmem>>, vector<1x14x14xf32>
    %325 = vector.shape_cast %324 : vector<1x14x14xf32> to vector<14x14xf32>
    %326 = vector.shape_cast %323 : vector<14x14xf32> to vector<1x14x14xf32>
    tpu.vector_store %arg6[%c2_197, %c0_198, %c2_199], %326 {strides = array<i32>} : memref<4x16x16xf32, #tpu.memory_space<vmem>>, vector<1x14x14xf32>,
    %c3_200 = arith.constant 3 : index
    %c0_201 = arith.constant 0 : index
    %c2_202 = arith.constant 2 : index
    %327 = vector.load %arg6[%c3_200, %c0_201, %c2_202] : memref<4x16x16xf32, #tpu.memory_space<vmem>>, vector<1x14x14xf32>
    %328 = vector.shape_cast %327 : vector<1x14x14xf32> to vector<14x14xf32>
    %329 = vector.extract_strided_slice %293 {offsets = [3, 0, 0], sizes = [1, 14, 14], strides = [1, 1, 1]} : vector<4x14x14xf32> to vector<1x14x14xf32>
    %330 = vector.shape_cast %329 : vector<1x14x14xf32> to vector<14x14xf32>
    %c27 = arith.constant 27 : index
    %331 = memref.load %arg2[%c27] : memref<36xf32, #tpu.memory_space<smem>>
    %332 = vector.broadcast %331 : f32 to vector<14x14xf32>
    %333 = arith.mulf %330, %332 : vector<14x14xf32>
    %334 = arith.addf %328, %333 : vector<14x14xf32>
    %c3_203 = arith.constant 3 : index
    %c0_204 = arith.constant 0 : index
    %c2_205 = arith.constant 2 : index
    %335 = vector.load %arg6[%c3_203, %c0_204, %c2_205] : memref<4x16x16xf32, #tpu.memory_space<vmem>>, vector<1x14x14xf32>
    %336 = vector.shape_cast %335 : vector<1x14x14xf32> to vector<14x14xf32>
    %337 = vector.shape_cast %334 : vector<14x14xf32> to vector<1x14x14xf32>
    tpu.vector_store %arg6[%c3_203, %c0_204, %c2_205], %337 {strides = array<i32>} : memref<4x16x16xf32, #tpu.memory_space<vmem>>, vector<1x14x14xf32>,
    %c0_206 = arith.constant 0 : index
    %c0_207 = arith.constant 0 : index
    %c2_208 = arith.constant 2 : index
    %c0_209 = arith.constant 0 : index
    %338 = vector.load %arg1[%c0_206, %c0_207, %c2_208, %c0_209] : memref<1x4x16x16xf32, #tpu.memory_space<vmem>>, vector<1x4x14x16xf32>
    %339 = vector.shape_cast %338 : vector<1x4x14x16xf32> to vector<4x14x16xf32>
    %cst_210 = arith.constant 0.000000e+00 : f32
    %340 = vector.broadcast %cst_210 : f32 to vector<4x14x16xf32>
    %341 = arith.maximumf %339, %340 : vector<4x14x16xf32>
    %c0_211 = arith.constant 0 : index
    %c0_212 = arith.constant 0 : index
    %c0_213 = arith.constant 0 : index
    %342 = vector.load %arg6[%c0_211, %c0_212, %c0_213] : memref<4x16x16xf32, #tpu.memory_space<vmem>>, vector<1x14x16xf32>
    %343 = vector.shape_cast %342 : vector<1x14x16xf32> to vector<14x16xf32>
    %344 = vector.extract_strided_slice %341 {offsets = [0, 0, 0], sizes = [1, 14, 16], strides = [1, 1, 1]} : vector<4x14x16xf32> to vector<1x14x16xf32>
    %345 = vector.shape_cast %344 : vector<1x14x16xf32> to vector<14x16xf32>
    %c28 = arith.constant 28 : index
    %346 = memref.load %arg2[%c28] : memref<36xf32, #tpu.memory_space<smem>>
    %347 = vector.broadcast %346 : f32 to vector<14x16xf32>
    %348 = arith.mulf %345, %347 : vector<14x16xf32>
    %349 = arith.addf %343, %348 : vector<14x16xf32>
    %c0_214 = arith.constant 0 : index
    %c0_215 = arith.constant 0 : index
    %c0_216 = arith.constant 0 : index
    %350 = vector.load %arg6[%c0_214, %c0_215, %c0_216] : memref<4x16x16xf32, #tpu.memory_space<vmem>>, vector<1x14x16xf32>
    %351 = vector.shape_cast %350 : vector<1x14x16xf32> to vector<14x16xf32>
    %352 = vector.shape_cast %349 : vector<14x16xf32> to vector<1x14x16xf32>
    tpu.vector_store %arg6[%c0_214, %c0_215, %c0_216], %352 {strides = array<i32>} : memref<4x16x16xf32, #tpu.memory_space<vmem>>, vector<1x14x16xf32>,
    %c1_217 = arith.constant 1 : index
    %c0_218 = arith.constant 0 : index
    %c0_219 = arith.constant 0 : index
    %353 = vector.load %arg6[%c1_217, %c0_218, %c0_219] : memref<4x16x16xf32, #tpu.memory_space<vmem>>, vector<1x14x16xf32>
    %354 = vector.shape_cast %353 : vector<1x14x16xf32> to vector<14x16xf32>
    %355 = vector.extract_strided_slice %341 {offsets = [1, 0, 0], sizes = [1, 14, 16], strides = [1, 1, 1]} : vector<4x14x16xf32> to vector<1x14x16xf32>
    %356 = vector.shape_cast %355 : vector<1x14x16xf32> to vector<14x16xf32>
    %c29 = arith.constant 29 : index
    %357 = memref.load %arg2[%c29] : memref<36xf32, #tpu.memory_space<smem>>
    %358 = vector.broadcast %357 : f32 to vector<14x16xf32>
    %359 = arith.mulf %356, %358 : vector<14x16xf32>
    %360 = arith.addf %354, %359 : vector<14x16xf32>
    %c1_220 = arith.constant 1 : index
    %c0_221 = arith.constant 0 : index
    %c0_222 = arith.constant 0 : index
    %361 = vector.load %arg6[%c1_220, %c0_221, %c0_222] : memref<4x16x16xf32, #tpu.memory_space<vmem>>, vector<1x14x16xf32>
    %362 = vector.shape_cast %361 : vector<1x14x16xf32> to vector<14x16xf32>
    %363 = vector.shape_cast %360 : vector<14x16xf32> to vector<1x14x16xf32>
    tpu.vector_store %arg6[%c1_220, %c0_221, %c0_222], %363 {strides = array<i32>} : memref<4x16x16xf32, #tpu.memory_space<vmem>>, vector<1x14x16xf32>,
    %c2_223 = arith.constant 2 : index
    %c0_224 = arith.constant 0 : index
    %c0_225 = arith.constant 0 : index
    %364 = vector.load %arg6[%c2_223, %c0_224, %c0_225] : memref<4x16x16xf32, #tpu.memory_space<vmem>>, vector<1x14x16xf32>
    %365 = vector.shape_cast %364 : vector<1x14x16xf32> to vector<14x16xf32>
    %366 = vector.extract_strided_slice %341 {offsets = [2, 0, 0], sizes = [1, 14, 16], strides = [1, 1, 1]} : vector<4x14x16xf32> to vector<1x14x16xf32>
    %367 = vector.shape_cast %366 : vector<1x14x16xf32> to vector<14x16xf32>
    %c30 = arith.constant 30 : index
    %368 = memref.load %arg2[%c30] : memref<36xf32, #tpu.memory_space<smem>>
    %369 = vector.broadcast %368 : f32 to vector<14x16xf32>
    %370 = arith.mulf %367, %369 : vector<14x16xf32>
    %371 = arith.addf %365, %370 : vector<14x16xf32>
    %c2_226 = arith.constant 2 : index
    %c0_227 = arith.constant 0 : index
    %c0_228 = arith.constant 0 : index
    %372 = vector.load %arg6[%c2_226, %c0_227, %c0_228] : memref<4x16x16xf32, #tpu.memory_space<vmem>>, vector<1x14x16xf32>
    %373 = vector.shape_cast %372 : vector<1x14x16xf32> to vector<14x16xf32>
    %374 = vector.shape_cast %371 : vector<14x16xf32> to vector<1x14x16xf32>
    tpu.vector_store %arg6[%c2_226, %c0_227, %c0_228], %374 {strides = array<i32>} : memref<4x16x16xf32, #tpu.memory_space<vmem>>, vector<1x14x16xf32>,
    %c3_229 = arith.constant 3 : index
    %c0_230 = arith.constant 0 : index
    %c0_231 = arith.constant 0 : index
    %375 = vector.load %arg6[%c3_229, %c0_230, %c0_231] : memref<4x16x16xf32, #tpu.memory_space<vmem>>, vector<1x14x16xf32>
    %376 = vector.shape_cast %375 : vector<1x14x16xf32> to vector<14x16xf32>
    %377 = vector.extract_strided_slice %341 {offsets = [3, 0, 0], sizes = [1, 14, 16], strides = [1, 1, 1]} : vector<4x14x16xf32> to vector<1x14x16xf32>
    %378 = vector.shape_cast %377 : vector<1x14x16xf32> to vector<14x16xf32>
    %c31 = arith.constant 31 : index
    %379 = memref.load %arg2[%c31] : memref<36xf32, #tpu.memory_space<smem>>
    %380 = vector.broadcast %379 : f32 to vector<14x16xf32>
    %381 = arith.mulf %378, %380 : vector<14x16xf32>
    %382 = arith.addf %376, %381 : vector<14x16xf32>
    %c3_232 = arith.constant 3 : index
    %c0_233 = arith.constant 0 : index
    %c0_234 = arith.constant 0 : index
    %383 = vector.load %arg6[%c3_232, %c0_233, %c0_234] : memref<4x16x16xf32, #tpu.memory_space<vmem>>, vector<1x14x16xf32>
    %384 = vector.shape_cast %383 : vector<1x14x16xf32> to vector<14x16xf32>
    %385 = vector.shape_cast %382 : vector<14x16xf32> to vector<1x14x16xf32>
    tpu.vector_store %arg6[%c3_232, %c0_233, %c0_234], %385 {strides = array<i32>} : memref<4x16x16xf32, #tpu.memory_space<vmem>>, vector<1x14x16xf32>,
    %c0_235 = arith.constant 0 : index
    %c0_236 = arith.constant 0 : index
    %c2_237 = arith.constant 2 : index
    %c2_238 = arith.constant 2 : index
    %386 = vector.load %arg1[%c0_235, %c0_236, %c2_237, %c2_238] : memref<1x4x16x16xf32, #tpu.memory_space<vmem>>, vector<1x4x14x14xf32>
    %387 = vector.shape_cast %386 : vector<1x4x14x14xf32> to vector<4x14x14xf32>
    %cst_239 = arith.constant 0.000000e+00 : f32
    %388 = vector.broadcast %cst_239 : f32 to vector<4x14x14xf32>
    %389 = arith.maximumf %387, %388 : vector<4x14x14xf32>
    %c0_240 = arith.constant 0 : index
    %c0_241 = arith.constant 0 : index
    %c0_242 = arith.constant 0 : index
    %390 = vector.load %arg6[%c0_240, %c0_241, %c0_242] : memref<4x16x16xf32, #tpu.memory_space<vmem>>, vector<1x14x14xf32>
    %391 = vector.shape_cast %390 : vector<1x14x14xf32> to vector<14x14xf32>
    %392 = vector.extract_strided_slice %389 {offsets = [0, 0, 0], sizes = [1, 14, 14], strides = [1, 1, 1]} : vector<4x14x14xf32> to vector<1x14x14xf32>
    %393 = vector.shape_cast %392 : vector<1x14x14xf32> to vector<14x14xf32>
    %c32 = arith.constant 32 : index
    %394 = memref.load %arg2[%c32] : memref<36xf32, #tpu.memory_space<smem>>
    %395 = vector.broadcast %394 : f32 to vector<14x14xf32>
    %396 = arith.mulf %393, %395 : vector<14x14xf32>
    %397 = arith.addf %391, %396 : vector<14x14xf32>
    %c0_243 = arith.constant 0 : index
    %c0_244 = arith.constant 0 : index
    %c0_245 = arith.constant 0 : index
    %398 = vector.load %arg6[%c0_243, %c0_244, %c0_245] : memref<4x16x16xf32, #tpu.memory_space<vmem>>, vector<1x14x14xf32>
    %399 = vector.shape_cast %398 : vector<1x14x14xf32> to vector<14x14xf32>
    %400 = vector.shape_cast %397 : vector<14x14xf32> to vector<1x14x14xf32>
    tpu.vector_store %arg6[%c0_243, %c0_244, %c0_245], %400 {strides = array<i32>} : memref<4x16x16xf32, #tpu.memory_space<vmem>>, vector<1x14x14xf32>,
    %c1_246 = arith.constant 1 : index
    %c0_247 = arith.constant 0 : index
    %c0_248 = arith.constant 0 : index
    %401 = vector.load %arg6[%c1_246, %c0_247, %c0_248] : memref<4x16x16xf32, #tpu.memory_space<vmem>>, vector<1x14x14xf32>
    %402 = vector.shape_cast %401 : vector<1x14x14xf32> to vector<14x14xf32>
    %403 = vector.extract_strided_slice %389 {offsets = [1, 0, 0], sizes = [1, 14, 14], strides = [1, 1, 1]} : vector<4x14x14xf32> to vector<1x14x14xf32>
    %404 = vector.shape_cast %403 : vector<1x14x14xf32> to vector<14x14xf32>
    %c33 = arith.constant 33 : index
    %405 = memref.load %arg2[%c33] : memref<36xf32, #tpu.memory_space<smem>>
    %406 = vector.broadcast %405 : f32 to vector<14x14xf32>
    %407 = arith.mulf %404, %406 : vector<14x14xf32>
    %408 = arith.addf %402, %407 : vector<14x14xf32>
    %c1_249 = arith.constant 1 : index
    %c0_250 = arith.constant 0 : index
    %c0_251 = arith.constant 0 : index
    %409 = vector.load %arg6[%c1_249, %c0_250, %c0_251] : memref<4x16x16xf32, #tpu.memory_space<vmem>>, vector<1x14x14xf32>
    %410 = vector.shape_cast %409 : vector<1x14x14xf32> to vector<14x14xf32>
    %411 = vector.shape_cast %408 : vector<14x14xf32> to vector<1x14x14xf32>
    tpu.vector_store %arg6[%c1_249, %c0_250, %c0_251], %411 {strides = array<i32>} : memref<4x16x16xf32, #tpu.memory_space<vmem>>, vector<1x14x14xf32>,
    %c2_252 = arith.constant 2 : index
    %c0_253 = arith.constant 0 : index
    %c0_254 = arith.constant 0 : index
    %412 = vector.load %arg6[%c2_252, %c0_253, %c0_254] : memref<4x16x16xf32, #tpu.memory_space<vmem>>, vector<1x14x14xf32>
    %413 = vector.shape_cast %412 : vector<1x14x14xf32> to vector<14x14xf32>
    %414 = vector.extract_strided_slice %389 {offsets = [2, 0, 0], sizes = [1, 14, 14], strides = [1, 1, 1]} : vector<4x14x14xf32> to vector<1x14x14xf32>
    %415 = vector.shape_cast %414 : vector<1x14x14xf32> to vector<14x14xf32>
    %c34 = arith.constant 34 : index
    %416 = memref.load %arg2[%c34] : memref<36xf32, #tpu.memory_space<smem>>
    %417 = vector.broadcast %416 : f32 to vector<14x14xf32>
    %418 = arith.mulf %415, %417 : vector<14x14xf32>
    %419 = arith.addf %413, %418 : vector<14x14xf32>
    %c2_255 = arith.constant 2 : index
    %c0_256 = arith.constant 0 : index
    %c0_257 = arith.constant 0 : index
    %420 = vector.load %arg6[%c2_255, %c0_256, %c0_257] : memref<4x16x16xf32, #tpu.memory_space<vmem>>, vector<1x14x14xf32>
    %421 = vector.shape_cast %420 : vector<1x14x14xf32> to vector<14x14xf32>
    %422 = vector.shape_cast %419 : vector<14x14xf32> to vector<1x14x14xf32>
    tpu.vector_store %arg6[%c2_255, %c0_256, %c0_257], %422 {strides = array<i32>} : memref<4x16x16xf32, #tpu.memory_space<vmem>>, vector<1x14x14xf32>,
    %c3_258 = arith.constant 3 : index
    %c0_259 = arith.constant 0 : index
    %c0_260 = arith.constant 0 : index
    %423 = vector.load %arg6[%c3_258, %c0_259, %c0_260] : memref<4x16x16xf32, #tpu.memory_space<vmem>>, vector<1x14x14xf32>
    %424 = vector.shape_cast %423 : vector<1x14x14xf32> to vector<14x14xf32>
    %425 = vector.extract_strided_slice %389 {offsets = [3, 0, 0], sizes = [1, 14, 14], strides = [1, 1, 1]} : vector<4x14x14xf32> to vector<1x14x14xf32>
    %426 = vector.shape_cast %425 : vector<1x14x14xf32> to vector<14x14xf32>
    %c35 = arith.constant 35 : index
    %427 = memref.load %arg2[%c35] : memref<36xf32, #tpu.memory_space<smem>>
    %428 = vector.broadcast %427 : f32 to vector<14x14xf32>
    %429 = arith.mulf %426, %428 : vector<14x14xf32>
    %430 = arith.addf %424, %429 : vector<14x14xf32>
    %c3_261 = arith.constant 3 : index
    %c0_262 = arith.constant 0 : index
    %c0_263 = arith.constant 0 : index
    %431 = vector.load %arg6[%c3_261, %c0_262, %c0_263] : memref<4x16x16xf32, #tpu.memory_space<vmem>>, vector<1x14x14xf32>
    %432 = vector.shape_cast %431 : vector<1x14x14xf32> to vector<14x14xf32>
    %433 = vector.shape_cast %430 : vector<14x14xf32> to vector<1x14x14xf32>
    tpu.vector_store %arg6[%c3_261, %c0_262, %c0_263], %433 {strides = array<i32>} : memref<4x16x16xf32, #tpu.memory_space<vmem>>, vector<1x14x14xf32>,
    %c0_264 = arith.constant 0 : index
    %c0_265 = arith.constant 0 : index
    %c0_266 = arith.constant 0 : index
    %434 = vector.load %arg6[%c0_264, %c0_265, %c0_266] : memref<4x16x16xf32, #tpu.memory_space<vmem>>, vector<1x16x16xf32>
    %435 = vector.shape_cast %434 : vector<1x16x16xf32> to vector<16x16xf32>
    %c1_267 = arith.constant 1 : index
    %c0_268 = arith.constant 0 : index
    %c0_269 = arith.constant 0 : index
    %436 = vector.load %arg6[%c1_267, %c0_268, %c0_269] : memref<4x16x16xf32, #tpu.memory_space<vmem>>, vector<1x16x16xf32>
    %437 = vector.shape_cast %436 : vector<1x16x16xf32> to vector<16x16xf32>
    %c2_270 = arith.constant 2 : index
    %c0_271 = arith.constant 0 : index
    %c0_272 = arith.constant 0 : index
    %438 = vector.load %arg6[%c2_270, %c0_271, %c0_272] : memref<4x16x16xf32, #tpu.memory_space<vmem>>, vector<1x16x16xf32>
    %439 = vector.shape_cast %438 : vector<1x16x16xf32> to vector<16x16xf32>
    %c3_273 = arith.constant 3 : index
    %c0_274 = arith.constant 0 : index
    %c0_275 = arith.constant 0 : index
    %440 = vector.load %arg6[%c3_273, %c0_274, %c0_275] : memref<4x16x16xf32, #tpu.memory_space<vmem>>, vector<1x16x16xf32>
    %441 = vector.shape_cast %440 : vector<1x16x16xf32> to vector<16x16xf32>
    %c0_276 = arith.constant 0 : index
    %442 = memref.load %arg3[%c0_276] : memref<32xf32, #tpu.memory_space<smem>>
    %443 = vector.broadcast %442 : f32 to vector<16x16xf32>
    %444 = arith.mulf %435, %443 : vector<16x16xf32>
    %c1_277 = arith.constant 1 : index
    %445 = memref.load %arg3[%c1_277] : memref<32xf32, #tpu.memory_space<smem>>
    %446 = vector.broadcast %445 : f32 to vector<16x16xf32>
    %447 = arith.mulf %437, %446 : vector<16x16xf32>
    %448 = arith.addf %444, %447 : vector<16x16xf32>
    %c2_278 = arith.constant 2 : index
    %449 = memref.load %arg3[%c2_278] : memref<32xf32, #tpu.memory_space<smem>>
    %450 = vector.broadcast %449 : f32 to vector<16x16xf32>
    %451 = arith.mulf %439, %450 : vector<16x16xf32>
    %452 = arith.addf %448, %451 : vector<16x16xf32>
    %c3_279 = arith.constant 3 : index
    %453 = memref.load %arg3[%c3_279] : memref<32xf32, #tpu.memory_space<smem>>
    %454 = vector.broadcast %453 : f32 to vector<16x16xf32>
    %455 = arith.mulf %441, %454 : vector<16x16xf32>
    %456 = arith.addf %452, %455 : vector<16x16xf32>
    %c0_280 = arith.constant 0 : index
    %c0_281 = arith.constant 0 : index
    %c0_282 = arith.constant 0 : index
    %c0_283 = arith.constant 0 : index
    %457 = vector.load %arg4[%c0_280, %c0_281, %c0_282, %c0_283] : memref<1x8x16x16xf32, #tpu.memory_space<vmem>>, vector<1x1x16x16xf32>
    %458 = vector.shape_cast %457 : vector<1x1x16x16xf32> to vector<16x16xf32>
    %459 = vector.shape_cast %456 : vector<16x16xf32> to vector<1x1x16x16xf32>
    tpu.vector_store %arg4[%c0_280, %c0_281, %c0_282, %c0_283], %459 {strides = array<i32>} : memref<1x8x16x16xf32, #tpu.memory_space<vmem>>, vector<1x1x16x16xf32>,
    %460 = vector.shape_cast %456 : vector<16x16xf32> to vector<1x16x16xf32>
    %cst_284 = arith.constant dense<0.000000e+00> : vector<1xf32>
    %461 = vector.multi_reduction <add>, %460, %cst_284 [1, 2] : vector<1x16x16xf32> to vector<1xf32>
    %462 = vector.shape_cast %461 : vector<1xf32> to vector<1x1x1xf32>
    %463 = vector.extract %462[0, 0, 0] : f32 from vector<1x1x1xf32>
    %464 = vector.broadcast %463 : f32 to vector<1x1xf32>
    %c0_285 = arith.constant 0 : index
    %c0_286 = arith.constant 0 : index
    %c0_287 = arith.constant 0 : index
    %465 = vector.load %arg5[%c0_285, %c0_286, %c0_287] : memref<1x8x2xf32, #tpu.memory_space<vmem>>, vector<1x1x1xf32>
    %466 = vector.shape_cast %465 : vector<1x1x1xf32> to vector<1x1xf32>
    %467 = vector.shape_cast %464 : vector<1x1xf32> to vector<1x1x1xf32>
    tpu.vector_store %arg5[%c0_285, %c0_286, %c0_287], %467 {strides = array<i32>} : memref<1x8x2xf32, #tpu.memory_space<vmem>>, vector<1x1x1xf32>,
    %468 = arith.mulf %456, %456 : vector<16x16xf32>
    %469 = vector.shape_cast %468 : vector<16x16xf32> to vector<1x16x16xf32>
    %cst_288 = arith.constant dense<0.000000e+00> : vector<1xf32>
    %470 = vector.multi_reduction <add>, %469, %cst_288 [1, 2] : vector<1x16x16xf32> to vector<1xf32>
    %471 = vector.shape_cast %470 : vector<1xf32> to vector<1x1x1xf32>
    %472 = vector.extract %471[0, 0, 0] : f32 from vector<1x1x1xf32>
    %473 = vector.broadcast %472 : f32 to vector<1x1xf32>
    %c0_289 = arith.constant 0 : index
    %c0_290 = arith.constant 0 : index
    %c1_291 = arith.constant 1 : index
    %474 = vector.load %arg5[%c0_289, %c0_290, %c1_291] : memref<1x8x2xf32, #tpu.memory_space<vmem>>, vector<1x1x1xf32>
    %475 = vector.shape_cast %474 : vector<1x1x1xf32> to vector<1x1xf32>
    %476 = vector.shape_cast %473 : vector<1x1xf32> to vector<1x1x1xf32>
    tpu.vector_store %arg5[%c0_289, %c0_290, %c1_291], %476 {strides = array<i32>} : memref<1x8x2xf32, #tpu.memory_space<vmem>>, vector<1x1x1xf32>,
    %c4_292 = arith.constant 4 : index
    %477 = memref.load %arg3[%c4_292] : memref<32xf32, #tpu.memory_space<smem>>
    %478 = vector.broadcast %477 : f32 to vector<16x16xf32>
    %479 = arith.mulf %435, %478 : vector<16x16xf32>
    %c5_293 = arith.constant 5 : index
    %480 = memref.load %arg3[%c5_293] : memref<32xf32, #tpu.memory_space<smem>>
    %481 = vector.broadcast %480 : f32 to vector<16x16xf32>
    %482 = arith.mulf %437, %481 : vector<16x16xf32>
    %483 = arith.addf %479, %482 : vector<16x16xf32>
    %c6_294 = arith.constant 6 : index
    %484 = memref.load %arg3[%c6_294] : memref<32xf32, #tpu.memory_space<smem>>
    %485 = vector.broadcast %484 : f32 to vector<16x16xf32>
    %486 = arith.mulf %439, %485 : vector<16x16xf32>
    %487 = arith.addf %483, %486 : vector<16x16xf32>
    %c7_295 = arith.constant 7 : index
    %488 = memref.load %arg3[%c7_295] : memref<32xf32, #tpu.memory_space<smem>>
    %489 = vector.broadcast %488 : f32 to vector<16x16xf32>
    %490 = arith.mulf %441, %489 : vector<16x16xf32>
    %491 = arith.addf %487, %490 : vector<16x16xf32>
    %c0_296 = arith.constant 0 : index
    %c1_297 = arith.constant 1 : index
    %c0_298 = arith.constant 0 : index
    %c0_299 = arith.constant 0 : index
    %492 = vector.load %arg4[%c0_296, %c1_297, %c0_298, %c0_299] : memref<1x8x16x16xf32, #tpu.memory_space<vmem>>, vector<1x1x16x16xf32>
    %493 = vector.shape_cast %492 : vector<1x1x16x16xf32> to vector<16x16xf32>
    %494 = vector.shape_cast %491 : vector<16x16xf32> to vector<1x1x16x16xf32>
    tpu.vector_store %arg4[%c0_296, %c1_297, %c0_298, %c0_299], %494 {strides = array<i32>} : memref<1x8x16x16xf32, #tpu.memory_space<vmem>>, vector<1x1x16x16xf32>,
    %495 = vector.shape_cast %491 : vector<16x16xf32> to vector<1x16x16xf32>
    %cst_300 = arith.constant dense<0.000000e+00> : vector<1xf32>
    %496 = vector.multi_reduction <add>, %495, %cst_300 [1, 2] : vector<1x16x16xf32> to vector<1xf32>
    %497 = vector.shape_cast %496 : vector<1xf32> to vector<1x1x1xf32>
    %498 = vector.extract %497[0, 0, 0] : f32 from vector<1x1x1xf32>
    %499 = vector.broadcast %498 : f32 to vector<1x1xf32>
    %c0_301 = arith.constant 0 : index
    %c1_302 = arith.constant 1 : index
    %c0_303 = arith.constant 0 : index
    %500 = vector.load %arg5[%c0_301, %c1_302, %c0_303] : memref<1x8x2xf32, #tpu.memory_space<vmem>>, vector<1x1x1xf32>
    %501 = vector.shape_cast %500 : vector<1x1x1xf32> to vector<1x1xf32>
    %502 = vector.shape_cast %499 : vector<1x1xf32> to vector<1x1x1xf32>
    tpu.vector_store %arg5[%c0_301, %c1_302, %c0_303], %502 {strides = array<i32>} : memref<1x8x2xf32, #tpu.memory_space<vmem>>, vector<1x1x1xf32>,
    %503 = arith.mulf %491, %491 : vector<16x16xf32>
    %504 = vector.shape_cast %503 : vector<16x16xf32> to vector<1x16x16xf32>
    %cst_304 = arith.constant dense<0.000000e+00> : vector<1xf32>
    %505 = vector.multi_reduction <add>, %504, %cst_304 [1, 2] : vector<1x16x16xf32> to vector<1xf32>
    %506 = vector.shape_cast %505 : vector<1xf32> to vector<1x1x1xf32>
    %507 = vector.extract %506[0, 0, 0] : f32 from vector<1x1x1xf32>
    %508 = vector.broadcast %507 : f32 to vector<1x1xf32>
    %c0_305 = arith.constant 0 : index
    %c1_306 = arith.constant 1 : index
    %c1_307 = arith.constant 1 : index
    %509 = vector.load %arg5[%c0_305, %c1_306, %c1_307] : memref<1x8x2xf32, #tpu.memory_space<vmem>>, vector<1x1x1xf32>
    %510 = vector.shape_cast %509 : vector<1x1x1xf32> to vector<1x1xf32>
    %511 = vector.shape_cast %508 : vector<1x1xf32> to vector<1x1x1xf32>
    tpu.vector_store %arg5[%c0_305, %c1_306, %c1_307], %511 {strides = array<i32>} : memref<1x8x2xf32, #tpu.memory_space<vmem>>, vector<1x1x1xf32>,
    %c8_308 = arith.constant 8 : index
    %512 = memref.load %arg3[%c8_308] : memref<32xf32, #tpu.memory_space<smem>>
    %513 = vector.broadcast %512 : f32 to vector<16x16xf32>
    %514 = arith.mulf %435, %513 : vector<16x16xf32>
    %c9_309 = arith.constant 9 : index
    %515 = memref.load %arg3[%c9_309] : memref<32xf32, #tpu.memory_space<smem>>
    %516 = vector.broadcast %515 : f32 to vector<16x16xf32>
    %517 = arith.mulf %437, %516 : vector<16x16xf32>
    %518 = arith.addf %514, %517 : vector<16x16xf32>
    %c10_310 = arith.constant 10 : index
    %519 = memref.load %arg3[%c10_310] : memref<32xf32, #tpu.memory_space<smem>>
    %520 = vector.broadcast %519 : f32 to vector<16x16xf32>
    %521 = arith.mulf %439, %520 : vector<16x16xf32>
    %522 = arith.addf %518, %521 : vector<16x16xf32>
    %c11_311 = arith.constant 11 : index
    %523 = memref.load %arg3[%c11_311] : memref<32xf32, #tpu.memory_space<smem>>
    %524 = vector.broadcast %523 : f32 to vector<16x16xf32>
    %525 = arith.mulf %441, %524 : vector<16x16xf32>
    %526 = arith.addf %522, %525 : vector<16x16xf32>
    %c0_312 = arith.constant 0 : index
    %c2_313 = arith.constant 2 : index
    %c0_314 = arith.constant 0 : index
    %c0_315 = arith.constant 0 : index
    %527 = vector.load %arg4[%c0_312, %c2_313, %c0_314, %c0_315] : memref<1x8x16x16xf32, #tpu.memory_space<vmem>>, vector<1x1x16x16xf32>
    %528 = vector.shape_cast %527 : vector<1x1x16x16xf32> to vector<16x16xf32>
    %529 = vector.shape_cast %526 : vector<16x16xf32> to vector<1x1x16x16xf32>
    tpu.vector_store %arg4[%c0_312, %c2_313, %c0_314, %c0_315], %529 {strides = array<i32>} : memref<1x8x16x16xf32, #tpu.memory_space<vmem>>, vector<1x1x16x16xf32>,
    %530 = vector.shape_cast %526 : vector<16x16xf32> to vector<1x16x16xf32>
    %cst_316 = arith.constant dense<0.000000e+00> : vector<1xf32>
    %531 = vector.multi_reduction <add>, %530, %cst_316 [1, 2] : vector<1x16x16xf32> to vector<1xf32>
    %532 = vector.shape_cast %531 : vector<1xf32> to vector<1x1x1xf32>
    %533 = vector.extract %532[0, 0, 0] : f32 from vector<1x1x1xf32>
    %534 = vector.broadcast %533 : f32 to vector<1x1xf32>
    %c0_317 = arith.constant 0 : index
    %c2_318 = arith.constant 2 : index
    %c0_319 = arith.constant 0 : index
    %535 = vector.load %arg5[%c0_317, %c2_318, %c0_319] : memref<1x8x2xf32, #tpu.memory_space<vmem>>, vector<1x1x1xf32>
    %536 = vector.shape_cast %535 : vector<1x1x1xf32> to vector<1x1xf32>
    %537 = vector.shape_cast %534 : vector<1x1xf32> to vector<1x1x1xf32>
    tpu.vector_store %arg5[%c0_317, %c2_318, %c0_319], %537 {strides = array<i32>} : memref<1x8x2xf32, #tpu.memory_space<vmem>>, vector<1x1x1xf32>,
    %538 = arith.mulf %526, %526 : vector<16x16xf32>
    %539 = vector.shape_cast %538 : vector<16x16xf32> to vector<1x16x16xf32>
    %cst_320 = arith.constant dense<0.000000e+00> : vector<1xf32>
    %540 = vector.multi_reduction <add>, %539, %cst_320 [1, 2] : vector<1x16x16xf32> to vector<1xf32>
    %541 = vector.shape_cast %540 : vector<1xf32> to vector<1x1x1xf32>
    %542 = vector.extract %541[0, 0, 0] : f32 from vector<1x1x1xf32>
    %543 = vector.broadcast %542 : f32 to vector<1x1xf32>
    %c0_321 = arith.constant 0 : index
    %c2_322 = arith.constant 2 : index
    %c1_323 = arith.constant 1 : index
    %544 = vector.load %arg5[%c0_321, %c2_322, %c1_323] : memref<1x8x2xf32, #tpu.memory_space<vmem>>, vector<1x1x1xf32>
    %545 = vector.shape_cast %544 : vector<1x1x1xf32> to vector<1x1xf32>
    %546 = vector.shape_cast %543 : vector<1x1xf32> to vector<1x1x1xf32>
    tpu.vector_store %arg5[%c0_321, %c2_322, %c1_323], %546 {strides = array<i32>} : memref<1x8x2xf32, #tpu.memory_space<vmem>>, vector<1x1x1xf32>,
    %c12_324 = arith.constant 12 : index
    %547 = memref.load %arg3[%c12_324] : memref<32xf32, #tpu.memory_space<smem>>
    %548 = vector.broadcast %547 : f32 to vector<16x16xf32>
    %549 = arith.mulf %435, %548 : vector<16x16xf32>
    %c13_325 = arith.constant 13 : index
    %550 = memref.load %arg3[%c13_325] : memref<32xf32, #tpu.memory_space<smem>>
    %551 = vector.broadcast %550 : f32 to vector<16x16xf32>
    %552 = arith.mulf %437, %551 : vector<16x16xf32>
    %553 = arith.addf %549, %552 : vector<16x16xf32>
    %c14_326 = arith.constant 14 : index
    %554 = memref.load %arg3[%c14_326] : memref<32xf32, #tpu.memory_space<smem>>
    %555 = vector.broadcast %554 : f32 to vector<16x16xf32>
    %556 = arith.mulf %439, %555 : vector<16x16xf32>
    %557 = arith.addf %553, %556 : vector<16x16xf32>
    %c15_327 = arith.constant 15 : index
    %558 = memref.load %arg3[%c15_327] : memref<32xf32, #tpu.memory_space<smem>>
    %559 = vector.broadcast %558 : f32 to vector<16x16xf32>
    %560 = arith.mulf %441, %559 : vector<16x16xf32>
    %561 = arith.addf %557, %560 : vector<16x16xf32>
    %c0_328 = arith.constant 0 : index
    %c3_329 = arith.constant 3 : index
    %c0_330 = arith.constant 0 : index
    %c0_331 = arith.constant 0 : index
    %562 = vector.load %arg4[%c0_328, %c3_329, %c0_330, %c0_331] : memref<1x8x16x16xf32, #tpu.memory_space<vmem>>, vector<1x1x16x16xf32>
    %563 = vector.shape_cast %562 : vector<1x1x16x16xf32> to vector<16x16xf32>
    %564 = vector.shape_cast %561 : vector<16x16xf32> to vector<1x1x16x16xf32>
    tpu.vector_store %arg4[%c0_328, %c3_329, %c0_330, %c0_331], %564 {strides = array<i32>} : memref<1x8x16x16xf32, #tpu.memory_space<vmem>>, vector<1x1x16x16xf32>,
    %565 = vector.shape_cast %561 : vector<16x16xf32> to vector<1x16x16xf32>
    %cst_332 = arith.constant dense<0.000000e+00> : vector<1xf32>
    %566 = vector.multi_reduction <add>, %565, %cst_332 [1, 2] : vector<1x16x16xf32> to vector<1xf32>
    %567 = vector.shape_cast %566 : vector<1xf32> to vector<1x1x1xf32>
    %568 = vector.extract %567[0, 0, 0] : f32 from vector<1x1x1xf32>
    %569 = vector.broadcast %568 : f32 to vector<1x1xf32>
    %c0_333 = arith.constant 0 : index
    %c3_334 = arith.constant 3 : index
    %c0_335 = arith.constant 0 : index
    %570 = vector.load %arg5[%c0_333, %c3_334, %c0_335] : memref<1x8x2xf32, #tpu.memory_space<vmem>>, vector<1x1x1xf32>
    %571 = vector.shape_cast %570 : vector<1x1x1xf32> to vector<1x1xf32>
    %572 = vector.shape_cast %569 : vector<1x1xf32> to vector<1x1x1xf32>
    tpu.vector_store %arg5[%c0_333, %c3_334, %c0_335], %572 {strides = array<i32>} : memref<1x8x2xf32, #tpu.memory_space<vmem>>, vector<1x1x1xf32>,
    %573 = arith.mulf %561, %561 : vector<16x16xf32>
    %574 = vector.shape_cast %573 : vector<16x16xf32> to vector<1x16x16xf32>
    %cst_336 = arith.constant dense<0.000000e+00> : vector<1xf32>
    %575 = vector.multi_reduction <add>, %574, %cst_336 [1, 2] : vector<1x16x16xf32> to vector<1xf32>
    %576 = vector.shape_cast %575 : vector<1xf32> to vector<1x1x1xf32>
    %577 = vector.extract %576[0, 0, 0] : f32 from vector<1x1x1xf32>
    %578 = vector.broadcast %577 : f32 to vector<1x1xf32>
    %c0_337 = arith.constant 0 : index
    %c3_338 = arith.constant 3 : index
    %c1_339 = arith.constant 1 : index
    %579 = vector.load %arg5[%c0_337, %c3_338, %c1_339] : memref<1x8x2xf32, #tpu.memory_space<vmem>>, vector<1x1x1xf32>
    %580 = vector.shape_cast %579 : vector<1x1x1xf32> to vector<1x1xf32>
    %581 = vector.shape_cast %578 : vector<1x1xf32> to vector<1x1x1xf32>
    tpu.vector_store %arg5[%c0_337, %c3_338, %c1_339], %581 {strides = array<i32>} : memref<1x8x2xf32, #tpu.memory_space<vmem>>, vector<1x1x1xf32>,
    %c16_340 = arith.constant 16 : index
    %582 = memref.load %arg3[%c16_340] : memref<32xf32, #tpu.memory_space<smem>>
    %583 = vector.broadcast %582 : f32 to vector<16x16xf32>
    %584 = arith.mulf %435, %583 : vector<16x16xf32>
    %c17_341 = arith.constant 17 : index
    %585 = memref.load %arg3[%c17_341] : memref<32xf32, #tpu.memory_space<smem>>
    %586 = vector.broadcast %585 : f32 to vector<16x16xf32>
    %587 = arith.mulf %437, %586 : vector<16x16xf32>
    %588 = arith.addf %584, %587 : vector<16x16xf32>
    %c18_342 = arith.constant 18 : index
    %589 = memref.load %arg3[%c18_342] : memref<32xf32, #tpu.memory_space<smem>>
    %590 = vector.broadcast %589 : f32 to vector<16x16xf32>
    %591 = arith.mulf %439, %590 : vector<16x16xf32>
    %592 = arith.addf %588, %591 : vector<16x16xf32>
    %c19_343 = arith.constant 19 : index
    %593 = memref.load %arg3[%c19_343] : memref<32xf32, #tpu.memory_space<smem>>
    %594 = vector.broadcast %593 : f32 to vector<16x16xf32>
    %595 = arith.mulf %441, %594 : vector<16x16xf32>
    %596 = arith.addf %592, %595 : vector<16x16xf32>
    %c0_344 = arith.constant 0 : index
    %c4_345 = arith.constant 4 : index
    %c0_346 = arith.constant 0 : index
    %c0_347 = arith.constant 0 : index
    %597 = vector.load %arg4[%c0_344, %c4_345, %c0_346, %c0_347] : memref<1x8x16x16xf32, #tpu.memory_space<vmem>>, vector<1x1x16x16xf32>
    %598 = vector.shape_cast %597 : vector<1x1x16x16xf32> to vector<16x16xf32>
    %599 = vector.shape_cast %596 : vector<16x16xf32> to vector<1x1x16x16xf32>
    tpu.vector_store %arg4[%c0_344, %c4_345, %c0_346, %c0_347], %599 {strides = array<i32>} : memref<1x8x16x16xf32, #tpu.memory_space<vmem>>, vector<1x1x16x16xf32>,
    %600 = vector.shape_cast %596 : vector<16x16xf32> to vector<1x16x16xf32>
    %cst_348 = arith.constant dense<0.000000e+00> : vector<1xf32>
    %601 = vector.multi_reduction <add>, %600, %cst_348 [1, 2] : vector<1x16x16xf32> to vector<1xf32>
    %602 = vector.shape_cast %601 : vector<1xf32> to vector<1x1x1xf32>
    %603 = vector.extract %602[0, 0, 0] : f32 from vector<1x1x1xf32>
    %604 = vector.broadcast %603 : f32 to vector<1x1xf32>
    %c0_349 = arith.constant 0 : index
    %c4_350 = arith.constant 4 : index
    %c0_351 = arith.constant 0 : index
    %605 = vector.load %arg5[%c0_349, %c4_350, %c0_351] : memref<1x8x2xf32, #tpu.memory_space<vmem>>, vector<1x1x1xf32>
    %606 = vector.shape_cast %605 : vector<1x1x1xf32> to vector<1x1xf32>
    %607 = vector.shape_cast %604 : vector<1x1xf32> to vector<1x1x1xf32>
    tpu.vector_store %arg5[%c0_349, %c4_350, %c0_351], %607 {strides = array<i32>} : memref<1x8x2xf32, #tpu.memory_space<vmem>>, vector<1x1x1xf32>,
    %608 = arith.mulf %596, %596 : vector<16x16xf32>
    %609 = vector.shape_cast %608 : vector<16x16xf32> to vector<1x16x16xf32>
    %cst_352 = arith.constant dense<0.000000e+00> : vector<1xf32>
    %610 = vector.multi_reduction <add>, %609, %cst_352 [1, 2] : vector<1x16x16xf32> to vector<1xf32>
    %611 = vector.shape_cast %610 : vector<1xf32> to vector<1x1x1xf32>
    %612 = vector.extract %611[0, 0, 0] : f32 from vector<1x1x1xf32>
    %613 = vector.broadcast %612 : f32 to vector<1x1xf32>
    %c0_353 = arith.constant 0 : index
    %c4_354 = arith.constant 4 : index
    %c1_355 = arith.constant 1 : index
    %614 = vector.load %arg5[%c0_353, %c4_354, %c1_355] : memref<1x8x2xf32, #tpu.memory_space<vmem>>, vector<1x1x1xf32>
    %615 = vector.shape_cast %614 : vector<1x1x1xf32> to vector<1x1xf32>
    %616 = vector.shape_cast %613 : vector<1x1xf32> to vector<1x1x1xf32>
    tpu.vector_store %arg5[%c0_353, %c4_354, %c1_355], %616 {strides = array<i32>} : memref<1x8x2xf32, #tpu.memory_space<vmem>>, vector<1x1x1xf32>,
    %c20_356 = arith.constant 20 : index
    %617 = memref.load %arg3[%c20_356] : memref<32xf32, #tpu.memory_space<smem>>
    %618 = vector.broadcast %617 : f32 to vector<16x16xf32>
    %619 = arith.mulf %435, %618 : vector<16x16xf32>
    %c21_357 = arith.constant 21 : index
    %620 = memref.load %arg3[%c21_357] : memref<32xf32, #tpu.memory_space<smem>>
    %621 = vector.broadcast %620 : f32 to vector<16x16xf32>
    %622 = arith.mulf %437, %621 : vector<16x16xf32>
    %623 = arith.addf %619, %622 : vector<16x16xf32>
    %c22_358 = arith.constant 22 : index
    %624 = memref.load %arg3[%c22_358] : memref<32xf32, #tpu.memory_space<smem>>
    %625 = vector.broadcast %624 : f32 to vector<16x16xf32>
    %626 = arith.mulf %439, %625 : vector<16x16xf32>
    %627 = arith.addf %623, %626 : vector<16x16xf32>
    %c23_359 = arith.constant 23 : index
    %628 = memref.load %arg3[%c23_359] : memref<32xf32, #tpu.memory_space<smem>>
    %629 = vector.broadcast %628 : f32 to vector<16x16xf32>
    %630 = arith.mulf %441, %629 : vector<16x16xf32>
    %631 = arith.addf %627, %630 : vector<16x16xf32>
    %c0_360 = arith.constant 0 : index
    %c5_361 = arith.constant 5 : index
    %c0_362 = arith.constant 0 : index
    %c0_363 = arith.constant 0 : index
    %632 = vector.load %arg4[%c0_360, %c5_361, %c0_362, %c0_363] : memref<1x8x16x16xf32, #tpu.memory_space<vmem>>, vector<1x1x16x16xf32>
    %633 = vector.shape_cast %632 : vector<1x1x16x16xf32> to vector<16x16xf32>
    %634 = vector.shape_cast %631 : vector<16x16xf32> to vector<1x1x16x16xf32>
    tpu.vector_store %arg4[%c0_360, %c5_361, %c0_362, %c0_363], %634 {strides = array<i32>} : memref<1x8x16x16xf32, #tpu.memory_space<vmem>>, vector<1x1x16x16xf32>,
    %635 = vector.shape_cast %631 : vector<16x16xf32> to vector<1x16x16xf32>
    %cst_364 = arith.constant dense<0.000000e+00> : vector<1xf32>
    %636 = vector.multi_reduction <add>, %635, %cst_364 [1, 2] : vector<1x16x16xf32> to vector<1xf32>
    %637 = vector.shape_cast %636 : vector<1xf32> to vector<1x1x1xf32>
    %638 = vector.extract %637[0, 0, 0] : f32 from vector<1x1x1xf32>
    %639 = vector.broadcast %638 : f32 to vector<1x1xf32>
    %c0_365 = arith.constant 0 : index
    %c5_366 = arith.constant 5 : index
    %c0_367 = arith.constant 0 : index
    %640 = vector.load %arg5[%c0_365, %c5_366, %c0_367] : memref<1x8x2xf32, #tpu.memory_space<vmem>>, vector<1x1x1xf32>
    %641 = vector.shape_cast %640 : vector<1x1x1xf32> to vector<1x1xf32>
    %642 = vector.shape_cast %639 : vector<1x1xf32> to vector<1x1x1xf32>
    tpu.vector_store %arg5[%c0_365, %c5_366, %c0_367], %642 {strides = array<i32>} : memref<1x8x2xf32, #tpu.memory_space<vmem>>, vector<1x1x1xf32>,
    %643 = arith.mulf %631, %631 : vector<16x16xf32>
    %644 = vector.shape_cast %643 : vector<16x16xf32> to vector<1x16x16xf32>
    %cst_368 = arith.constant dense<0.000000e+00> : vector<1xf32>
    %645 = vector.multi_reduction <add>, %644, %cst_368 [1, 2] : vector<1x16x16xf32> to vector<1xf32>
    %646 = vector.shape_cast %645 : vector<1xf32> to vector<1x1x1xf32>
    %647 = vector.extract %646[0, 0, 0] : f32 from vector<1x1x1xf32>
    %648 = vector.broadcast %647 : f32 to vector<1x1xf32>
    %c0_369 = arith.constant 0 : index
    %c5_370 = arith.constant 5 : index
    %c1_371 = arith.constant 1 : index
    %649 = vector.load %arg5[%c0_369, %c5_370, %c1_371] : memref<1x8x2xf32, #tpu.memory_space<vmem>>, vector<1x1x1xf32>
    %650 = vector.shape_cast %649 : vector<1x1x1xf32> to vector<1x1xf32>
    %651 = vector.shape_cast %648 : vector<1x1xf32> to vector<1x1x1xf32>
    tpu.vector_store %arg5[%c0_369, %c5_370, %c1_371], %651 {strides = array<i32>} : memref<1x8x2xf32, #tpu.memory_space<vmem>>, vector<1x1x1xf32>,
    %c24_372 = arith.constant 24 : index
    %652 = memref.load %arg3[%c24_372] : memref<32xf32, #tpu.memory_space<smem>>
    %653 = vector.broadcast %652 : f32 to vector<16x16xf32>
    %654 = arith.mulf %435, %653 : vector<16x16xf32>
    %c25_373 = arith.constant 25 : index
    %655 = memref.load %arg3[%c25_373] : memref<32xf32, #tpu.memory_space<smem>>
    %656 = vector.broadcast %655 : f32 to vector<16x16xf32>
    %657 = arith.mulf %437, %656 : vector<16x16xf32>
    %658 = arith.addf %654, %657 : vector<16x16xf32>
    %c26_374 = arith.constant 26 : index
    %659 = memref.load %arg3[%c26_374] : memref<32xf32, #tpu.memory_space<smem>>
    %660 = vector.broadcast %659 : f32 to vector<16x16xf32>
    %661 = arith.mulf %439, %660 : vector<16x16xf32>
    %662 = arith.addf %658, %661 : vector<16x16xf32>
    %c27_375 = arith.constant 27 : index
    %663 = memref.load %arg3[%c27_375] : memref<32xf32, #tpu.memory_space<smem>>
    %664 = vector.broadcast %663 : f32 to vector<16x16xf32>
    %665 = arith.mulf %441, %664 : vector<16x16xf32>
    %666 = arith.addf %662, %665 : vector<16x16xf32>
    %c0_376 = arith.constant 0 : index
    %c6_377 = arith.constant 6 : index
    %c0_378 = arith.constant 0 : index
    %c0_379 = arith.constant 0 : index
    %667 = vector.load %arg4[%c0_376, %c6_377, %c0_378, %c0_379] : memref<1x8x16x16xf32, #tpu.memory_space<vmem>>, vector<1x1x16x16xf32>
    %668 = vector.shape_cast %667 : vector<1x1x16x16xf32> to vector<16x16xf32>
    %669 = vector.shape_cast %666 : vector<16x16xf32> to vector<1x1x16x16xf32>
    tpu.vector_store %arg4[%c0_376, %c6_377, %c0_378, %c0_379], %669 {strides = array<i32>} : memref<1x8x16x16xf32, #tpu.memory_space<vmem>>, vector<1x1x16x16xf32>,
    %670 = vector.shape_cast %666 : vector<16x16xf32> to vector<1x16x16xf32>
    %cst_380 = arith.constant dense<0.000000e+00> : vector<1xf32>
    %671 = vector.multi_reduction <add>, %670, %cst_380 [1, 2] : vector<1x16x16xf32> to vector<1xf32>
    %672 = vector.shape_cast %671 : vector<1xf32> to vector<1x1x1xf32>
    %673 = vector.extract %672[0, 0, 0] : f32 from vector<1x1x1xf32>
    %674 = vector.broadcast %673 : f32 to vector<1x1xf32>
    %c0_381 = arith.constant 0 : index
    %c6_382 = arith.constant 6 : index
    %c0_383 = arith.constant 0 : index
    %675 = vector.load %arg5[%c0_381, %c6_382, %c0_383] : memref<1x8x2xf32, #tpu.memory_space<vmem>>, vector<1x1x1xf32>
    %676 = vector.shape_cast %675 : vector<1x1x1xf32> to vector<1x1xf32>
    %677 = vector.shape_cast %674 : vector<1x1xf32> to vector<1x1x1xf32>
    tpu.vector_store %arg5[%c0_381, %c6_382, %c0_383], %677 {strides = array<i32>} : memref<1x8x2xf32, #tpu.memory_space<vmem>>, vector<1x1x1xf32>,
    %678 = arith.mulf %666, %666 : vector<16x16xf32>
    %679 = vector.shape_cast %678 : vector<16x16xf32> to vector<1x16x16xf32>
    %cst_384 = arith.constant dense<0.000000e+00> : vector<1xf32>
    %680 = vector.multi_reduction <add>, %679, %cst_384 [1, 2] : vector<1x16x16xf32> to vector<1xf32>
    %681 = vector.shape_cast %680 : vector<1xf32> to vector<1x1x1xf32>
    %682 = vector.extract %681[0, 0, 0] : f32 from vector<1x1x1xf32>
    %683 = vector.broadcast %682 : f32 to vector<1x1xf32>
    %c0_385 = arith.constant 0 : index
    %c6_386 = arith.constant 6 : index
    %c1_387 = arith.constant 1 : index
    %684 = vector.load %arg5[%c0_385, %c6_386, %c1_387] : memref<1x8x2xf32, #tpu.memory_space<vmem>>, vector<1x1x1xf32>
    %685 = vector.shape_cast %684 : vector<1x1x1xf32> to vector<1x1xf32>
    %686 = vector.shape_cast %683 : vector<1x1xf32> to vector<1x1x1xf32>
    tpu.vector_store %arg5[%c0_385, %c6_386, %c1_387], %686 {strides = array<i32>} : memref<1x8x2xf32, #tpu.memory_space<vmem>>, vector<1x1x1xf32>,
    %c28_388 = arith.constant 28 : index
    %687 = memref.load %arg3[%c28_388] : memref<32xf32, #tpu.memory_space<smem>>
    %688 = vector.broadcast %687 : f32 to vector<16x16xf32>
    %689 = arith.mulf %435, %688 : vector<16x16xf32>
    %c29_389 = arith.constant 29 : index
    %690 = memref.load %arg3[%c29_389] : memref<32xf32, #tpu.memory_space<smem>>
    %691 = vector.broadcast %690 : f32 to vector<16x16xf32>
    %692 = arith.mulf %437, %691 : vector<16x16xf32>
    %693 = arith.addf %689, %692 : vector<16x16xf32>
    %c30_390 = arith.constant 30 : index
    %694 = memref.load %arg3[%c30_390] : memref<32xf32, #tpu.memory_space<smem>>
    %695 = vector.broadcast %694 : f32 to vector<16x16xf32>
    %696 = arith.mulf %439, %695 : vector<16x16xf32>
    %697 = arith.addf %693, %696 : vector<16x16xf32>
    %c31_391 = arith.constant 31 : index
    %698 = memref.load %arg3[%c31_391] : memref<32xf32, #tpu.memory_space<smem>>
    %699 = vector.broadcast %698 : f32 to vector<16x16xf32>
    %700 = arith.mulf %441, %699 : vector<16x16xf32>
    %701 = arith.addf %697, %700 : vector<16x16xf32>
    %c0_392 = arith.constant 0 : index
    %c7_393 = arith.constant 7 : index
    %c0_394 = arith.constant 0 : index
    %c0_395 = arith.constant 0 : index
    %702 = vector.load %arg4[%c0_392, %c7_393, %c0_394, %c0_395] : memref<1x8x16x16xf32, #tpu.memory_space<vmem>>, vector<1x1x16x16xf32>
    %703 = vector.shape_cast %702 : vector<1x1x16x16xf32> to vector<16x16xf32>
    %704 = vector.shape_cast %701 : vector<16x16xf32> to vector<1x1x16x16xf32>
    tpu.vector_store %arg4[%c0_392, %c7_393, %c0_394, %c0_395], %704 {strides = array<i32>} : memref<1x8x16x16xf32, #tpu.memory_space<vmem>>, vector<1x1x16x16xf32>,
    %705 = vector.shape_cast %701 : vector<16x16xf32> to vector<1x16x16xf32>
    %cst_396 = arith.constant dense<0.000000e+00> : vector<1xf32>
    %706 = vector.multi_reduction <add>, %705, %cst_396 [1, 2] : vector<1x16x16xf32> to vector<1xf32>
    %707 = vector.shape_cast %706 : vector<1xf32> to vector<1x1x1xf32>
    %708 = vector.extract %707[0, 0, 0] : f32 from vector<1x1x1xf32>
    %709 = vector.broadcast %708 : f32 to vector<1x1xf32>
    %c0_397 = arith.constant 0 : index
    %c7_398 = arith.constant 7 : index
    %c0_399 = arith.constant 0 : index
    %710 = vector.load %arg5[%c0_397, %c7_398, %c0_399] : memref<1x8x2xf32, #tpu.memory_space<vmem>>, vector<1x1x1xf32>
    %711 = vector.shape_cast %710 : vector<1x1x1xf32> to vector<1x1xf32>
    %712 = vector.shape_cast %709 : vector<1x1xf32> to vector<1x1x1xf32>
    tpu.vector_store %arg5[%c0_397, %c7_398, %c0_399], %712 {strides = array<i32>} : memref<1x8x2xf32, #tpu.memory_space<vmem>>, vector<1x1x1xf32>,
    %713 = arith.mulf %701, %701 : vector<16x16xf32>
    %714 = vector.shape_cast %713 : vector<16x16xf32> to vector<1x16x16xf32>
    %cst_400 = arith.constant dense<0.000000e+00> : vector<1xf32>
    %715 = vector.multi_reduction <add>, %714, %cst_400 [1, 2] : vector<1x16x16xf32> to vector<1xf32>
    %716 = vector.shape_cast %715 : vector<1xf32> to vector<1x1x1xf32>
    %717 = vector.extract %716[0, 0, 0] : f32 from vector<1x1x1xf32>
    %718 = vector.broadcast %717 : f32 to vector<1x1xf32>
    %c0_401 = arith.constant 0 : index
    %c7_402 = arith.constant 7 : index
    %c1_403 = arith.constant 1 : index
    %719 = vector.load %arg5[%c0_401, %c7_402, %c1_403] : memref<1x8x2xf32, #tpu.memory_space<vmem>>, vector<1x1x1xf32>
    %720 = vector.shape_cast %719 : vector<1x1x1xf32> to vector<1x1xf32>
    %721 = vector.shape_cast %718 : vector<1x1xf32> to vector<1x1x1xf32>
    tpu.vector_store %arg5[%c0_401, %c7_402, %c1_403], %721 {strides = array<i32>} : memref<1x8x2xf32, #tpu.memory_space<vmem>>, vector<1x1x1xf32>,
    return
  }
  func.func @transform_0(%arg0: i32) -> (i32, i32, i32, i32) {
    %c0_i32 = arith.constant 0 : i32
    %c0_i32_0 = arith.constant 0 : i32
    %c0_i32_1 = arith.constant 0 : i32
    %c0_i32_2 = arith.constant 0 : i32
    return %arg0, %c0_i32, %c0_i32_0, %c0_i32_1 : i32, i32, i32, i32
  }
  func.func @transform_1(%arg0: i32) -> i32 {
    %c0_i32 = arith.constant 0 : i32
    %c0_i32_0 = arith.constant 0 : i32
    return %c0_i32 : i32
  }
  func.func @transform_2(%arg0: i32) -> i32 {
    %c0_i32 = arith.constant 0 : i32
    %c0_i32_0 = arith.constant 0 : i32
    return %c0_i32 : i32
  }
  func.func @transform_3(%arg0: i32) -> (i32, i32, i32, i32) {
    %c0_i32 = arith.constant 0 : i32
    %c0_i32_0 = arith.constant 0 : i32
    %c0_i32_1 = arith.constant 0 : i32
    %c0_i32_2 = arith.constant 0 : i32
    return %arg0, %c0_i32, %c0_i32_0, %c0_i32_1 : i32, i32, i32, i32
  }
  func.func @transform_4(%arg0: i32) -> (i32, i32, i32) {
    %c0_i32 = arith.constant 0 : i32
    %c0_i32_0 = arith.constant 0 : i32
    %c0_i32_1 = arith.constant 0 : i32
    return %arg0, %c0_i32, %c0_i32_0 : i32, i32, i32
  }
}

</mosaic_0001>

<bundles_post_ra>
// kernel: tpu_custom_call.1
= control target key start
LH: loop header
LB: loop body
LE: loop exit
PB: predicated region body
PF: predicated region fallthrough
CT: control target
= control target key end

     0   :  { %s2787_s0 = inlined_call_operand.hbm [shape: f32[2,4,16,16], index: 0, kind: input, shape index: {}]   ;;  %s2788_s1 = inlined_call_operand.hbm [shape: f32[36], index: 1, kind: input, shape index: {}]   ;;  %s2789_s2 = inlined_call_operand.vmem [shape: f32[32], index: 2, kind: input, shape index: {}]   ;;  %s2790_s3 = inlined_call_operand.hbm [shape: f32[2,8,16,16], index: 3, kind: output, shape index: {0}]   ;;  %s2791_s4 = inlined_call_operand.vmem [shape: f32[2,8,2], index: 4, kind: output, shape index: {1}]  }
   0x1   :  { %2799 = sst [smem:[#allocation22_spill]] %s2787_s0 }
   0x2   :  { %2800 = sst [smem:[#allocation23_spill]] %s2788_s1 }
   0x3   :  { %2801 = sst [smem:[#allocation24_spill]] %s2789_s2 }
   0x4   :  { %10 = vsyncpa [#allocation4], 0 }
   0x5   :  { %12 = vsyncpa [#allocation4 + $0x1], 0 }
   0x6   :  { %13 = vsyncpa [#allocation6], 0 }
   0x7   :  { %14 = vsyncpa [#allocation7], 0 }
   0x8   :  { %15 = vsyncpa [#allocation5], 0 }
   0x9   :  { %17 = vsyncpa [#allocation5 + $0x1], 0  ;;  %s1939_s15 = smov 0   ;;  %s1941_s16 = smov 0  }
   0xa   :  { %s1943_s17 = smov 0   ;;  %s1945_s18 = smov 0  }
   0xb LB: > { %2802 = sst [smem:[#allocation15_spill]] %s1891_s15  ;;  %s1960_s19 = sadd.s32 4294967295, %s1903_s18   ;;  %s1903_s18 = sphi %s1945_s18, %s2822_s18   ;;  %s1899_s17 = sphi %s1943_s17, %s2825_s17   ;;  %s1895_s16 = sphi %s1941_s16, %s2824_s16   ;;  %s1891_s15 = sphi %s1939_s15, %s2823_s15  }
   0xc   : > { %2803 = sst [smem:[#allocation16_spill]] %s1895_s16  ;;  %s1562_s20 = sadd.s32 4294967294, %s1903_s18  }
   0xd   : > { %2804 = sst [smem:[#allocation17_spill]] %s1899_s17  ;;  %s1964_s21 = sadd.s32 1, %s1903_s18  }
   0xe   : > { %2805 = sst [smem:[#allocation18_spill]] %s1903_s18  ;;  %s30_s22 = sadd.s32 1, %s1899_s17 }
   0xf   : > { %2806 = sst [smem:[#allocation19_spill]] %s1964_s21  ;;  %s27_s23 = ssub.s32 %s1903_s18, %s1964_s21 }
  0x10   : > { %p37_p0 = scmp.ne.s32.totalorder %s1899_s17, %s1895_s16  ;;  %p28_p1 = scmp.eq.s32.totalorder %s27_s23, 0 }
  0x11   : > { %p38_p2 = scmp.eq.s32.totalorder %s1903_s18, 0  ;;  %p43_p3 = scmp.ne.s32.totalorder %s1895_s16, %s1891_s15 }
  0x12   : > { %p44_p4 = scmp.eq.s32.totalorder %s1960_s19, 0  ;;  %p109_p7 = scmp.eq.s32.totalorder %s1960_s19, 1 }
  0x13   : > { %s1976_s24 = scalar_select %p28_p1, %s1899_s17, %s30_s22  }
  0x14   : > { %p1978_p5 = por %p38_p2, %p37_p0  ;;  %p1984_p6 = por %p44_p4, %p43_p3 }
  0x15   : > { %2807 = sst [smem:[#allocation20_spill]] %s1976_s24  ;;  %p115_p8 = scmp.eq.s32.totalorder %s1562_s20, 1 }
  0x16   : > { %p1563_p9 = scmp.ge.s32.totalorder %s1903_s18, 1  ;;  %p148_p10 = scmp.lt.s32.totalorder %s1903_s18, 3 }
  0x17   : > { %p1991_p11 = por %p109_p7, %p37_p0  ;;  %p1995_p12 = por %p115_p8, %p43_p3 }
  0x18   : > { %p1999_p13 = pnand %p1563_p9, %p148_p10  ;;  %s2814_s1 = sld [smem:[#allocation23_spill]] }
  0x19   : > { %s2811_s28 = scalar_select %p1995_p12, 1, 0 }
  0x1a   : > { %p1707_p1 = pneg %p1999_p13  ;;  %p1724_p2 = scmp.lt.s32.totalorder %s1903_s18, 2 }
  0x1b   : > { %2812 = sst [smem:[#allocation21_spill]] %s2811_s28  ;;  %s1905_s11 = smov [#allocation8]  }
  0x1c   : > { %p1708_p3 = pnand %p1707_p1, %p44_p4  ;;  %s2815_s2 = sld [smem:[#allocation24_spill]] }
  0x1d   : > { %p2017_p7 = pnand %p1724_p2, %p1978_p5  ;;  %s181_s12 = sand.u32 1, %s1899_s17  }
  0x1e   : > { %s160_s6 = sshll.u32 %s2814_s1, 4  ;;  %s1906_s13 = smov [#allocation9]   ;;  %s161_s6 = int_to_ptr.hbm [resolvable:$true] %s160_s6 }
  0x1f   : > { %1710 = dma.hbm_to_smem (!%p1708_p3), %s161_s6, 16, %s1905_s11, [#allocation6]  }
  0x20   : > { %s1567_s14 = sshll.u32 %s181_s12, 6  ;;  %s1661_s20 = sshll.u32 %s1903_s18, 6 }
  0x21   : > { %s2817_s0 = sld [smem:[#allocation22_spill]]  ;;  %s185_s5 = scalar_lea.vmem [#allocation3], %s1567_s14 }
  0x22   : > { %s170_s9 = sshll.u32 %s2815_s2, 4  ;;  %s193_s7 = sshll.u32 %s185_s5, 4  ;;  %s171_s9 = int_to_ptr.vmem [resolvable:$true] %s170_s9  ;;  %s194_s7 = int_to_ptr.vmem [resolvable:$true] %s193_s7 }
  0x23   : > { %1713 = dma.vmem_to_smem (!%p1708_p3), %s171_s9, 16, %s1906_s13, [#allocation7]  }
  0x24   : > { %s182_s8 = scalar_lea.sflag [#allocation4], %s181_s12  ;;  %p1803_p8 = pneg %p2017_p7 }
  0x27   : > { %s190_s30 = scalar_lea.hbm %s2817_s0, %s1661_s20  ;;  %s1806_s11 = scalar_lea.hbm %s2817_s0, 128 }
  0x28   : > { %s191_s25 = sshll.u32 %s190_s30, 4  ;;  %s192_s25 = int_to_ptr.hbm [resolvable:$true] %s191_s25 }
  0x29   : > { %s1799_s1 = sshra.s32 %s192_s25, 4  ;;  %s1800_s1 = int_to_ptr.hbm [resolvable:$true] %s1799_s1 }
  0x2a   : > { %s1801_s2 = scalar_lea.hbm %s1800_s1, 64  ;;  %p1807_p1 = scmp.lt.s32.totalorder %s1800_s1, %s2817_s0 }
  0x2b   : > { %p1802_p5 = scmp.ne.s32.totalorder %s1800_s1, %s1801_s2  ;;  %p1808_p2 = scmp.lt.s32.totalorder %s1806_s11, %s1801_s2 }
  0x2d   : > { %p1804_p9 = pnand %p1803_p8, %p1802_p5  ;;  %p1809_p3 = por %p1808_p2, %p1807_p1 }
  0x2f   : > { %p1805_p10 = pneg %p1804_p9 }
  0x31   : > { %p1810_p0 = pnand %p1809_p3, %p1805_p10 }
  0x33   : > { %1813 = shalt.err (!%p1810_p0)
}
  0x34   : > { %s1907_s12 = smov 128   ;;  %s1908_s14 = smov 8  }
  0x35   : > { %1717 = dma.hbm_to_vmem [thread:$0]  (!%p2017_p7), %s192_s25, 1024, %s194_s7, %s182_s8, %s1907_s12, %s1907_s12, %s1908_s14  }
  0x36   : > { %205 = sbr.rel (%p1999_p13) target bundleno = 552 (0x228), region = 32  ;;  %s2039_s22 = sand.u32 (!%p1999_p13), 1, %s1895_s16  }
  0x37   : > { %s1571_s23 = sshll.u32 (!%p1999_p13), %s2039_s22, 6  ;;  %s208_s1 = scalar_lea.sflag (!%p1999_p13), [#allocation4], %s2039_s22 }
  0x38   : > { %s2043_s2 = scalar_lea.vmem (!%p1999_p13), [#allocation3], %s1571_s23 }
  0x3b   : > { %1874 = dma.done.wait (%p1984_p6), %s208_s1, 1024  }
  0x3c   : > { %1876 = vsyncadd (%p1984_p6), %s208_s1, 4294966272 }
  0x3d   : > { %1878 = dma.done.wait (%p44_p4), [#allocation6], 16  }
  0x3e   : > { %1880 = vsyncadd (%p44_p4), [#allocation6], 4294967280 }
  0x3f   : > { %1882 = dma.done.wait (%p44_p4), [#allocation7], 16  }
  0x40   : > { %1884 = vsyncadd (%p44_p4), [#allocation7], 4294967280 }
  0x41   : > { %227 = sfence }
  0x42   : > { %v267_v0 = vld [vmem:[%s2043_s2 + $0x10] sm:$0xff]  ;;  %s1576_s26 = sld [smem:[#allocation8 + $0x1]]  ;;  %v265_v1 = vld [vmem:[%s2043_s2] sm:$0xff]  ;;  %v268_v5 = vld [vmem:[%s2043_s2 + $0x18] sm:$0x3f]  ;;  %s1909_s30 = smov 2  }
  0x43   : > { %s283_s29 = sld [smem:[#allocation8]]  ;;  %v2059_v2 = vmax.f32 %v267_v0, 0.0  ;;  %v269_v3 = vld [vmem:[%s2043_s2 + $0x20] sm:$0xff]  ;;  %v2062_v4 = vmax.f32 %v265_v1, 0.0  ;;  %v266_v9 = vld [vmem:[%s2043_s2 + $0x8] sm:$0x3f] }
  0x44   : > { %s1577_s10 = sld [smem:[#allocation8 + $0x2]]  ;;  %v2066_v8 = vmax.f32 %v269_v3, 0.0  ;;  %v276_v11 = vmax.f32 %v268_v5, 0.0  ;;  %v270_v13 = vld [vmem:[%s2043_s2 + $0x28] sm:$0x3f]  ;;  %v274_v15 = vmax.f32 %v266_v9, 0.0 }
  0x45   : > { %s1578_s5 = sld [smem:[#allocation8 + $0x3]]  ;;  %v278_v18 = vmax.f32 %v270_v13, 0.0  ;;  %v272_v19 = vld [vmem:[%s2043_s2 + $0x38] sm:$0x3f]  ;;  %v271_v21 = vld [vmem:[%s2043_s2 + $0x30] sm:$0xff]  ;;  %s1910_s6 = smov 126  }
  0x46   : > { %s1583_s7 = sld [smem:[#allocation8 + $0x8]]  ;;  %v280_v22 = vmax.f32 %v272_v19, 0.0  ;;  %v2079_v25 = vmax.f32 %v271_v21, 0.0  ;;  %v416_v28 = vld [vmem:[%s2043_s2 + $0x8] sm:$0x3f]  ;;  %v508_v51 = vld [vmem:[%s2043_s2 + $0x18] sm:$0xff] }
  0x47   : > { %s1584_s25 = sld [smem:[#allocation8 + $0x9]]  ;;  %v418_v32 = vld [vmem:[%s2043_s2 + $0x18] sm:$0x3f]  ;;  %v424_v33 = vmax.f32 %v416_v28, 0.0  ;;  %v420_v36 = vld [vmem:[%s2043_s2 + $0x28] sm:$0x3f] }
  0x48   : > { %v305_v6 = vstv %s1576_s26  ;;  %s1585_s8 = sld [smem:[#allocation8 + $0xa]]  ;;  %v426_v35 = vmax.f32 %v418_v32, 0.0  ;;  %v428_v38 = vmax.f32 %v420_v36, 0.0  ;;  %v422_v43 = vld [vmem:[%s2043_s2 + $0x38] sm:$0x3f]  ;;  %v506_v47 = vld [vmem:[%s2043_s2 + $0x8] sm:$0xff] }
  0x49   : > { %v306_v7 = vmul.f32 %v305_v6, %v2059_v2  ;;  %v284_v10 = vstv %s283_s29  ;;  %v307_v17 = vmul.f32 %v305_v6, %v276_v11  ;;  %s1586_s9 = sld [smem:[#allocation8 + $0xb]]  ;;  %v430_v48 = vmax.f32 %v422_v43, 0.0  ;;  %v510_v58 = vld [vmem:[%s2043_s2 + $0x28] sm:$0xff]  ;;  %v512_v62 = vld [vmem:[%s2043_s2 + $0x38] sm:$0xff] }
  0x4a   : > { %v285_v12 = vmul.f32 %v284_v10, %v2062_v4  ;;  %v324_v14 = vstv %s1577_s10  ;;  %v286_v20 = vmul.f32 %v284_v10, %v274_v15  ;;  %s1587_s11 = sld [smem:[#allocation8 + $0xc]]  ;;  %v2102_v50 = vmax.f32 %v506_v47, 0.0  ;;  %v739_v21 = vld [vmem:[%s2043_s2 + $0x12] sm:$0xff] }
  0x4b   : > { %310 = vrot.lane.b32.xlu1 %v306_v7, %s1909_s30  ;;  %v325_v16 = vmul.f32 %v324_v14, %v2066_v8  ;;  %v326_v23 = vmul.f32 %v324_v14, %v278_v18  ;;  %v343_v24 = vstv %s1578_s5  ;;  %s1588_s13 = sld [smem:[#allocation8 + $0xd]]  ;;  %v2106_v53 = vmax.f32 %v508_v51, 0.0 }
  0x4c   : > { %289 = vrot.lane.b32.xlu0 %v285_v12, %s1909_s30  ;;  %v345_v26 = vmul.f32 %v343_v24, %v280_v22  ;;  %v344_v27 = vmul.f32 %v343_v24, %v2079_v25  ;;  %v434_v29 = vstv %s1583_s7  ;;  %s1589_s20 = sld [smem:[#allocation8 + $0xe]]  ;;  %v2118_v63 = vmax.f32 %v510_v58, 0.0 }
  0x4d   : > { %329 = vrot.lane.b32.xlu2 %v325_v16, %s1909_s30  ;;  %v435_v30 = vmul.f32 %v434_v29, %v2062_v4  ;;  %v454_v31 = vstv %s1584_s25  ;;  %v436_v37 = vmul.f32 %v434_v29, %v424_v33  ;;  %s1590_s12 = sld [smem:[#allocation8 + $0xf]]  ;;  %v2122_v1 = vmax.f32 %v512_v62, 0.0  ;;  %v740_v29 = vld [vmem:[%s2043_s2 + $0x1a] sm:$0x3f]  ;;  %v742_v33 = vld [vmem:[%s2043_s2 + $0x2a] sm:$0x3f] }
  0x4e   : > { %v455_v34 = vmul.f32 %v454_v31, %v2059_v2  ;;  %v456_v39 = vmul.f32 %v454_v31, %v426_v35  ;;  %v472_v40 = vstv %s1585_s8  ;;  %s1595_s14 = sld [smem:[#allocation8 + $0x14]]  ;;  %vm256_vm0 = vcmask 130048   ;;  %v741_v35 = vld [vmem:[%s2043_s2 + $0x22] sm:$0xff] }
  0x4f   : > { %v474_v41 = vmul.f32 %v472_v40, %v428_v38  ;;  %v473_v42 = vmul.f32 %v472_v40, %v2066_v8  ;;  %v490_v44 = vstv %s1586_s9  ;;  %s1596_s23 = sld [smem:[#allocation8 + $0x15]]  ;;  %v1911_v18 = vmov 0.0   ;;  %v363_v62 = vld [vmem:[%s2043_s2 + $0x28] sm:$0x3f] }
  0x50   : > { %v491_v45 = vmul.f32 %v490_v44, %v2079_v25  ;;  %v524_v46 = vstv %s1587_s11  ;;  %v492_v52 = vmul.f32 %v490_v44, %v430_v48  ;;  %s1597_s1 = sld [smem:[#allocation8 + $0x16]]  ;;  %261 = vst.msk [vmem:[#allocation2 + $0x20] sm:$0xff] %vm256_vm0, %v1911_v18  ;;  %v748_v32 = vmax.f32 %v740_v29, 0.0  ;;  %v888_v29 = vld [vmem:[%s2043_s2 + $0x3a] sm:$0x3f] }
  0x51   : > { %v525_v49 = vmul.f32 %v524_v46, %v2062_v4  ;;  %v526_v54 = vmul.f32 %v524_v46, %v2102_v50  ;;  %v542_v55 = vstv %s1588_s13  ;;  %s1598_s26 = sld [smem:[#allocation8 + $0x17]]  ;;  %262 = vst.msk [vmem:[#allocation2 + $0x28] sm:$0xff] %vm256_vm0, %v1911_v18  ;;  %v750_v36 = vmax.f32 %v742_v33, 0.0  ;;  %v744_v46 = vld [vmem:[%s2043_s2 + $0x3a] sm:$0x3f] }
  0x52   : > { %v544_v56 = vmul.f32 %v542_v55, %v2106_v53  ;;  %v543_v57 = vmul.f32 %v542_v55, %v2059_v2  ;;  %v560_v59 = vstv %s1589_s20  ;;  %s2137_s29 = sld [smem:[#allocation8 + $0x18]]  ;;  %257 = vst.msk [vmem:[#allocation2] sm:$0xff] %vm256_vm0, %v1911_v18  ;;  %v2179_v40 = vmax.f32 %v741_v35, 0.0  ;;  %v882_v55 = vld [vmem:[%s2043_s2 + $0xa] sm:$0x3f] }
  0x53   : > { %312 = vrot.lane.b32.xlu1 %v307_v17, %s1909_s30  ;;  %v561_v60 = vmul.f32 %v560_v59, %v2066_v8  ;;  %v578_v61 = vstv %s1590_s12  ;;  %v562_v3 = vmul.f32 %v560_v59, %v2118_v63  ;;  %s2141_s10 = sld [smem:[#allocation8 + $0x19]]  ;;  %v737_v17 = vld [vmem:[%s2043_s2 + $0x2] sm:$0xff]  ;;  %258 = vst.msk [vmem:[#allocation2 + $0x8] sm:$0xff] %vm256_vm0, %v1911_v18  ;;  %vm297_vm1 = vcmask 130064   ;;  %v884_v59 = vld [vmem:[%s2043_s2 + $0x1a] sm:$0x3f] }
  0x54   : > { %291 = vrot.lane.b32.xlu0 %v286_v20, %s1909_s30  ;;  %v579_v0 = vmul.f32 %v578_v61, %v2079_v25  ;;  %v580_v5 = vmul.f32 %v578_v61, %v2122_v1  ;;  %v668_v6 = vstv %s1595_s14  ;;  %v2148_v20 = vmax.f32 %v737_v17, 0.0  ;;  %259 = vst.msk [vmem:[#allocation2 + $0x10] sm:$0xff] %vm256_vm0, %v1911_v18  ;;  %s1601_s5 = sld [smem:[#allocation8 + $0x1a]] }
  0x55   : > { %331 = vrot.lane.b32.xlu2 %v326_v23, %s1909_s30  ;;  %v670_v7 = vmul.f32 %v668_v6, %v2102_v50  ;;  %v669_v9 = vmul.f32 %v668_v6, %v2062_v4  ;;  %v686_v10 = vstv %s1596_s23  ;;  %v738_v23 = vld [vmem:[%s2043_s2 + $0xa] sm:$0x3f]  ;;  %260 = vst.msk [vmem:[#allocation2 + $0x18] sm:$0xff] %vm256_vm0, %v1911_v18  ;;  %s2172_s7 = sld [smem:[#allocation8 + $0x1b]]  ;;  %v890_v58 = vmax.f32 %v882_v55, 0.0 }
  0x56   : > { %v687_v11 = vmul.f32 %v686_v10, %v2059_v2  ;;  %v704_v12 = vstv %s1597_s1  ;;  %v688_v14 = vmul.f32 %v686_v10, %v2106_v53  ;;  %263 = vst.msk [vmem:[#allocation2 + $0x30] sm:$0xff] %vm256_vm0, %v1911_v18  ;;  %s2175_s25 = sld [smem:[#allocation8 + $0x20]]  ;;  %vm299_vm2 = vcmask 128016  }
  0x57   : > { %v705_v13 = vmul.f32 %v704_v12, %v2066_v8  ;;  %v706_v15 = vmul.f32 %v704_v12, %v2118_v63  ;;  %v722_v16 = vstv %s1598_s26  ;;  %264 = vst.msk [vmem:[#allocation2 + $0x38] sm:$0xff] %vm256_vm0, %v1911_v18  ;;  %s2181_s8 = sld [smem:[#allocation8 + $0x6]]  ;;  %v371_v10 = vmax.f32 %v363_v62, 0.0 }
  0x58   : > { %v724_v19 = vmul.f32 %v722_v16, %v2122_v1  ;;  %v723_v22 = vmul.f32 %v722_v16, %v2079_v25  ;;  %v756_v24 = vstv %s2137_s29  ;;  %s2193_s9 = sld [smem:[#allocation8 + $0x21]]  ;;  %v886_v16 = vld [vmem:[%s2043_s2 + $0x2a] sm:$0x3f]  ;;  %vm383_vm3 = vcmask 128000  }
  0x59   : > { %v774_v28 = vstv %s2141_s10  ;;  %s2203_s11 = sld [smem:[#allocation8 + $0x22]]  ;;  %v896_v33 = vmax.f32 %v888_v29, 0.0  ;;  %vm447_vm4 = vcmask 113664   ;;  %vm449_vm5 = vcmask 111616  }
  0x5a   : > { %v792_v38 = vstv %s1601_s5  ;;  %s2208_s13 = sld [smem:[#allocation8 + $0x23]] }
  0x5b   : > { %350 = vrot.lane.b32.xlu1 %v345_v26, %s1909_s30  ;;  %v2159_v26 = vmax.f32 %v739_v21, 0.0  ;;  %v793_v44 = vmul.f32 %v792_v38, %v2179_v40  ;;  %v810_v47 = vstv %s2172_s7  ;;  %s2214_s20 = sld [smem:[#allocation8 + $0x5]] }
  0x5c   : > { %348 = vrot.lane.b32.xlu0 %v344_v27, %s1909_s30  ;;  %v757_v27 = vmul.f32 %v756_v24, %v2148_v20  ;;  %v900_v51 = vstv %s2175_s25  ;;  %v302_v18 = vld [vmem:[#allocation2 + $0x12] sm:$0xff]  ;;  %s2245_s12 = sld [smem:[#allocation8 + $0x7]] }
  0x5d   : > { %439 = vrot.lane.b32.xlu2 %v435_v30, %s1910_s6  ;;  %v746_v30 = vmax.f32 %v738_v23, 0.0  ;;  %v775_v31 = vmul.f32 %v774_v28, %v2159_v26  ;;  %v902_v6 = vmul.f32 %v900_v51, %v890_v58  ;;  %s2266_s14 = sld [smem:[#allocation8 + $0x12]] }
  0x5e   : > { %s2271_s23 = sld [smem:[#allocation8 + $0x11]] }
  0x5f   : > { %v936_v17 = vstv %s2203_s11  ;;  %s2278_s1 = sld [smem:[#allocation8 + $0x13]] }
  0x60   : > { %v937_v21 = vmul.f32 %v936_v17, %v2179_v40  ;;  %v954_v23 = vstv %s2208_s13  ;;  %s2303_s26 = sld [smem:[#allocation8 + $0x1c]] }
  0x61   : > { %s2309_s29 = sld [smem:[#allocation8 + $0x1d]] }
  0x62   : > { %s2316_s10 = sld [smem:[#allocation8 + $0x1f]] }
  0x63   : > { %459 = vrot.lane.b32.xlu1 %v455_v34, %s1910_s6  ;;  %v758_v34 = vmul.f32 %v756_v24, %v746_v30  ;;  %s2319_s5 = sld [smem:[#allocation8 + $0x1e]] }
  0x64   : > { %441 = vrot.lane.b32.xlu0 %v436_v37, %s1910_s6  ;;  %v776_v37 = vmul.f32 %v774_v28, %v748_v32  ;;  %v894_v28 = vmax.f32 %v886_v16, 0.0  ;;  %s2321_s7 = sld [smem:[#allocation9 + $0x10]] }
  0x65   : > { %461 = vrot.lane.b32.xlu2 %v456_v39, %s1910_s6  ;;  %v743_v39 = vld [vmem:[%s2043_s2 + $0x32] sm:$0xff]  ;;  %s2324_s25 = sld [smem:[#allocation9 + $0x4]] }
  0x66   : > { %v2184_v43 = vmax.f32 %v743_v39, 0.0  ;;  %v938_v35 = vmul.f32 %v936_v17, %v894_v28  ;;  %s2333_s11 = sld [smem:[#allocation9 + $0x8]] }
  0x67   : > { %s2336_s13 = sld [smem:[#allocation9 + $0x18]] }
  0x68   : > { %v955_v32 = vmul.f32 %v954_v23, %v2184_v43  ;;  %s2369_s0 = sld [smem:[#allocation9 + $0x3]] }
  0x69   : > { %s2372_s24 = sld [smem:[#allocation9 + $0xf]] }
  0x6a   : > { %s2378_s17 = sld [smem:[#allocation9 + $0xa]] }
  0x6b   : > { %479 = vrot.lane.b32.xlu1 %v474_v41, %s1910_s6  ;;  %v794_v41 = vmul.f32 %v792_v38, %v750_v36  ;;  %v388_v36 = vstv %s2214_s20  ;;  %v303_v38 = vld [vmem:[#allocation2 + $0x1a] sm:$0x3f]  ;;  %s2338_s20 = sld [smem:[#allocation9 + $0x11]] }
  0x6c   : > { %477 = vrot.lane.b32.xlu0 %v473_v42, %s1910_s6  ;;  %v321_v42 = vld [vmem:[#allocation2 + $0x22] sm:$0xff]  ;;  %s2382_s16 = sld [smem:[#allocation9 + $0xb]] }
  0x6d   : > { %495 = vrot.lane.b32.xlu2 %v491_v45, %s1910_s6  ;;  %s2384_s21 = sld [smem:[#allocation9 + $0x19]] }
  0x6e   : > { %s2387_s18 = sld [smem:[#allocation9 + $0x14]] }
  0x6f   : > { %s2393_s28 = sld [smem:[#allocation9 + $0x15]] }
  0x70   : > { %s2395_s15 = sld [smem:[#allocation9 + $0x1b]] }
  0x73   : > { %529 = vrot.lane.b32.xlu1 %v525_v49, %s1909_s30  ;;  %v811_v49 = vmul.f32 %v810_v47, %v2184_v43 }
  0x74   : > { %497 = vrot.lane.b32.xlu0 %v492_v52, %s1910_s6  ;;  %v752_v52 = vmax.f32 %v744_v46, 0.0  ;;  %v282_v46 = vld [vmem:[#allocation2 + $0xa] sm:$0x3f] }
  0x75   : > { %531 = vrot.lane.b32.xlu2 %v526_v54, %s1909_s30  ;;  %v398_v54 = vstv %s2181_s8  ;;  %s2327_s8 = sld [smem:[#allocation9]] }
  0x76   : > { %v812_v61 = vmul.f32 %v810_v47, %v752_v52 }
  0x7b   : > { %549 = vrot.lane.b32.xlu1 %v544_v56, %s1909_s30  ;;  %v901_v56 = vmul.f32 %v900_v51, %v2148_v20 }
  0x7c   : > { %547 = vrot.lane.b32.xlu0 %v543_v57, %s1909_s30  ;;  %v322_v57 = vld [vmem:[#allocation2 + $0x2a] sm:$0x3f] }
  0x7d   : > { %565 = vrot.lane.b32.xlu2 %v561_v60, %s1909_s30  ;;  %v399_v60 = vmul.f32 %v398_v54, %v2066_v8 }
  0x83   : > { %583 = vrot.lane.b32.xlu1 %v579_v0, %s1909_s30 }
  0x84   : > { %567 = vrot.lane.b32.xlu0 %v562_v3, %s1909_s30 }
  0x85   : > { %585 = vrot.lane.b32.xlu2 %v580_v5, %s1909_s30  ;;  %v892_v5 = vmax.f32 %v884_v59, 0.0 }
  0x8b   : > { %675 = vrot.lane.b32.xlu1 %v670_v7, %s1910_s6 }
  0x8c   : > { %673 = vrot.lane.b32.xlu0 %v669_v9, %s1910_s6  ;;  %v918_v9 = vstv %s2193_s9  ;;  %s2330_s9 = sld [smem:[#allocation9 + $0xc]] }
  0x8d   : > { %691 = vrot.lane.b32.xlu2 %v687_v11, %s1910_s6  ;;  %v920_v12 = vmul.f32 %v918_v9, %v892_v5  ;;  %v340_v5 = vld [vmem:[#allocation2 + $0x32] sm:$0xff] }
  0x93   : > { %709 = vrot.lane.b32.xlu1 %v705_v13, %s1910_s6  ;;  %v400_v13 = vmul.f32 %v398_v54, %v371_v10 }
  0x94   : > { %693 = vrot.lane.b32.xlu0 %v688_v14, %s1910_s6  ;;  %v919_v14 = vmul.f32 %v918_v9, %v2159_v26 }
  0x95   : > { %711 = vrot.lane.b32.xlu2 %v706_v15, %s1910_s6 }
  0x9b   : > { %729 = vrot.lane.b32.xlu1 %v724_v19, %s1910_s6 }
  0x9c   : > { %727 = vrot.lane.b32.xlu0 %v723_v22, %s1910_s6 }
  0x9d   : > { %761 = vrot.lane.b32.xlu2 %v757_v27, %s1909_s30  ;;  %v281_v27 = vld [vmem:[#allocation2 + $0x2] sm:$0xff] }
  0xa3   : > { %779 = vrot.lane.b32.xlu1 %v775_v31, %s1909_s30 }
  0xa4   : > { %763 = vrot.lane.b32.xlu0 %v758_v34, %s1909_s30 }
  0xa5   : > { %781 = vrot.lane.b32.xlu2 %v776_v37, %s1909_s30 }
  0xa7   : > { %v330_v45 = vpop.permute.xlu2 %329 }
  0xa8   : > { %v335_v48 = vadd.f32 %v330_v45, %v321_v42  ;;  %v389_v42 = vmul.f32 %v388_v36, %v2059_v2 }
  0xaa   : > { %337 = vst.msk [vmem:[#allocation2 + $0x22] sm:$0xff] %vm297_vm1, %v335_v48 }
  0xab   : > { %799 = vrot.lane.b32.xlu1 %v794_v41, %s1909_s30  ;;  %v956_v41 = vmul.f32 %v954_v23, %v896_v33 }
  0xac   : > { %797 = vrot.lane.b32.xlu0 %v793_v44, %s1909_s30  ;;  %v361_v44 = vld [vmem:[%s2043_s2 + $0x18] sm:$0x3f] }
  0xad   : > { %815 = vrot.lane.b32.xlu2 %v811_v49, %s1909_s30  ;;  %v359_v49 = vld [vmem:[%s2043_s2 + $0x8] sm:$0x3f]  ;;  %v369_v54 = vmax.f32 %v361_v44, 0.0 }
  0xae   : > { %v367_v59 = vmax.f32 %v359_v49, 0.0 }
  0xaf   : > { %v332_v0 = vpop.permute.xlu2 %331  ;;  %v390_v62 = vmul.f32 %v388_v36, %v369_v54 }
  0xb0   : > { %v336_v3 = vadd.f32 %v332_v0, %v322_v57  ;;  %v365_v0 = vld [vmem:[%s2043_s2 + $0x38] sm:$0x3f] }
  0xb1   : > { %v395_v7 = vld [vmem:[#allocation2 + $0x22] sm:$0xff] }
  0xb2   : > { %338 = vst.msk [vmem:[#allocation2 + $0x2a] sm:$0x3f] %vm299_vm2, %v336_v3  ;;  %v401_v11 = vadd.f32 %v399_v60, %v395_v7 }
  0xb3   : > { %905 = vrot.lane.b32.xlu1 %v901_v56, %s1910_s6 }
  0xb4   : > { %817 = vrot.lane.b32.xlu0 %v812_v61, %s1909_s30  ;;  %403 = vst.msk [vmem:[#allocation2 + $0x22] sm:$0xff] %vm256_vm0, %v401_v11  ;;  %s2221_s30 = sld [smem:[#allocation8 + $0x4]]  ;;  %v341_v61 = vld [vmem:[#allocation2 + $0x3a] sm:$0x3f] }
  0xb5   : > { %907 = vrot.lane.b32.xlu2 %v902_v6, %s1910_s6 }
  0xb7   : > { %v2216_v15 = vpop.permute.xlu2 %439 }
  0xb9   : > { %v396_v19 = vld [vmem:[#allocation2 + $0x2a] sm:$0x3f] }
  0xba   : > { %v402_v22 = vadd.f32 %v400_v13, %v396_v19  ;;  %v377_v39 = vstv %s2221_s30  ;;  %v408_v19 = vstv %s2245_s12  ;;  %s2341_s30 = sld [smem:[#allocation9 + $0x5]] }
  0xbb   : > { %925 = vrot.lane.b32.xlu1 %v920_v12, %s1910_s6  ;;  %v378_v48 = vmul.f32 %v377_v39, %v2062_v4  ;;  %v379_v6 = vmul.f32 %v377_v39, %v367_v59  ;;  %v373_v12 = vmax.f32 %v365_v0, 0.0  ;;  %s2343_s12 = sld [smem:[#allocation9 + $0x1]] }
  0xbc   : > { %923 = vrot.lane.b32.xlu0 %v919_v14, %s1910_s6  ;;  %404 = vst.msk [vmem:[#allocation2 + $0x2a] sm:$0x3f] %vm383_vm3, %v402_v22 }
  0xbd   : > { %v311_v24 = vpop.permute.xlu1 %310  ;;  %941 = vrot.lane.b32.xlu2 %v937_v21, %s1910_s6  ;;  %v410_v23 = vmul.f32 %v408_v19, %v373_v12 }
  0xbe   : > { %v316_v30 = vadd.f32 %v311_v24, %v302_v18  ;;  %v290_v31 = vpop.permute.xlu0 %289 }
  0xbf   : > { %v295_v34 = vadd.f32 %v290_v31, %v281_v27  ;;  %v2232_v37 = vpop.permute.xlu2 %461 }
  0xc0   : > { %318 = vst.msk [vmem:[#allocation2 + $0x12] sm:$0xff] %vm297_vm1, %v316_v30  ;;  %v409_v30 = vmul.f32 %v408_v19, %v2079_v25 }
  0xc1   : > { %298 = vst.msk [vmem:[#allocation2 + $0x2] sm:$0xff] %vm297_vm1, %v295_v34 }
  0xc3   : > { %959 = vrot.lane.b32.xlu1 %v955_v32, %s1910_s6  ;;  %v470_v36 = vld [vmem:[#allocation2 + $0x2a] sm:$0x3f] }
  0xc4   : > { %943 = vrot.lane.b32.xlu0 %v938_v35, %s1910_s6 }
  0xc5   : > { %v313_v45 = vpop.permute.xlu1 %312  ;;  %961 = vrot.lane.b32.xlu2 %v956_v41, %s1910_s6  ;;  %s1591_s6 = sld [smem:[#allocation8 + $0x10]] }
  0xc6   : > { %v317_v47 = vadd.f32 %v313_v45, %v303_v38  ;;  %v292_v51 = vpop.permute.xlu0 %291  ;;  %v469_v45 = vld [vmem:[#allocation2 + $0x22] sm:$0xff] }
  0xc7   : > { %v385_v52 = vld [vmem:[#allocation2 + $0x12] sm:$0xff]  ;;  %v296_v55 = vadd.f32 %v292_v51, %v282_v46  ;;  %v496_v58 = vpop.permute.xlu2 %495 }
  0xc8   : > { %319 = vst.msk [vmem:[#allocation2 + $0x1a] sm:$0x3f] %vm299_vm2, %v317_v47  ;;  %v391_v56 = vadd.f32 %v389_v42, %v385_v52  ;;  %v374_v57 = vld [vmem:[#allocation2 + $0x2] sm:$0xff] }
  0xc9   : > { %300 = vst.msk [vmem:[#allocation2 + $0xa] sm:$0x3f] %vm299_vm2, %v296_v55  ;;  %v380_v60 = vadd.f32 %v378_v48, %v374_v57 }
  0xca   : > { %393 = vst.msk [vmem:[#allocation2 + $0x12] sm:$0xff] %vm256_vm0, %v391_v56 }
  0xcb   : > { %382 = vst.msk [vmem:[#allocation2 + $0x2] sm:$0xff] %vm256_vm0, %v380_v60 }
  0xcd   : > { %v351_v3 = vpop.permute.xlu1 %350 }
  0xce   : > { %v355_v7 = vadd.f32 %v351_v3, %v341_v61  ;;  %v349_v10 = vpop.permute.xlu0 %348 }
  0xcf   : > { %v386_v9 = vld [vmem:[#allocation2 + $0x1a] sm:$0x3f]  ;;  %v354_v13 = vadd.f32 %v349_v10, %v340_v5  ;;  %v532_v16 = vpop.permute.xlu2 %531 }
  0xd0   : > { %v392_v11 = vadd.f32 %v390_v62, %v386_v9  ;;  %357 = vst.msk [vmem:[#allocation2 + $0x3a] sm:$0x3f] %vm299_vm2, %v355_v7  ;;  %v375_v14 = vld [vmem:[#allocation2 + $0xa] sm:$0x3f] }
  0xd1   : > { %v381_v17 = vadd.f32 %v379_v6, %v375_v14  ;;  %356 = vst.msk [vmem:[#allocation2 + $0x32] sm:$0xff] %vm297_vm1, %v354_v13  ;;  %v451_v21 = vld [vmem:[#allocation2 + $0x12] sm:$0xff]  ;;  %v632_v6 = vstv %s2266_s14  ;;  %s2351_s14 = sld [smem:[#allocation9 + $0x12]] }
  0xd2   : > { %394 = vst.msk [vmem:[#allocation2 + $0x1a] sm:$0x3f] %vm383_vm3, %v392_v11  ;;  %v431_v18 = vld [vmem:[#allocation2 + $0x2] sm:$0xff] }
  0xd3   : > { %384 = vst.msk [vmem:[#allocation2 + $0xa] sm:$0x3f] %vm383_vm3, %v381_v17  ;;  %v445_v22 = vadd.f32 %v2216_v15, %v431_v18  ;;  %v622_v18 = vstv %s2271_s23  ;;  %s2354_s23 = sld [smem:[#allocation9 + $0x6]] }
  0xd5   : > { %v460_v24 = vpop.permute.xlu1 %459  ;;  %448 = vst.msk [vmem:[#allocation2 + $0x2] sm:$0xff] %vm447_vm4, %v445_v22  ;;  %v624_v22 = vmul.f32 %v622_v18, %v2106_v53 }
  0xd6   : > { %v465_v27 = vadd.f32 %v460_v24, %v451_v21  ;;  %v442_v29 = vpop.permute.xlu0 %441 }
  0xd7   : > { %v406_v28 = vld [vmem:[#allocation2 + $0x3a] sm:$0x3f]  ;;  %v566_v38 = vpop.permute.xlu2 %565 }
  0xd8   : > { %v412_v31 = vadd.f32 %v410_v23, %v406_v28  ;;  %467 = vst.msk [vmem:[#allocation2 + $0x12] sm:$0xff] %vm447_vm4, %v465_v27  ;;  %v405_v34 = vld [vmem:[#allocation2 + $0x32] sm:$0xff]  ;;  %v642_v28 = vstv %s2278_s1  ;;  %s2356_s1 = sld [smem:[#allocation9 + $0x2]] }
  0xd9   : > { %v452_v32 = vld [vmem:[#allocation2 + $0x1a] sm:$0x3f]  ;;  %v411_v35 = vadd.f32 %v409_v30, %v405_v34  ;;  %v644_v53 = vmul.f32 %v642_v28, %v2122_v1 }
  0xda   : > { %414 = vst.msk [vmem:[#allocation2 + $0x3a] sm:$0x3f] %vm383_vm3, %v412_v31  ;;  %v466_v33 = vadd.f32 %v2232_v37, %v452_v32  ;;  %v432_v15 = vld [vmem:[#allocation2 + $0xa] sm:$0x3f] }
  0xdb   : > { %v446_v39 = vadd.f32 %v442_v29, %v432_v15  ;;  %413 = vst.msk [vmem:[#allocation2 + $0x32] sm:$0xff] %vm256_vm0, %v411_v35  ;;  %v623_v29 = vmul.f32 %v622_v18, %v2059_v2 }
  0xdc   : > { %468 = vst.msk [vmem:[#allocation2 + $0x1a] sm:$0x3f] %vm449_vm5, %v466_v33  ;;  %v521_v51 = vld [vmem:[#allocation2] sm:$0xff] }
  0xdd   : > { %v480_v41 = vpop.permute.xlu1 %479  ;;  %450 = vst.msk [vmem:[#allocation2 + $0xa] sm:$0x3f] %vm449_vm5, %v446_v39  ;;  %v643_v39 = vmul.f32 %v642_v28, %v2079_v25  ;;  %v826_v28 = vld [vmem:[%s2043_s2 + $0xa] sm:$0x3f] }
  0xde   : > { %v484_v42 = vadd.f32 %v480_v41, %v470_v36  ;;  %v478_v44 = vpop.permute.xlu0 %477 }
  0xdf   : > { %v483_v46 = vadd.f32 %v478_v44, %v469_v45  ;;  %v586_v54 = vpop.permute.xlu2 %585  ;;  %v539_v10 = vld [vmem:[#allocation2 + $0x10] sm:$0xff]  ;;  %v634_v45 = vmul.f32 %v632_v6, %v2118_v63 }
  0xe0   : > { %486 = vst.msk [vmem:[#allocation2 + $0x2a] sm:$0x3f] %vm449_vm5, %v484_v42 }
  0xe1   : > { %485 = vst.msk [vmem:[#allocation2 + $0x22] sm:$0xff] %vm447_vm4, %v483_v46  ;;  %v488_v52 = vld [vmem:[#allocation2 + $0x3a] sm:$0x3f] }
  0xe2   : > { %v487_v37 = vld [vmem:[#allocation2 + $0x32] sm:$0xff] }
  0xe3   : > { %v501_v47 = vadd.f32 %v496_v58, %v487_v37  ;;  %v612_v58 = vstv %s1591_s6  ;;  %v540_v3 = vld [vmem:[#allocation2 + $0x18] sm:$0xff]  ;;  %s2347_s6 = sld [smem:[#allocation9 + $0xd]] }
  0xe4   : > { %v522_v48 = vld [vmem:[#allocation2 + $0x8] sm:$0xff]  ;;  %v614_v62 = vmul.f32 %v612_v58, %v2102_v50  ;;  %v613_v5 = vmul.f32 %v612_v58, %v2062_v4  ;;  %v633_v50 = vmul.f32 %v632_v6, %v2066_v8 }
  0xe5   : > { %v530_v49 = vpop.permute.xlu1 %529  ;;  %v536_v55 = vadd.f32 %v532_v16, %v522_v48  ;;  %503 = vst.msk [vmem:[#allocation2 + $0x32] sm:$0xff] %vm447_vm4, %v501_v47 }
  0xe6   : > { %v535_v56 = vadd.f32 %v530_v49, %v521_v51  ;;  %v498_v57 = vpop.permute.xlu0 %497 }
  0xe7   : > { %538 = vst.msk [vmem:[#allocation2 + $0x8] sm:$0xff] %vm297_vm1, %v536_v55  ;;  %v502_v59 = vadd.f32 %v498_v57, %v488_v52  ;;  %v692_v11 = vpop.permute.xlu2 %691 }
  0xe8   : > { %537 = vst.msk [vmem:[#allocation2] sm:$0xff] %vm297_vm1, %v535_v56  ;;  %v557_v60 = vld [vmem:[#allocation2 + $0x20] sm:$0xff]  ;;  %v558_v31 = vld [vmem:[#allocation2 + $0x28] sm:$0xff] }
  0xe9   : > { %504 = vst.msk [vmem:[#allocation2 + $0x3a] sm:$0x3f] %vm449_vm5, %v502_v59  ;;  %v571_v61 = vadd.f32 %v566_v38, %v557_v60 }
  0xeb   : > { %573 = vst.msk [vmem:[#allocation2 + $0x20] sm:$0xff] %vm297_vm1, %v571_v61 }
  0xec   : > { %v575_v27 = vld [vmem:[#allocation2 + $0x30] sm:$0xff] }
  0xed   : > { %v550_v0 = vpop.permute.xlu1 %549 }
  0xee   : > { %v554_v7 = vadd.f32 %v550_v0, %v540_v3  ;;  %v548_v9 = vpop.permute.xlu0 %547  ;;  %v610_v12 = vld [vmem:[#allocation2 + $0x8] sm:$0xff] }
  0xef   : > { %v553_v13 = vadd.f32 %v548_v9, %v539_v10  ;;  %v616_v14 = vadd.f32 %v614_v62, %v610_v12  ;;  %v609_v16 = vld [vmem:[#allocation2] sm:$0xff]  ;;  %v712_v35 = vpop.permute.xlu2 %711 }
  0xf0   : > { %556 = vst.msk [vmem:[#allocation2 + $0x18] sm:$0xff] %vm297_vm1, %v554_v7  ;;  %v576_v17 = vld [vmem:[#allocation2 + $0x38] sm:$0xff]  ;;  %v615_v19 = vadd.f32 %v613_v5, %v609_v16  ;;  %v844_v7 = vstv %s2303_s26  ;;  %s2360_s26 = sld [smem:[#allocation9 + $0xe]] }
  0xf1   : > { %555 = vst.msk [vmem:[#allocation2 + $0x10] sm:$0xff] %vm297_vm1, %v553_v13  ;;  %v590_v4 = vadd.f32 %v586_v54, %v576_v17  ;;  %v845_v13 = vmul.f32 %v844_v7, %v2148_v20  ;;  %v854_v20 = vstv %s2309_s29  ;;  %s2363_s29 = sld [smem:[#allocation9 + $0x13]] }
  0xf2   : > { %618 = vst.msk [vmem:[#allocation2 + $0x8] sm:$0xff] %vm256_vm0, %v616_v14  ;;  %v629_v21 = vld [vmem:[#allocation2 + $0x20] sm:$0xff]  ;;  %v828_v14 = vld [vmem:[%s2043_s2 + $0x1a] sm:$0x3f] }
  0xf3   : > { %592 = vst.msk [vmem:[#allocation2 + $0x38] sm:$0xff] %vm297_vm1, %v590_v4  ;;  %v635_v23 = vadd.f32 %v633_v50, %v629_v21  ;;  %v836_v18 = vmax.f32 %v828_v14, 0.0 }
  0xf4   : > { %617 = vst.msk [vmem:[#allocation2] sm:$0xff] %vm256_vm0, %v615_v19 }
  0xf5   : > { %v584_v24 = vpop.permute.xlu1 %583  ;;  %637 = vst.msk [vmem:[#allocation2 + $0x20] sm:$0xff] %vm256_vm0, %v635_v23 }
  0xf6   : > { %v589_v8 = vadd.f32 %v584_v24, %v575_v27  ;;  %v568_v30 = vpop.permute.xlu0 %567 }
  0xf7   : > { %v620_v32 = vld [vmem:[#allocation2 + $0x18] sm:$0xff]  ;;  %v572_v33 = vadd.f32 %v568_v30, %v558_v31  ;;  %v762_v25 = vpop.permute.xlu2 %761 }
  0xf8   : > { %591 = vst.msk [vmem:[#allocation2 + $0x30] sm:$0xff] %vm297_vm1, %v589_v8  ;;  %v626_v34 = vadd.f32 %v624_v22, %v620_v32  ;;  %v619_v15 = vld [vmem:[#allocation2 + $0x10] sm:$0xff]  ;;  %v856_v8 = vmul.f32 %v854_v20, %v836_v18  ;;  %v834_v32 = vmax.f32 %v826_v28, 0.0  ;;  %v1089_v18 = vstv %s2333_s11 }
  0xf9   : > { %574 = vst.msk [vmem:[#allocation2 + $0x28] sm:$0xff] %vm297_vm1, %v572_v33  ;;  %v625_v36 = vadd.f32 %v623_v29, %v619_v15  ;;  %v666_v42 = vld [vmem:[#allocation2 + $0x8] sm:$0xff]  ;;  %v1148_v28 = vstv %s2347_s6 }
  0xfa   : > { %628 = vst.msk [vmem:[#allocation2 + $0x18] sm:$0xff] %vm256_vm0, %v626_v34  ;;  %v640_v38 = vld [vmem:[#allocation2 + $0x38] sm:$0xff] }
  0xfb   : > { %627 = vst.msk [vmem:[#allocation2 + $0x10] sm:$0xff] %vm256_vm0, %v625_v36  ;;  %v646_v2 = vadd.f32 %v644_v53, %v640_v38  ;;  %v665_v46 = vld [vmem:[#allocation2] sm:$0xff]  ;;  %v855_v53 = vmul.f32 %v854_v20, %v2159_v26  ;;  %v830_v36 = vld [vmem:[%s2043_s2 + $0x2a] sm:$0x3f]  ;;  %v874_v38 = vstv %s2316_s10  ;;  %s2366_s10 = sld [smem:[#allocation9 + $0x7]] }
  0xfc   : > { %v701_v55 = vld [vmem:[#allocation2 + $0x20] sm:$0xff] }
  0xfd   : > { %v676_v41 = vpop.permute.xlu1 %675  ;;  %648 = vst.msk [vmem:[#allocation2 + $0x38] sm:$0xff] %vm256_vm0, %v646_v2 }
  0xfe   : > { %v680_v44 = vadd.f32 %v676_v41, %v666_v42  ;;  %v674_v1 = vpop.permute.xlu0 %673 }
  0xff   : > { %v639_v37 = vld [vmem:[#allocation2 + $0x30] sm:$0xff]  ;;  %v679_v47 = vadd.f32 %v674_v1, %v665_v46  ;;  %v782_v6 = vpop.permute.xlu2 %781  ;;  %v838_v1 = vmax.f32 %v830_v36, 0.0  ;;  %v875_v46 = vmul.f32 %v874_v38, %v2184_v43  ;;  %v1313_v36 = vstv %s2384_s21 }
 0x100   : > { %682 = vst.msk [vmem:[#allocation2 + $0x8] sm:$0xff] %vm447_vm4, %v680_v44  ;;  %v645_v48 = vadd.f32 %v643_v39, %v639_v37  ;;  %v630_v49 = vld [vmem:[#allocation2 + $0x28] sm:$0xff]  ;;  %v846_v39 = vmul.f32 %v844_v7, %v834_v32  ;;  %v1154_v32 = vstv %s2360_s26 }
 0x101   : > { %681 = vst.msk [vmem:[#allocation2] sm:$0xff] %vm447_vm4, %v679_v47  ;;  %v636_v51 = vadd.f32 %v634_v45, %v630_v49  ;;  %v684_v59 = vld [vmem:[#allocation2 + $0x18] sm:$0xff]  ;;  %v864_v47 = vstv %s2319_s5  ;;  %s2374_s5 = sld [smem:[#allocation9 + $0x9]] }
 0x102   : > { %v683_v52 = vld [vmem:[#allocation2 + $0x10] sm:$0xff]  ;;  %647 = vst.msk [vmem:[#allocation2 + $0x30] sm:$0xff] %vm256_vm0, %v645_v48  ;;  %v866_v43 = vmul.f32 %v864_v47, %v838_v1  ;;  %v1105_v1 = vstv %s2382_s16  ;;  %s2620_s16 = sld [smem:[#allocation9 + $0x1c]] }
 0x103   : > { %v697_v54 = vadd.f32 %v692_v11, %v683_v52  ;;  %638 = vst.msk [vmem:[#allocation2 + $0x28] sm:$0xff] %vm256_vm0, %v636_v51 }
 0x104   : > { %v720_v5 = vld [vmem:[#allocation2 + $0x38] sm:$0xff] }
 0x105   : > { %v710_v63 = vpop.permute.xlu1 %709  ;;  %699 = vst.msk [vmem:[#allocation2 + $0x10] sm:$0xff] %vm447_vm4, %v697_v54 }
 0x106   : > { %v715_v56 = vadd.f32 %v710_v63, %v701_v55  ;;  %v694_v57 = vpop.permute.xlu0 %693  ;;  %v865_v55 = vmul.f32 %v864_v47, %v2179_v40 }
 0x107   : > { %v698_v60 = vadd.f32 %v694_v57, %v684_v59  ;;  %v754_v24 = vld [vmem:[#allocation2 + $0x8] sm:$0x3f]  ;;  %v816_v27 = vpop.permute.xlu2 %815 }
 0x108   : > { %717 = vst.msk [vmem:[#allocation2 + $0x20] sm:$0xff] %vm447_vm4, %v715_v56  ;;  %v753_v58 = vld [vmem:[#allocation2] sm:$0xff] }
 0x109   : > { %700 = vst.msk [vmem:[#allocation2 + $0x18] sm:$0xff] %vm447_vm4, %v698_v60  ;;  %v767_v61 = vadd.f32 %v762_v25, %v753_v58  ;;  %v719_v11 = vld [vmem:[#allocation2 + $0x30] sm:$0xff]  ;;  %v832_v60 = vld [vmem:[%s2043_s2 + $0x3a] sm:$0x3f]  ;;  %s2390_s2 = sld [smem:[#allocation9 + $0x1a]] }
 0x10a   : > { %v702_v62 = vld [vmem:[#allocation2 + $0x28] sm:$0xff] }
 0x10b   : > { %v716_v0 = vadd.f32 %v712_v35, %v702_v62  ;;  %769 = vst.msk [vmem:[#allocation2] sm:$0xff] %vm297_vm1, %v767_v61 }
 0x10c   : > { %v771_v21 = vld [vmem:[#allocation2 + $0x10] sm:$0xff] }
 0x10d   : > { %v730_v3 = vpop.permute.xlu1 %729  ;;  %718 = vst.msk [vmem:[#allocation2 + $0x28] sm:$0xff] %vm447_vm4, %v716_v0  ;;  %v840_v0 = vmax.f32 %v832_v60, 0.0 }
 0x10e   : > { %v734_v9 = vadd.f32 %v730_v3, %v720_v5  ;;  %v728_v10 = vpop.permute.xlu0 %727 }
 0x10f   : > { %v733_v12 = vadd.f32 %v728_v10, %v719_v11  ;;  %v789_v42 = vld [vmem:[#allocation2 + $0x20] sm:$0xff]  ;;  %v908_v54 = vpop.permute.xlu2 %907  ;;  %v876_v10 = vmul.f32 %v874_v38, %v840_v0  ;;  %v1199_v11 = vstv %s2321_s7  ;;  %s1574_s7 = sshll.u32 %s2039_s22, 7 }
 0x110   : > { %736 = vst.msk [vmem:[#allocation2 + $0x38] sm:$0xff] %vm447_vm4, %v734_v9  ;;  %v772_v16 = vld [vmem:[#allocation2 + $0x18] sm:$0x3f]  ;;  %s2530_s21 = scalar_lea.vmem [#allocation10], %s1574_s7 }
 0x111   : > { %735 = vst.msk [vmem:[#allocation2 + $0x30] sm:$0xff] %vm447_vm4, %v733_v12  ;;  %v786_v50 = vadd.f32 %v782_v6, %v772_v16  ;;  %v1034_v12 = vstv %s2324_s25  ;;  %s2555_s25 = sld [smem:[#allocation9 + $0x16]]  ;;  %s1435_s11 = sshll.u32 %s2530_s21, 4  ;;  %s1436_s11 = int_to_ptr.vmem [resolvable:$true] %s1435_s11 }
 0x112   : > { %v841_v17 = vld [vmem:[#allocation2] sm:$0xff] }
 0x113   : > { %788 = vst.msk [vmem:[#allocation2 + $0x18] sm:$0x3f] %vm299_vm2, %v786_v50  ;;  %v847_v19 = vadd.f32 %v845_v13, %v841_v17  ;;  %v978_v50 = vstv %s2327_s8  ;;  %v1144_v17 = vstv %s2330_s9 }
 0x114   : > { %v790_v35 = vld [vmem:[#allocation2 + $0x28] sm:$0x3f] }
 0x115   : > { %v780_v4 = vpop.permute.xlu1 %779  ;;  %849 = vst.msk [vmem:[#allocation2] sm:$0xff] %vm256_vm0, %v847_v19  ;;  %v1309_v19 = vstv %s2336_s13 }
 0x116   : > { %v785_v22 = vadd.f32 %v780_v4, %v771_v21  ;;  %v764_v23 = vpop.permute.xlu0 %763  ;;  %v1203_v4 = vstv %s2338_s20  ;;  %v1038_v21 = vstv %s2341_s30  ;;  %s1419_s20 = scalar_lea.sflag [#allocation5], %s2039_s22 }
 0x117   : > { %v768_v29 = vadd.f32 %v764_v23, %v754_v24  ;;  %v808_v57 = vld [vmem:[#allocation2 + $0x38] sm:$0x3f]  ;;  %v942_v16 = vpop.permute.xlu2 %941  ;;  %v1209_v24 = vstv %s2351_s14 }
 0x118   : > { %787 = vst.msk [vmem:[#allocation2 + $0x10] sm:$0xff] %vm297_vm1, %v785_v22  ;;  %v807_v30 = vld [vmem:[#allocation2 + $0x30] sm:$0xff]  ;;  %v982_v22 = vstv %s2343_s12 }
 0x119   : > { %770 = vst.msk [vmem:[#allocation2 + $0x8] sm:$0x3f] %vm299_vm2, %v768_v29  ;;  %v821_v31 = vadd.f32 %v816_v27, %v807_v30  ;;  %v1044_v27 = vstv %s2354_s23  ;;  %s1849_s23 = scalar_lea.hbm %s2790_s3, 256 }
 0x11a   : > { %v852_v33 = vld [vmem:[#allocation2 + $0x18] sm:$0x3f] }
 0x11b   : > { %v858_v34 = vadd.f32 %v856_v8, %v852_v33  ;;  %823 = vst.msk [vmem:[#allocation2 + $0x30] sm:$0xff] %vm297_vm1, %v821_v31  ;;  %v1093_v8 = vstv %s2374_s5  ;;  %v988_v31 = vstv %s2356_s1  ;;  %v1254_v33 = vstv %s2387_s18  ;;  %s2654_s18 = sld [smem:[#allocation9 + $0x1f]] }
 0x11c   : > { %v897_v25 = vld [vmem:[#allocation2] sm:$0xff] }
 0x11d   : > { %v800_v15 = vpop.permute.xlu1 %799  ;;  %860 = vst.msk [vmem:[#allocation2 + $0x18] sm:$0x3f] %vm383_vm3, %v858_v34 }
 0x11e   : > { %v804_v2 = vadd.f32 %v800_v15, %v790_v35  ;;  %v798_v41 = vpop.permute.xlu0 %797  ;;  %v1050_v15 = vstv %s2366_s10  ;;  %v1099_v35 = vstv %s2378_s17  ;;  %s2652_s17 = sld [smem:[#allocation9 + $0x1e]] }
 0x11f   : > { %v851_v44 = vld [vmem:[#allocation2 + $0x10] sm:$0xff]  ;;  %v803_v26 = vadd.f32 %v798_v41, %v789_v42  ;;  %v1319_v41 = vstv %s2390_s2 }
 0x120   : > { %806 = vst.msk [vmem:[#allocation2 + $0x28] sm:$0x3f] %vm299_vm2, %v804_v2  ;;  %v857_v45 = vadd.f32 %v855_v53, %v851_v44  ;;  %v842_v37 = vld [vmem:[#allocation2 + $0x8] sm:$0x3f]  ;;  %v1215_v53 = vstv %s2363_s29  ;;  %v994_v2 = vstv %s2369_s0  ;;  %s2588_s0 = sld [smem:[#allocation9 + $0x17]] }
 0x121   : > { %805 = vst.msk [vmem:[#allocation2 + $0x20] sm:$0xff] %vm297_vm1, %v803_v26  ;;  %v848_v48 = vadd.f32 %v846_v39, %v842_v37  ;;  %v1160_v39 = vstv %s2372_s24  ;;  %v1258_v37 = vstv %s2393_s28  ;;  %s1662_s24 = sshll.u32 %s1960_s19, 7 }
 0x122   : > { %859 = vst.msk [vmem:[#allocation2 + $0x10] sm:$0xff] %vm256_vm0, %v857_v45  ;;  %v871_v49 = vld [vmem:[#allocation2 + $0x30] sm:$0xff]  ;;  %s1434_s9 = scalar_lea.hbm %s2790_s3, %s1662_s24 }
 0x123   : > { %850 = vst.msk [vmem:[#allocation2 + $0x8] sm:$0x3f] %vm383_vm3, %v848_v48  ;;  %v877_v51 = vadd.f32 %v875_v46, %v871_v49  ;;  %v1325_v46 = vstv %s2395_s15  ;;  %s2628_s15 = sld [smem:[#allocation9 + $0x1d]]  ;;  %s1437_s13 = sshll.u32 %s1434_s9, 4  ;;  %s1438_s13 = int_to_ptr.hbm [resolvable:$true] %s1437_s13 }
 0x124   : > { %v916_v7 = vld [vmem:[#allocation2 + $0x18] sm:$0x3f]  ;;  %s1843_s30 = sshra.s32 %s1438_s13, 4  ;;  %s1844_s30 = int_to_ptr.hbm [resolvable:$true] %s1843_s30 }
 0x125   : > { %v906_v52 = vpop.permute.xlu1 %905  ;;  %879 = vst.msk [vmem:[#allocation2 + $0x30] sm:$0xff] %vm256_vm0, %v877_v51  ;;  %s1845_s12 = scalar_lea.hbm %s1844_s30, 128  ;;  %p1850_p0 = scmp.lt.s32.totalorder %s1844_s30, %s2790_s3 }
 0x126   : > { %v911_v63 = vadd.f32 %v906_v52, %v897_v25  ;;  %v818_v56 = vpop.permute.xlu0 %817  ;;  %p1846_p4 = scmp.ne.s32.totalorder %s1844_s30, %s1845_s12  ;;  %p1851_p7 = scmp.lt.s32.totalorder %s1849_s23, %s1845_s12 }
 0x127   : > { %v862_v59 = vld [vmem:[#allocation2 + $0x28] sm:$0x3f]  ;;  %v822_v58 = vadd.f32 %v818_v56, %v808_v57 }
 0x128   : > { %913 = vst.msk [vmem:[#allocation2] sm:$0xff] %vm447_vm4, %v911_v63  ;;  %v868_v61 = vadd.f32 %v866_v43, %v862_v59  ;;  %v861_v62 = vld [vmem:[#allocation2 + $0x20] sm:$0xff]  ;;  %p1847_p6 = pnand %p1846_p4, %p1991_p11  ;;  %p1852_p5 = por %p1851_p7, %p1850_p0 }
 0x129   : > { %824 = vst.msk [vmem:[#allocation2 + $0x38] sm:$0x3f] %vm299_vm2, %v822_v58  ;;  %v867_v40 = vadd.f32 %v865_v55, %v861_v62  ;;  %v915_v14 = vld [vmem:[#allocation2 + $0x10] sm:$0xff] }
 0x12a   : > { %v898_v3 = vld [vmem:[#allocation2 + $0x8] sm:$0x3f]  ;;  %870 = vst.msk [vmem:[#allocation2 + $0x28] sm:$0x3f] %vm383_vm3, %v868_v61  ;;  %v962_v61 = vpop.permute.xlu2 %961  ;;  %p1848_p13 = pneg %p1847_p6 }
 0x12b   : > { %v912_v5 = vadd.f32 %v908_v54, %v898_v3  ;;  %869 = vst.msk [vmem:[#allocation2 + $0x20] sm:$0xff] %vm256_vm0, %v867_v40 }
 0x12c   : > { %v951_v44 = vld [vmem:[#allocation2 + $0x30] sm:$0xff]  ;;  %p1853_p8 = pnand %p1852_p5, %p1848_p13 }
 0x12d   : > { %v926_v6 = vpop.permute.xlu1 %925  ;;  %914 = vst.msk [vmem:[#allocation2 + $0x8] sm:$0x3f] %vm449_vm5, %v912_v5 }
 0x12e   : > { %v930_v9 = vadd.f32 %v926_v6, %v916_v7  ;;  %v924_v13 = vpop.permute.xlu0 %923 }
 0x12f   : > { %v929_v20 = vadd.f32 %v924_v13, %v915_v14  ;;  %v2413_v30 = vld [vmem:[#allocation2] sm:$0xff] }
 0x130   : > { %932 = vst.msk [vmem:[#allocation2 + $0x18] sm:$0x3f] %vm449_vm5, %v930_v9  ;;  %v872_v23 = vld [vmem:[#allocation2 + $0x38] sm:$0x3f]  ;;  %v1200_v45 = vmul.f32 %v1199_v11, %v2413_v30  ;;  %v1035_v48 = vmul.f32 %v1034_v12, %v2413_v30  ;;  %v979_v49 = vmul.f32 %v978_v50, %v2413_v30  ;;  %v1145_v43 = vmul.f32 %v1144_v17, %v2413_v30 }
 0x131   : > { %931 = vst.msk [vmem:[#allocation2 + $0x10] sm:$0xff] %vm447_vm4, %v929_v20  ;;  %v878_v29 = vadd.f32 %v876_v10, %v872_v23  ;;  %v934_v52 = vld [vmem:[#allocation2 + $0x28] sm:$0x3f]  ;;  %v1090_v55 = vmul.f32 %v1089_v18, %v2413_v30  ;;  %v2442_v56 = vmul.f32 %v1309_v19, %v2413_v30 }
 0x132   : > { %v933_v34 = vld [vmem:[#allocation2 + $0x20] sm:$0xff] }
 0x133   : > { %v947_v38 = vadd.f32 %v942_v16, %v933_v34  ;;  %880 = vst.msk [vmem:[#allocation2 + $0x38] sm:$0x3f] %vm383_vm3, %v878_v29 }
 0x134   : > { %v2426_v26 = vld [vmem:[#allocation2 + $0x8] sm:$0xff] }
 0x135   : > { %v960_v42 = vpop.permute.xlu1 %959  ;;  %949 = vst.msk [vmem:[#allocation2 + $0x20] sm:$0xff] %vm447_vm4, %v947_v38  ;;  %v1201_v54 = vmul.f32 %v1199_v11, %v2426_v26  ;;  %v1036_v63 = vmul.f32 %v1034_v12, %v2426_v26  ;;  %v980_v40 = vmul.f32 %v978_v50, %v2426_v26  ;;  %v1146_v0 = vmul.f32 %v1144_v17, %v2426_v26 }
 0x136   : > { %v965_v47 = vadd.f32 %v960_v42, %v951_v44  ;;  %v944_v51 = vpop.permute.xlu0 %943  ;;  %v1091_v5 = vmul.f32 %v1089_v18, %v2426_v26  ;;  %v1311_v10 = vmul.f32 %v1309_v19, %v2426_v26 }
 0x137   : > { %v2436_v25 = vld [vmem:[#allocation2 + $0x18] sm:$0xff]  ;;  %v948_v57 = vadd.f32 %v944_v51, %v934_v52 }
 0x138   : > { %967 = vst.msk [vmem:[#allocation2 + $0x30] sm:$0xff] %vm447_vm4, %v965_v47  ;;  %v1205_v59 = vmul.f32 %v1203_v4, %v2436_v25  ;;  %v1040_v60 = vmul.f32 %v1038_v21, %v2436_v25  ;;  %v984_v58 = vmul.f32 %v982_v22, %v2436_v25  ;;  %v2448_v62 = vld [vmem:[#allocation2 + $0x10] sm:$0xff]  ;;  %v1150_v3 = vmul.f32 %v1148_v28, %v2436_v25 }
 0x139   : > { %950 = vst.msk [vmem:[#allocation2 + $0x28] sm:$0x3f] %vm449_vm5, %v948_v57  ;;  %v1204_v6 = vmul.f32 %v1203_v4, %v2448_v62  ;;  %v1039_v7 = vmul.f32 %v1038_v21, %v2448_v62  ;;  %v1095_v9 = vmul.f32 %v1093_v8, %v2436_v25  ;;  %v983_v12 = vmul.f32 %v982_v22, %v2448_v62 }
 0x13a   : > { %v952_v11 = vld [vmem:[#allocation2 + $0x38] sm:$0x3f]  ;;  %v1149_v13 = vmul.f32 %v1148_v28, %v2448_v62  ;;  %v1315_v14 = vmul.f32 %v1313_v36, %v2436_v25  ;;  %v2469_v16 = vmul.f32 %v1258_v37, %v2436_v25  ;;  %v1207_v17 = vadd.f32 %v1205_v59, %v1201_v54 }
 0x13b   : > { %v966_v50 = vadd.f32 %v962_v61, %v952_v11  ;;  %v1042_v18 = vadd.f32 %v1040_v60, %v1036_v63  ;;  %v986_v19 = vadd.f32 %v984_v58, %v980_v40  ;;  %v1206_v4 = vadd.f32 %v1204_v6, %v1200_v45 }
 0x13c   : > { %v2471_v20 = vld [vmem:[#allocation2 + $0x20] sm:$0xff]  ;;  %v1041_v21 = vadd.f32 %v1039_v7, %v1035_v48  ;;  %v1152_v22 = vadd.f32 %v1150_v3, %v1146_v0  ;;  %v1094_v23 = vmul.f32 %v1093_v8, %v2448_v62  ;;  %v985_v8 = vadd.f32 %v983_v12, %v979_v49 }
 0x13d   : > { %968 = vst.msk [vmem:[#allocation2 + $0x38] sm:$0x3f] %vm449_vm5, %v966_v50  ;;  %v1210_v28 = vmul.f32 %v1209_v24, %v2471_v20  ;;  %v1045_v29 = vmul.f32 %v1044_v27, %v2471_v20  ;;  %v989_v34 = vmul.f32 %v988_v31, %v2471_v20  ;;  %v1155_v38 = vmul.f32 %v1154_v32, %v2471_v20 }
 0x13e   : > { %v1151_v44 = vadd.f32 %v1149_v13, %v1145_v43  ;;  %v1100_v45 = vmul.f32 %v1099_v35, %v2471_v20  ;;  %v1314_v47 = vmul.f32 %v1313_v36, %v2448_v62  ;;  %v1317_v7 = vadd.f32 %v1315_v14, %v1311_v10 }
 0x13f   : > { %v2490_v42 = vld [vmem:[#allocation2 + $0x30] sm:$0xff]  ;;  %v1212_v48 = vadd.f32 %v1210_v28, %v1206_v4  ;;  %v1047_v52 = vadd.f32 %v1045_v29, %v1041_v21  ;;  %v991_v49 = vadd.f32 %v989_v34, %v985_v8 }
 0x140   : > { %v1216_v51 = vmul.f32 %v1215_v53, %v2490_v42  ;;  %v1051_v54 = vmul.f32 %v1050_v15, %v2490_v42  ;;  %v2504_v63 = vld [vmem:[#allocation2 + $0x28] sm:$0xff]  ;;  %v995_v43 = vmul.f32 %v994_v2, %v2490_v42  ;;  %v1157_v57 = vadd.f32 %v1155_v38, %v1151_v44 }
 0x141   : > { %v1161_v59 = vmul.f32 %v1160_v39, %v2490_v42  ;;  %v1211_v36 = vmul.f32 %v1209_v24, %v2504_v63  ;;  %v1046_v58 = vmul.f32 %v1044_v27, %v2504_v63  ;;  %v990_v40 = vmul.f32 %v988_v31, %v2504_v63 }
 0x142   : > { %v2515_v60 = vadd.f32 %v1216_v51, %v1212_v48  ;;  %v2520_v61 = vadd.f32 %v1051_v54, %v1047_v52  ;;  %v997_v0 = vadd.f32 %v995_v43, %v991_v49  ;;  %v1156_v3 = vmul.f32 %v1154_v32, %v2504_v63 }
 0x143   : > { %v2528_v6 = vadd.f32 %v1161_v59, %v1157_v57  ;;  %v1096_v24 = vadd.f32 %v1094_v23, %v1090_v55  ;;  %v1097_v27 = vadd.f32 %v1095_v9, %v1091_v5  ;;  %v1316_v31 = vadd.f32 %v1314_v47, %v2442_v56 }
 0x144   : > { %1636 = vst.msk [vmem:[%s2530_s21 + $0x40] sm:$0xff] %vm256_vm0, %v2515_v60  ;;  %v2536_v32 = vld [vmem:[#allocation2 + $0x38] sm:$0xff]  ;;  %v1213_v11 = vadd.f32 %v1211_v36, %v1207_v17  ;;  %v1048_v12 = vadd.f32 %v1046_v58, %v1042_v18  ;;  %v992_v13 = vadd.f32 %v990_v40, %v986_v19  ;;  %v1158_v50 = vadd.f32 %v1156_v3, %v1152_v22 }
 0x145   : > { %1618 = vst.msk [vmem:[%s2530_s21 + $0x10] sm:$0xff] %vm256_vm0, %v2520_v61  ;;  %v1217_v4 = vmul.f32 %v1215_v53, %v2536_v32  ;;  %v1052_v55 = vmul.f32 %v1050_v15, %v2536_v32  ;;  %v996_v56 = vmul.f32 %v994_v2, %v2536_v32  ;;  %v1162_v5 = vmul.f32 %v1160_v39, %v2536_v32 }
 0x146   : > { %999 = vst.msk [vmem:[%s2530_s21] sm:$0xff] %vm256_vm0, %v997_v0  ;;  %v1223_v9 = vsel %vm256_vm0, %v2515_v60, 0.0  ;;  %v1101_v53 = vmul.f32 %v1099_v35, %v2504_v63  ;;  %v1102_v15 = vadd.f32 %v1100_v45, %v1096_v24  ;;  %v1106_v2 = vmul.f32 %v1105_v1, %v2490_v42 }
 0x147   : > { %1630 = vst.msk [vmem:[%s2530_s21 + $0x30] sm:$0xff] %vm256_vm0, %v2528_v6  ;;  %v2568_v10 = vadd.f32 %v1217_v4, %v1213_v11  ;;  %v2570_v39 = vadd.f32 %v1052_v55, %v1048_v12  ;;  %v998_v14 = vadd.f32 %v996_v56, %v992_v13  ;;  %v2572_v17 = vadd.f32 %v1162_v5, %v1158_v50 }
 0x148   : > { %v1058_v18 = vsel %vm256_vm0, %v2520_v61, 0.0  ;;  %v1001_v19 = vsel %vm256_vm0, %v997_v0, 0.0  ;;  %v1103_v21 = vadd.f32 %v1101_v53, %v1097_v27  ;;  %v1107_v35 = vmul.f32 %v1105_v1, %v2536_v32 }
 0x149   : > { %v1224_v22 = vsel %vm256_vm0, %v2568_v10, 0.0  ;;  %1637 = vst.msk [vmem:[%s2530_s21 + $0x48] sm:$0xff] %vm256_vm0, %v2568_v10  ;;  %v1059_v23 = vsel %vm256_vm0, %v2570_v39, 0.0  ;;  %v1002_v28 = vsel %vm256_vm0, %v998_v14, 0.0  ;;  %v1108_v29 = vadd.f32 %v1106_v2, %v1102_v15 }
 0x14a   : > { %v1225_v1 = vadd.f32 %v1224_v22, %v1223_v9  ;;  %v1060_v34 = vadd.f32 %v1059_v23, %v1058_v18  ;;  %1619 = vst.msk [vmem:[%s2530_s21 + $0x18] sm:$0xff] %vm256_vm0, %v2570_v39  ;;  %v1003_v38 = vadd.f32 %v1002_v28, %v1001_v19  ;;  %v1016_v8 = vmul.f32 %v997_v0, %v997_v0 }
 0x14b   : > { %1000 = vst.msk [vmem:[%s2530_s21 + $0x8] sm:$0xff] %vm256_vm0, %v998_v14  ;;  %v1169_v44 = vsel %vm256_vm0, %v2572_v17, 0.0  ;;  %v1017_v45 = vmul.f32 %v998_v14, %v998_v14  ;;  %v1109_v47 = vadd.f32 %v1107_v35, %v1103_v21  ;;  %v1320_v48 = vmul.f32 %v1319_v41, %v2471_v20 }
 0x14c   : > { %1226 = vadd.xlane.f32.xlu1 %v1225_v1  ;;  %1061 = vadd.xlane.f32.xlu2 %v1060_v34  ;;  %1631 = vst.msk [vmem:[%s2530_s21 + $0x38] sm:$0xff] %vm256_vm0, %v2572_v17  ;;  %v1321_v51 = vmul.f32 %v1319_v41, %v2504_v63  ;;  %v1326_v52 = vmul.f32 %v1325_v46, %v2490_v42  ;;  %v1168_v49 = vsel %vm256_vm0, %v2528_v6, 0.0  ;;  %v1264_v59 = vstv %s2555_s25 }
 0x14d   : > { %v1327_v54 = vmul.f32 %v1325_v46, %v2536_v32  ;;  %1004 = vadd.xlane.f32.xlu0 %v1003_v38  ;;  %1624 = vst.msk [vmem:[%s2530_s21 + $0x20] sm:$0xff] %vm256_vm0, %v1108_v29  ;;  %v1322_v43 = vadd.f32 %v1320_v48, %v1316_v31  ;;  %v1255_v57 = vmul.f32 %v1254_v33, %v2413_v30  ;;  %v1018_v36 = vsel %vm256_vm0, %v1016_v8, 0.0 }
 0x14e   : > { %v1170_v41 = vadd.f32 %v1169_v44, %v1168_v49  ;;  %1625 = vst.msk [vmem:[%s2530_s21 + $0x28] sm:$0xff] %vm256_vm0, %v1109_v47  ;;  %v1323_v46 = vadd.f32 %v1321_v51, %v1317_v7  ;;  %v1256_v58 = vmul.f32 %v1254_v33, %v2426_v26  ;;  %v1019_v40 = vsel %vm256_vm0, %v1017_v45, 0.0 }
 0x14f   : > { %v1114_v0 = vsel %vm256_vm0, %v1109_v47, 0.0  ;;  %v2632_v3 = vadd.f32 %v1326_v52, %v1322_v43  ;;  %v1259_v24 = vmul.f32 %v1258_v37, %v2448_v62  ;;  %v1265_v7 = vmul.f32 %v1264_v59, %v2471_v20 }
 0x150   : > { %v2637_v27 = vadd.f32 %v1327_v54, %v1323_v46  ;;  %v1262_v31 = vadd.f32 %v2469_v16, %v1256_v58  ;;  %v1266_v33 = vmul.f32 %v1264_v59, %v2504_v63  ;;  %v1113_v11 = vsel %vm256_vm0, %v1108_v29, 0.0 }
 0x151   : > { %1648 = vst.msk [vmem:[%s2530_s21 + $0x60] sm:$0xff] %vm256_vm0, %v2632_v3  ;;  %v1128_v12 = vmul.f32 %v1109_v47, %v1109_v47  ;;  %v1261_v13 = vadd.f32 %v1259_v24, %v1255_v57  ;;  %v1270_v50 = vstv %s2588_s0  ;;  %v1020_v4 = vadd.f32 %v1019_v40, %v1018_v36 }
 0x152   : > { %1649 = vst.msk [vmem:[%s2530_s21 + $0x68] sm:$0xff] %vm256_vm0, %v2637_v27  ;;  %v1268_v37 = vadd.f32 %v1266_v33, %v1262_v31  ;;  %v1271_v16 = vmul.f32 %v1270_v50, %v2490_v42  ;;  %v1272_v55 = vmul.f32 %v1270_v50, %v2536_v32  ;;  %v1115_v56 = vadd.f32 %v1114_v0, %v1113_v11 }
 0x153   : > { %v1127_v5 = vmul.f32 %v1108_v29, %v1108_v29  ;;  %v1267_v9 = vadd.f32 %v1265_v7, %v1261_v13  ;;  %v1334_v15 = vsel %vm256_vm0, %v2637_v27, 0.0  ;;  %v1130_v2 = vsel %vm256_vm0, %v1128_v12, 0.0 }
 0x154   : > { %1171 = vadd.xlane.f32.xlu2 %v1170_v41  ;;  %1021 = vadd.xlane.f32.xlu1 %v1020_v4  ;;  %v1274_v53 = vadd.f32 %v1272_v55, %v1268_v37  ;;  %v1364_v18 = vstv %s2620_s16  ;;  %v1368_v19 = vstv %s2628_s15  ;;  %v1333_v21 = vsel %vm256_vm0, %v2632_v3, 0.0 }
 0x155   : > { %1116 = vadd.xlane.f32.xlu0 %v1115_v56  ;;  %v1273_v14 = vadd.f32 %v1271_v16, %v1267_v9  ;;  %v1129_v35 = vsel %vm256_vm0, %v1127_v5, 0.0  ;;  %v1335_v23 = vadd.f32 %v1334_v15, %v1333_v21  ;;  %v1073_v29 = vmul.f32 %v2570_v39, %v2570_v39 }
 0x156   : > { %1643 = vst.msk [vmem:[%s2530_s21 + $0x58] sm:$0xff] %vm256_vm0, %v1274_v53  ;;  %v1279_v22 = vsel %vm256_vm0, %v1274_v53, 0.0  ;;  %v1131_v28 = vadd.f32 %v1130_v2, %v1129_v35  ;;  %v1365_v1 = vmul.f32 %v1364_v18, %v2413_v30  ;;  %v1293_v38 = vmul.f32 %v1274_v53, %v1274_v53 }
 0x157   : > { %1642 = vst.msk [vmem:[%s2530_s21 + $0x50] sm:$0xff] %vm256_vm0, %v1273_v14  ;;  %v1278_v34 = vsel %vm256_vm0, %v1273_v14, 0.0  ;;  %v1183_v8 = vmul.f32 %v2572_v17, %v2572_v17  ;;  %v1369_v44 = vmul.f32 %v1368_v19, %v2448_v62  ;;  %v1366_v47 = vmul.f32 %v1364_v18, %v2426_v26 }
 0x158   : > { %v1280_v45 = vadd.f32 %v1279_v22, %v1278_v34  ;;  %v1370_v48 = vmul.f32 %v1368_v19, %v2436_v25  ;;  %v1374_v51 = vstv %s2652_s17  ;;  %v1380_v30 = vstv %s2654_s18 }
 0x159   : > { %v1371_v52 = vadd.f32 %v1369_v44, %v1365_v1  ;;  %v1375_v54 = vmul.f32 %v1374_v51, %v2471_v20  ;;  %v1376_v39 = vmul.f32 %v1374_v51, %v2504_v63  ;;  %v1381_v17 = vmul.f32 %v1380_v30, %v2490_v42 }
 0x15a   : > { %v1372_v49 = vadd.f32 %v1370_v48, %v1366_v47  ;;  %v1382_v62 = vmul.f32 %v1380_v30, %v2536_v32  ;;  %v1072_v26 = vmul.f32 %v2520_v61, %v2520_v61  ;;  %v1292_v25 = vmul.f32 %v1273_v14, %v1273_v14 }
 0x15b   : > { %v1377_v43 = vadd.f32 %v1375_v54, %v1371_v52  ;;  %v1182_v20 = vmul.f32 %v2528_v6, %v2528_v6  ;;  %v1075_v57 = vsel %vm256_vm0, %v1073_v29, 0.0  ;;  %v1295_v59 = vsel %vm256_vm0, %v1293_v38, 0.0 }
 0x15c   : > { %1336 = vadd.xlane.f32.xlu2 %v1335_v23  ;;  %1132 = vadd.xlane.f32.xlu1 %v1131_v28  ;;  %v1378_v63 = vadd.f32 %v1376_v39, %v1372_v49  ;;  %v1185_v42 = vsel %vm256_vm0, %v1183_v8, 0.0  ;;  %v1074_v32 = vsel %vm256_vm0, %v1072_v26, 0.0  ;;  %v1294_v46 = vsel %vm256_vm0, %v1292_v25, 0.0 }
 0x15d   : > { %1281 = vadd.xlane.f32.xlu0 %v1280_v45  ;;  %v1383_v41 = vadd.f32 %v1381_v17, %v1377_v43  ;;  %v1076_v61 = vadd.f32 %v1075_v57, %v1074_v32  ;;  %v1296_v58 = vadd.f32 %v1295_v59, %v1294_v46  ;;  %v1184_v40 = vsel %vm256_vm0, %v1182_v20, 0.0 }
 0x15e   : > { %v1384_v36 = vadd.f32 %v1382_v62, %v1378_v63  ;;  %v1186_v6 = vadd.f32 %v1185_v42, %v1184_v40  ;;  %v1238_v0 = vmul.f32 %v2568_v10, %v2568_v10  ;;  %v1348_v24 = vmul.f32 %v2637_v27, %v2637_v27 }
 0x15f   : > { %1654 = vst.msk [vmem:[%s2530_s21 + $0x70] sm:$0xff] %vm256_vm0, %v1383_v41  ;;  %v1237_v31 = vmul.f32 %v2515_v60, %v2515_v60  ;;  %v1347_v7 = vmul.f32 %v2632_v3, %v2632_v3  ;;  %v1388_v13 = vsel %vm256_vm0, %v1383_v41, 0.0  ;;  %v1402_v3 = vmul.f32 %v1383_v41, %v1383_v41 }
 0x160   : > { %1655 = vst.msk [vmem:[%s2530_s21 + $0x78] sm:$0xff] %vm256_vm0, %v1384_v36  ;;  %v1240_v33 = vsel %vm256_vm0, %v1238_v0, 0.0  ;;  %v1389_v11 = vsel %vm256_vm0, %v1384_v36, 0.0  ;;  %v1350_v12 = vsel %vm256_vm0, %v1348_v24, 0.0  ;;  %v1403_v37 = vmul.f32 %v1384_v36, %v1384_v36 }
 0x161   : > { %v1239_v10 = vsel %vm256_vm0, %v1237_v31, 0.0  ;;  %v1390_v50 = vadd.f32 %v1389_v11, %v1388_v13  ;;  %v1349_v4 = vsel %vm256_vm0, %v1347_v7, 0.0  ;;  %v1404_v55 = vsel %vm256_vm0, %v1402_v3, 0.0 }
 0x162   : > { %v1241_v27 = vadd.f32 %v1240_v33, %v1239_v10  ;;  %v1351_v60 = vadd.f32 %v1350_v12, %v1349_v4  ;;  %v1405_v16 = vsel %vm256_vm0, %v1403_v37, 0.0 }
 0x163   : > { %v1406_v56 = vadd.f32 %v1405_v16, %v1404_v55 }
 0x164   : > { %1077 = vadd.xlane.f32.xlu2 %v1076_v61  ;;  %1297 = vadd.xlane.f32.xlu1 %v1296_v58 }
 0x165   : > { %1187 = vadd.xlane.f32.xlu0 %v1186_v6 }
 0x16c   : > { %1242 = vadd.xlane.f32.xlu2 %v1241_v27  ;;  %1391 = vadd.xlane.f32.xlu1 %v1390_v50 }
 0x16d   : > { %1352 = vadd.xlane.f32.xlu0 %v1351_v60 }
 0x174   : > { %1407 = vadd.xlane.f32.xlu2 %v1406_v56 }
 0x175   : > { %1856 = shalt.err (!%p1853_p8)
}
 0x176   : > { %s1912_s22 = smov 128   ;;  %s1913_s29 = smov 8   ;;  %vm1014_vm6 = vcmask 0   ;;  %vm1031_vm7 = vcmask 8200  }
 0x177   : > { %1705 = dma.vmem_to_hbm [thread:$0]  (%p1991_p11), %s1436_s11, 2048, %s1438_s13, %s1419_s20, %s1912_s22, %s1912_s22, %s1913_s29  }
 0x178   : > { %p252_p11 = scmp.lt.s32.totalorder %s1960_s19, 1 }
 0x17a   : > { %s2827_s19 = smov (!%p252_p11, %s1960_s19), 1 }
 0x17b   : > { %s1575_s27 = sshll.u32 %s2827_s19, 3 }
 0x17c   : > { %s2735_s2 = scalar_lea.vmem %s2791_s4, %s1575_s27 }
 0x1bf   : > { %v1227_v5 = vpop.xlane.xlu1 %1226  ;;  %v1062_v9 = vpop.xlane.xlu2 %1061 }
 0x1c0   : > { %v1063_v53 = vrot.slane %v1062_v9, 4  ;;  %v1005_v15 = vpop.xlane.xlu0 %1004  ;;  %v1228_v17 = vrot.slane %v1227_v5, 4 }
 0x1c1   : > { %v1006_v2 = vrot.slane %v1005_v15, 4 }
 0x1c2   : > { %v1064_v14 = vadd.f32 %v1063_v53, %v1062_v9  ;;  %v1229_v63 = vadd.f32 %v1228_v17, %v1227_v5 }
 0x1c3   : > { %v1007_v18 = vadd.f32 %v1006_v2, %v1005_v15 }
 0x1c4   : > { %v1065_v21 = vrot.slane %v1064_v14, 2  ;;  %v1230_v0 = vrot.slane %v1229_v63, 2 }
 0x1c5   : > { %v1008_v19 = vrot.slane %v1007_v18, 2 }
 0x1c6   : > { %v1066_v8 = vadd.f32 %v1065_v21, %v1064_v14  ;;  %v1231_v60 = vadd.f32 %v1230_v0, %v1229_v63 }
 0x1c7   : > { %v1172_v35 = vpop.xlane.xlu2 %1171  ;;  %v1022_v22 = vpop.xlane.xlu1 %1021  ;;  %v1009_v23 = vadd.f32 %v1008_v19, %v1007_v18 }
 0x1c8   : > { %v1023_v28 = vrot.slane %v1022_v22, 4  ;;  %v1117_v29 = vpop.xlane.xlu0 %1116  ;;  %v1067_v52 = vrot.slane %v1066_v8, 1  ;;  %v1173_v49 = vrot.slane %v1172_v35, 4 }
 0x1c9   : > { %v1010_v1 = vrot.slane %v1009_v23, 1  ;;  %v1118_v47 = vrot.slane %v1117_v29, 4 }
 0x1ca   : > { %v1024_v34 = vadd.f32 %v1023_v28, %v1022_v22  ;;  %v1068_v43 = vadd.f32 %v1067_v52, %v1066_v8  ;;  %v1174_v20 = vadd.f32 %v1173_v49, %v1172_v35 }
 0x1cb   : > { %v1011_v38 = vadd.f32 %v1010_v1, %v1009_v23  ;;  %v1119_v26 = vadd.f32 %v1118_v47, %v1117_v29  ;;  %v1232_v29 = vrot.slane %v1231_v60, 1 }
 0x1cc   : > { %v1025_v44 = vrot.slane %v1024_v34, 2  ;;  %v1175_v58 = vrot.slane %v1174_v20, 2 }
 0x1cd   : > { %1663 = vpush %v1011_v38  ;;  %v1120_v57 = vrot.slane %v1119_v26, 2  ;;  %v1233_v17 = vadd.f32 %v1232_v29, %v1231_v60 }
 0x1ce   : > { %v1026_v45 = vadd.f32 %v1025_v44, %v1024_v34  ;;  %v1176_v50 = vadd.f32 %v1175_v58, %v1174_v20 }
 0x1cf   : > { %v1337_v48 = vpop.xlane.xlu2 %1336  ;;  %v1133_v51 = vpop.xlane.xlu1 %1132  ;;  %v1121_v33 = vadd.f32 %v1120_v57, %v1119_v26 }
 0x1d0   : > { %v1134_v54 = vrot.slane %v1133_v51, 4  ;;  %v1282_v39 = vpop.xlane.xlu0 %1281  ;;  %v1027_v30 = vrot.slane %v1026_v45, 1  ;;  %v1338_v40 = vrot.slane %v1337_v48, 4  ;;  %v1177_v21 = vrot.slane %v1176_v50, 1 }
 0x1d1   : > { %v1283_v41 = vrot.slane %v1282_v39, 4  ;;  %v1122_v55 = vrot.slane %v1121_v33, 1 }
 0x1d2   : > { %v1028_v62 = vadd.f32 %v1027_v30, %v1026_v45  ;;  %v1135_v25 = vadd.f32 %v1134_v54, %v1133_v51  ;;  %v1339_v13 = vadd.f32 %v1338_v40, %v1337_v48  ;;  %v1178_v52 = vadd.f32 %v1177_v21, %v1176_v50 }
 0x1d3   : > { %v1284_v31 = vadd.f32 %v1283_v41, %v1282_v39  ;;  %v1123_v34 = vadd.f32 %v1122_v55, %v1121_v33 }
 0x1d4   : > { %1665 = vpush %v1028_v62  ;;  %v1136_v59 = vrot.slane %v1135_v25, 2  ;;  %v1340_v18 = vrot.slane %v1339_v13, 2 }
 0x1d5   : > { %1667 = vpush %v1068_v43  ;;  %v1285_v37 = vrot.slane %v1284_v31, 2 }
 0x1d6   : > { %v1137_v11 = vadd.f32 %v1136_v59, %v1135_v25  ;;  %v1341_v54 = vadd.f32 %v1340_v18, %v1339_v13 }
 0x1d7   : > { %v1078_v42 = vpop.xlane.xlu2 %1077  ;;  %v1298_v36 = vpop.xlane.xlu1 %1297  ;;  %v1286_v8 = vadd.f32 %v1285_v37, %v1284_v31 }
 0x1d8   : > { %v1079_v32 = vrot.slane %v1078_v42, 4  ;;  %v1299_v46 = vrot.slane %v1298_v36, 4  ;;  %v1188_v61 = vpop.xlane.xlu0 %1187  ;;  %v1138_v56 = vrot.slane %v1137_v11, 1  ;;  %v1342_v63 = vrot.slane %v1341_v54, 1 }
 0x1d9   : > { %v1189_v6 = vrot.slane %v1188_v61, 4  ;;  %v1287_v26 = vrot.slane %v1286_v8, 1 }
 0x1da   : > { %v1080_v24 = vadd.f32 %v1079_v32, %v1078_v42  ;;  %v1300_v10 = vadd.f32 %v1299_v46, %v1298_v36  ;;  %v1139_v38 = vadd.f32 %v1138_v56, %v1137_v11  ;;  %v1343_v58 = vadd.f32 %v1342_v63, %v1341_v54 }
 0x1db   : > { %v1190_v7 = vadd.f32 %v1189_v6, %v1188_v61  ;;  %v1288_v36 = vadd.f32 %v1287_v26, %v1286_v8 }
 0x1dc   : > { %v1081_v12 = vrot.slane %v1080_v24, 2  ;;  %v1301_v9 = vrot.slane %v1300_v10, 2 }
 0x1dd   : > { %v1191_v27 = vrot.slane %v1190_v7, 2 }
 0x1de   : > { %v1082_v4 = vadd.f32 %v1081_v12, %v1080_v24  ;;  %v1302_v48 = vadd.f32 %v1301_v9, %v1300_v10 }
 0x1df   : > { %v1243_v3 = vpop.xlane.xlu2 %1242  ;;  %v1392_v16 = vpop.xlane.xlu1 %1391  ;;  %v1192_v5 = vadd.f32 %v1191_v27, %v1190_v7 }
 0x1e0   : > { %v1244_v53 = vrot.slane %v1243_v3, 4  ;;  %v1393_v15 = vrot.slane %v1392_v16, 4  ;;  %v1353_v2 = vpop.xlane.xlu0 %1352  ;;  %v1083_v14 = vrot.slane %v1082_v4, 1  ;;  %v1303_v20 = vrot.slane %v1302_v48, 1 }
 0x1e1   : > { %v1354_v19 = vrot.slane %v1353_v2, 4  ;;  %v1193_v35 = vrot.slane %v1192_v5, 1 }
 0x1e2   : > { %v1245_v22 = vadd.f32 %v1244_v53, %v1243_v3  ;;  %v1394_v23 = vadd.f32 %v1393_v15, %v1392_v16  ;;  %v1084_v28 = vadd.f32 %v1083_v14, %v1082_v4  ;;  %v1304_v46 = vadd.f32 %v1303_v20, %v1302_v48 }
 0x1e3   : > { %v1355_v1 = vadd.f32 %v1354_v19, %v1353_v2  ;;  %v1194_v47 = vadd.f32 %v1193_v35, %v1192_v5 }
 0x1e4   : > { %v1246_v44 = vrot.slane %v1245_v22, 2  ;;  %v1395_v45 = vrot.slane %v1394_v23, 2  ;;  %1669 = vpush %v1084_v28 }
 0x1e5   : > { %v1356_v51 = vrot.slane %v1355_v1, 2  ;;  %1671 = vpush %v1123_v34 }
 0x1e6   : > { %v1396_v39 = vadd.f32 %v1395_v45, %v1394_v23  ;;  %1673 = vpush %v1139_v38  ;;  %v1247_v30 = vadd.f32 %v1246_v44, %v1245_v22 }
 0x1e7   : > { %v1357_v49 = vadd.f32 %v1356_v51, %v1355_v1  ;;  %1675 = vpush %v1178_v52  ;;  %v1408_v62 = vpop.xlane.xlu2 %1407 }
 0x1e8   : > { %1677 = vpush %v1194_v47  ;;  %v1409_v25 = vrot.slane %v1408_v62, 4  ;;  %v1248_v43 = vrot.slane %v1247_v30, 1  ;;  %v1397_v59 = vrot.slane %v1396_v39, 1 }
 0x1e9   : > { %1679 = vpush %v1233_v17  ;;  %v1358_v57 = vrot.slane %v1357_v49, 1 }
 0x1ea   : > { %v1410_v41 = vadd.f32 %v1409_v25, %v1408_v62  ;;  %v1249_v42 = vadd.f32 %v1248_v43, %v1247_v30  ;;  %v1398_v40 = vadd.f32 %v1397_v59, %v1396_v39 }
 0x1eb   : > { %v1359_v61 = vadd.f32 %v1358_v57, %v1357_v49 }
 0x1ec   : > { %v1411_v32 = vrot.slane %v1410_v41, 2  ;;  %1681 = vpush %v1249_v42 }
 0x1ed   : > { %1683 = vpush %v1288_v36 }
 0x1ee   : > { %v1412_v6 = vadd.f32 %v1411_v32, %v1410_v41  ;;  %1685 = vpush %v1304_v46 }
 0x1ef   : > { %1687 = vpush %v1343_v58 }
 0x1f0   : > { %1689 = vpush %v1359_v61  ;;  %v1413_v0 = vrot.slane %v1412_v6, 1 }
 0x1f1   : > { %1691 = vpush %v1398_v40 }
 0x1f2   : > { %v1414_v24 = vadd.f32 %v1413_v0, %v1412_v6 }
 0x1f4   : > { %1693 = vpush %v1414_v24 }
 0x1fe   : > { %s1664_s7 = spop %1663 }
 0x1ff   : > { %v1013_v31 = vstv %s1664_s7 }
 0x200   : > { %1015 = vst.msk [vmem:[%s2735_s2] sm:$0x1] %vm1014_vm6, %v1013_v31 }
 0x205   : > { %s1666_s21 = spop %1665 }
 0x206   : > { %v1030_v7 = vstv %s1666_s21  ;;  %s1668_s19 = spop %1667 }
 0x207   : > { %1032 = vst.msk [vmem:[%s2735_s2] sm:$0x1] %vm1031_vm7, %v1030_v7  ;;  %v1070_v33 = vstv %s1668_s19 }
 0x208   : > { %1071 = vst.msk [vmem:[%s2735_s2 + $0x1] sm:$0x1] %vm1014_vm6, %v1070_v33 }
 0x215   : > { %s1670_s25 = spop %1669 }
 0x216   : > { %v1086_v11 = vstv %s1670_s25  ;;  %s1672_s0 = spop %1671 }
 0x217   : > { %1087 = vst.msk [vmem:[%s2735_s2 + $0x1] sm:$0x1] %vm1031_vm7, %v1086_v11  ;;  %v1125_v12 = vstv %s1672_s0  ;;  %s1674_s16 = spop %1673 }
 0x218   : > { %1126 = vst.msk [vmem:[%s2735_s2 + $0x2] sm:$0x1] %vm1014_vm6, %v1125_v12  ;;  %v1141_v10 = vstv %s1674_s16  ;;  %s1676_s15 = spop %1675 }
 0x219   : > { %1142 = vst.msk [vmem:[%s2735_s2 + $0x2] sm:$0x1] %vm1031_vm7, %v1141_v10  ;;  %v1180_v13 = vstv %s1676_s15  ;;  %s1678_s17 = spop %1677 }
 0x21a   : > { %1181 = vst.msk [vmem:[%s2735_s2 + $0x3] sm:$0x1] %vm1014_vm6, %v1180_v13  ;;  %v1196_v27 = vstv %s1678_s17  ;;  %s1680_s18 = spop %1679 }
 0x21b   : > { %1197 = vst.msk [vmem:[%s2735_s2 + $0x3] sm:$0x1] %vm1031_vm7, %v1196_v27  ;;  %v1235_v50 = vstv %s1680_s18 }
 0x21c   : > { %1236 = vst.msk [vmem:[%s2735_s2 + $0x4] sm:$0x1] %vm1014_vm6, %v1235_v50 }
 0x21d   : > { %s1682_s24 = spop %1681 }
 0x21e   : > { %v1251_v4 = vstv %s1682_s24  ;;  %s1684_s28 = spop %1683 }
 0x21f   : > { %1252 = vst.msk [vmem:[%s2735_s2 + $0x4] sm:$0x1] %vm1031_vm7, %v1251_v4  ;;  %v1290_v60 = vstv %s1684_s28  ;;  %s1686_s8 = spop %1685 }
 0x220   : > { %1291 = vst.msk [vmem:[%s2735_s2 + $0x5] sm:$0x1] %vm1014_vm6, %v1290_v60  ;;  %v1306_v37 = vstv %s1686_s8  ;;  %s1688_s9 = spop %1687 }
 0x221   : > { %1307 = vst.msk [vmem:[%s2735_s2 + $0x5] sm:$0x1] %vm1031_vm7, %v1306_v37  ;;  %v1345_v3 = vstv %s1688_s9  ;;  %s1690_s11 = spop %1689 }
 0x222   : > { %1346 = vst.msk [vmem:[%s2735_s2 + $0x6] sm:$0x1] %vm1014_vm6, %v1345_v3  ;;  %v1361_v16 = vstv %s1690_s11  ;;  %s1692_s13 = spop %1691 }
 0x223   : > { %1362 = vst.msk [vmem:[%s2735_s2 + $0x6] sm:$0x1] %vm1031_vm7, %v1361_v16  ;;  %v1400_v55 = vstv %s1692_s13 }
 0x224   : > { %1401 = vst.msk [vmem:[%s2735_s2 + $0x7] sm:$0x1] %vm1014_vm6, %v1400_v55 }
 0x225   : > { %s1694_s20 = spop %1693 }
 0x226   : > { %v1416_v56 = vstv %s1694_s20 }
 0x227   : > { %1417 = vst.msk [vmem:[%s2735_s2 + $0x7] sm:$0x1] %vm1031_vm7, %v1416_v56 }
 0x228 PF: > { %s2818_s30 = sld [smem:[#allocation15_spill]] }
 0x229   : > { %s2820_s6 = sld [smem:[#allocation18_spill]] }
 0x22e   : > { %s1455_s14 = sand.u32 1, %s2818_s30  }
 0x22f   : > { %p2821_p9 = scmp.ge.s32.totalorder %s2820_s6, 2  ;;  %s1456_s23 = scalar_lea.sflag [#allocation5], %s1455_s14 }
 0x231   : > { %p1719_p10 = pnand %p2821_p9, %p1995_p12 }
 0x233   : > { %p1720_p1 = pneg %p1719_p10 }
 0x235   : > { %1886 = dma.done.wait (%p1720_p1), %s1456_s23, 2048  }
 0x236   : > { %1888 = vsyncadd (%p1720_p1), %s1456_s23, 4294965248  ;;  %s2822_s18 = sld [smem:[#allocation19_spill]] }
 0x237   : > { %s2823_s15 = sld [smem:[#allocation16_spill]] }
 0x238   : > { %s2824_s16 = sld [smem:[#allocation17_spill]] }
 0x239   : > { %s2825_s17 = sld [smem:[#allocation20_spill]] }
 0x23c   : > { %p20_p2 = scmp.ge.s32.totalorder %s2822_s18, 4  }
 0x23e   :  { %22 = sbr.rel (!%p20_p2) target bundleno = 11 (0xb), region = 109 }
 0x243   :  { %1469 = vsyncpa [#allocation4], 1 }
 0x244   :  { %1471 = vsyncpa [#allocation4 + $0x1], 1 }
 0x245   :  { %1472 = vsyncpa [#allocation5], 1 }
 0x246   :  { %1474 = vsyncpa [#allocation5 + $0x1], 1 }
 0x247   :  { %1475 = vsyncpa [#allocation6], 1 }
 0x248   :  { %1477 = vsyncpa [#allocation6 + $0x1], 1 }
 0x249   :  { %1478 = vsyncpa [#allocation7], 1 }
 0x24a   :  { %1480 = vsyncpa [#allocation7 + $0x1], 1 }

</bundles_post_ra>
